<compile_context>
chip_gen: v7x
topology: tpu7x:2x2x1
jax: 0.10.0
libtpu: 0.0.40
codegen_flags: <defaults>
</compile_context>

<pallas_src>
import jax
import jax.numpy as jnp
from jax import lax
from jax.experimental import pallas as pl
from jax.experimental.pallas import tpu as pltpu


# ------------------------------ fused kernel ------------------------------- #

def _net_automad_kernel(x_ref, w1_ref, b1_ref, w2_ref, b2_ref,
                        mask_ref, klT_ref, bl_ref, tgt_ref,
                        y_ref, loss_ref):
    f32 = jnp.float32
    B = x_ref.shape[0]

    def shift_left(v, s):
        # v[..., l] <- v[..., l + s] with wrap-around along the flat 16x16
        # frame.  Wrapped / cross-row lanes only ever land on invalid border
        # positions of the frame, which are never read by later stages.
        if s == 0:
            return v
        return jnp.concatenate([v[..., s:], v[..., :s]], axis=-1)

    # ---------------- conv1 (3 -> 4, k=3) + tanh, lane-dense VPU --------------
    x = x_ref[...]                                       # (B, 3, 256)
    w1 = w1_ref[...]                                     # (4, 27)  [co, ci*9+t]
    acc1 = jnp.zeros((B, 4, 256), f32)
    for kh in range(3):
        for kw in range(3):
            t = kh * 3 + kw
            xs = shift_left(x, kh * 16 + kw)             # (B, 3, 256) tap frame
            for ci in range(3):
                k = ci * 9 + t
                # (4,1) weight vector * (B,1,256) tap -> (B,4,256): one
                # broadcast MAC covers every batch row and output channel.
                acc1 = acc1 + w1[:, k:k + 1] * xs[:, ci:ci + 1, :]
    h1 = jnp.tanh(acc1 + b1_ref[...])                    # single batched tanh

    # --------------------- conv2 (4 -> 5, k=3), lane-dense --------------------
    w2 = w2_ref[...]                                     # (5, 36)  [co, ci*9+t]
    acc2 = jnp.zeros((B, 5, 256), f32)
    for kh in range(3):
        for kw in range(3):
            t = kh * 3 + kw
            hs = shift_left(h1, kh * 16 + kw)            # (B, 4, 256)
            for ci in range(4):
                k = ci * 9 + t
                acc2 = acc2 + w2[:, k:k + 1] * hs[:, ci:ci + 1, :]

    # -------------------- dropout(0.5, train) + relu, batched -----------------
    z = (acc2 + b2_ref[...]) * mask_ref[...]             # mask in {0.0, 2.0}
    z = jnp.maximum(z, 0.0)                              # (B, 5, 256)

    # ------------- AvgPool2d(2) -> MaxPool2d(2) as VPU shifted sums -----------
    # s2[h,w] = 2x2 block sum anchored at (h,w);  m4[4i,4j] = max over the four
    # block sums of the max-pool window => 4 * pooled[i,j].
    s1 = z + shift_left(z, 1)                            # + right neighbour
    s2 = s1 + shift_left(s1, 16)                         # + row below
    m4 = jnp.maximum(jnp.maximum(s2, shift_left(s2, 2)),
                     jnp.maximum(shift_left(s2, 32), shift_left(s2, 34)))

    # --------- flatten(1) + 0.25 scale + Linear(45, 7): one dot on MXU --------
    # klT (7, 1280) is a host-built scatter of the linear weight: it picks the
    # nine valid pool anchors per channel frame and applies the 0.25 avg scale,
    # so the strided max-pool gather costs nothing in-kernel.
    feat = jnp.concatenate([m4[:, c, :] for c in range(5)], axis=-1)   # (B,1280)
    y = lax.dot_general(feat, klT_ref[...], (((1,), (1,)), ((), ())),
                        preferred_element_type=f32) + bl_ref[...]      # (B, 7)
    y_ref[...] = y

    # MSE (reduction='mean') from the already-computed y, in the same kernel.
    d = y - tgt_ref[...]
    loss_ref[...] = jnp.sum(d * d, axis=(0, 1), keepdims=True) * (1.0 / d.size)


# -------------------------------- wrapper ----------------------------------- #

def net_automad_forward(x, params, dropout_mask, tgt=None):
    """Single fused forward pass.  Returns y, or (y, loss) when tgt is given."""
    B = int(x.shape[0])
    f32 = jnp.float32

    # Host-side (free) reshapes: spatial dims flattened into the lane axis,
    # conv weights laid out (Cout, Cin*3*3) so one vector slice covers all
    # output channels per tap.
    x_flat = x.astype(f32).reshape(B, 3, 256)
    w1 = params["w1"].astype(f32).reshape(4, 27)
    b1 = params["b1"].astype(f32).reshape(4, 1)
    w2 = params["w2"].astype(f32).reshape(5, 36)
    b2 = params["b2"].astype(f32).reshape(5, 1)
    wl = params["wl"].astype(f32)                        # (7, 45)
    bl = params["bl"].astype(f32).reshape(1, 7)

    # Fold torch.flatten(x,1)'s channel-major order, the max-pool anchor gather
    # (flat position 64*i + 4*j inside each 16x16 frame) and the 0.25 avg-pool
    # scale into one sparse (7, 5*256) linear weight.
    cols = (jnp.arange(5)[:, None, None] * 256
            + jnp.arange(3)[None, :, None] * 64
            + jnp.arange(3)[None, None, :] * 4).reshape(45)
    klT = jnp.zeros((7, 5 * 256), f32).at[:, cols].set(0.25 * wl)

    mask = dropout_mask.astype(f32).reshape(B, 5, 256)
    tgt_in = tgt.astype(f32) if tgt is not None else jnp.zeros((B, 7), f32)

    vmem = pl.BlockSpec(memory_space=pltpu.MemorySpace.VMEM)
    y, loss2d = pl.pallas_call(
        _net_automad_kernel,
        out_shape=(jax.ShapeDtypeStruct((B, 7), f32),
                   jax.ShapeDtypeStruct((1, 1), f32)),
        in_specs=[vmem] * 9,
        out_specs=(vmem, vmem),
    )(x_flat, w1, b1, w2, b2, mask, klT, bl, tgt_in)

    if tgt is None:
        return y
    return y, loss2d[0, 0]


# ---------------------------------- main ------------------------------------ #

if __name__ == "__main__":
    n_batches = 2
    key = jax.random.PRNGKey(0)
    ks = jax.random.split(key, 9)

    def uinit(k, shape, fan_in):
        bound = float(fan_in) ** -0.5
        return jax.random.uniform(k, shape, jnp.float32, -bound, bound)

    params = dict(
        w1=uinit(ks[0], (4, 3, 3, 3), 3 * 9),
        b1=uinit(ks[1], (4,), 3 * 9),
        w2=uinit(ks[2], (5, 4, 3, 3), 4 * 9),
        b2=uinit(ks[3], (5,), 4 * 9),
        wl=uinit(ks[4], (7, 45), 45),
        bl=uinit(ks[5], (7,), 45),
    )

    x = jax.random.normal(ks[6], (n_batches, 3, 16, 16), jnp.float32)
    tgt = jax.random.normal(ks[7], (n_batches, 7), jnp.float32)

    # Training-mode dropout mask (keep prob 0.5, scale 2.0), drawn once.
    keep = jax.random.bernoulli(ks[8], 0.5, (n_batches, 5, 16, 16))
    dropout_mask = keep.astype(jnp.float32) * 2.0

    # Single fused launch produces both the (B, 7) output and the MSE loss.
    y, loss = net_automad_forward(x, params, dropout_mask, tgt=tgt)

    jax.block_until_ready((y, loss))
    assert y.shape == (n_batches, 7)
    assert loss.shape == ()
    print("KERNEL_OK")
</pallas_src>

<mosaic_0001>
module attributes {stable_mosaic.version = 11 : i64} {
  func.func @_net_automad_kernel(%arg0: memref<2x3x256xf32, #tpu.memory_space<vmem>>, %arg1: memref<4x27xf32, #tpu.memory_space<vmem>>, %arg2: memref<4x1xf32, #tpu.memory_space<vmem>>, %arg3: memref<5x36xf32, #tpu.memory_space<vmem>>, %arg4: memref<5x1xf32, #tpu.memory_space<vmem>>, %arg5: memref<2x5x256xf32, #tpu.memory_space<vmem>>, %arg6: memref<7x1280xf32, #tpu.memory_space<vmem>>, %arg7: memref<1x7xf32, #tpu.memory_space<vmem>>, %arg8: memref<2x7xf32, #tpu.memory_space<vmem>>, %arg9: memref<2x7xf32, #tpu.memory_space<vmem>>, %arg10: memref<1x1xf32, #tpu.memory_space<vmem>>) attributes {dimension_semantics = [], scalar_prefetch = 0 : i64, scratch_operands = 0 : i64, tpu.core_type = #tpu.core_type<tc>} {
    %c0 = arith.constant 0 : index
    %c0_0 = arith.constant 0 : index
    %c0_1 = arith.constant 0 : index
    %0 = vector.load %arg0[%c0, %c0_0, %c0_1] : memref<2x3x256xf32, #tpu.memory_space<vmem>>, vector<2x3x256xf32>
    %c0_2 = arith.constant 0 : index
    %c0_3 = arith.constant 0 : index
    %1 = vector.load %arg1[%c0_2, %c0_3] : memref<4x27xf32, #tpu.memory_space<vmem>>, vector<4x27xf32>
    %cst = arith.constant 0.000000e+00 : f32
    %2 = vector.broadcast %cst : f32 to vector<2x4x256xf32>
    %3 = vector.extract_strided_slice %1 {offsets = [0, 0], sizes = [4, 1], strides = [1, 1]} : vector<4x27xf32> to vector<4x1xf32>
    %4 = vector.extract_strided_slice %0 {offsets = [0, 0, 0], sizes = [2, 1, 256], strides = [1, 1, 1]} : vector<2x3x256xf32> to vector<2x1x256xf32>
    %5 = vector.shape_cast %3 : vector<4x1xf32> to vector<1x4x1xf32>
    %6 = vector.broadcast %5 : vector<1x4x1xf32> to vector<2x4x256xf32>
    %7 = vector.broadcast %4 : vector<2x1x256xf32> to vector<2x4x256xf32>
    %8 = arith.mulf %6, %7 : vector<2x4x256xf32>
    %9 = arith.addf %2, %8 : vector<2x4x256xf32>
    %10 = vector.extract_strided_slice %1 {offsets = [0, 9], sizes = [4, 1], strides = [1, 1]} : vector<4x27xf32> to vector<4x1xf32>
    %11 = vector.extract_strided_slice %0 {offsets = [0, 1, 0], sizes = [2, 1, 256], strides = [1, 1, 1]} : vector<2x3x256xf32> to vector<2x1x256xf32>
    %12 = vector.shape_cast %10 : vector<4x1xf32> to vector<1x4x1xf32>
    %13 = vector.broadcast %12 : vector<1x4x1xf32> to vector<2x4x256xf32>
    %14 = vector.broadcast %11 : vector<2x1x256xf32> to vector<2x4x256xf32>
    %15 = arith.mulf %13, %14 : vector<2x4x256xf32>
    %16 = arith.addf %9, %15 : vector<2x4x256xf32>
    %17 = vector.extract_strided_slice %1 {offsets = [0, 18], sizes = [4, 1], strides = [1, 1]} : vector<4x27xf32> to vector<4x1xf32>
    %18 = vector.extract_strided_slice %0 {offsets = [0, 2, 0], sizes = [2, 1, 256], strides = [1, 1, 1]} : vector<2x3x256xf32> to vector<2x1x256xf32>
    %19 = vector.shape_cast %17 : vector<4x1xf32> to vector<1x4x1xf32>
    %20 = vector.broadcast %19 : vector<1x4x1xf32> to vector<2x4x256xf32>
    %21 = vector.broadcast %18 : vector<2x1x256xf32> to vector<2x4x256xf32>
    %22 = arith.mulf %20, %21 : vector<2x4x256xf32>
    %23 = arith.addf %16, %22 : vector<2x4x256xf32>
    %24 = vector.extract_strided_slice %0 {offsets = [0, 0, 1], sizes = [2, 3, 255], strides = [1, 1, 1]} : vector<2x3x256xf32> to vector<2x3x255xf32>
    %25 = vector.extract_strided_slice %0 {offsets = [0, 0, 0], sizes = [2, 3, 1], strides = [1, 1, 1]} : vector<2x3x256xf32> to vector<2x3x1xf32>
    %26 = tpu.concatenate %24, %25 in 2 : vector<2x3x255xf32>, vector<2x3x1xf32> -> vector<2x3x256xf32>
    %27 = vector.extract_strided_slice %1 {offsets = [0, 1], sizes = [4, 1], strides = [1, 1]} : vector<4x27xf32> to vector<4x1xf32>
    %28 = vector.extract_strided_slice %26 {offsets = [0, 0, 0], sizes = [2, 1, 256], strides = [1, 1, 1]} : vector<2x3x256xf32> to vector<2x1x256xf32>
    %29 = vector.shape_cast %27 : vector<4x1xf32> to vector<1x4x1xf32>
    %30 = vector.broadcast %29 : vector<1x4x1xf32> to vector<2x4x256xf32>
    %31 = vector.broadcast %28 : vector<2x1x256xf32> to vector<2x4x256xf32>
    %32 = arith.mulf %30, %31 : vector<2x4x256xf32>
    %33 = arith.addf %23, %32 : vector<2x4x256xf32>
    %34 = vector.extract_strided_slice %1 {offsets = [0, 10], sizes = [4, 1], strides = [1, 1]} : vector<4x27xf32> to vector<4x1xf32>
    %35 = vector.extract_strided_slice %26 {offsets = [0, 1, 0], sizes = [2, 1, 256], strides = [1, 1, 1]} : vector<2x3x256xf32> to vector<2x1x256xf32>
    %36 = vector.shape_cast %34 : vector<4x1xf32> to vector<1x4x1xf32>
    %37 = vector.broadcast %36 : vector<1x4x1xf32> to vector<2x4x256xf32>
    %38 = vector.broadcast %35 : vector<2x1x256xf32> to vector<2x4x256xf32>
    %39 = arith.mulf %37, %38 : vector<2x4x256xf32>
    %40 = arith.addf %33, %39 : vector<2x4x256xf32>
    %41 = vector.extract_strided_slice %1 {offsets = [0, 19], sizes = [4, 1], strides = [1, 1]} : vector<4x27xf32> to vector<4x1xf32>
    %42 = vector.extract_strided_slice %26 {offsets = [0, 2, 0], sizes = [2, 1, 256], strides = [1, 1, 1]} : vector<2x3x256xf32> to vector<2x1x256xf32>
    %43 = vector.shape_cast %41 : vector<4x1xf32> to vector<1x4x1xf32>
    %44 = vector.broadcast %43 : vector<1x4x1xf32> to vector<2x4x256xf32>
    %45 = vector.broadcast %42 : vector<2x1x256xf32> to vector<2x4x256xf32>
    %46 = arith.mulf %44, %45 : vector<2x4x256xf32>
    %47 = arith.addf %40, %46 : vector<2x4x256xf32>
    %48 = vector.extract_strided_slice %0 {offsets = [0, 0, 2], sizes = [2, 3, 254], strides = [1, 1, 1]} : vector<2x3x256xf32> to vector<2x3x254xf32>
    %49 = vector.extract_strided_slice %0 {offsets = [0, 0, 0], sizes = [2, 3, 2], strides = [1, 1, 1]} : vector<2x3x256xf32> to vector<2x3x2xf32>
    %50 = tpu.concatenate %48, %49 in 2 : vector<2x3x254xf32>, vector<2x3x2xf32> -> vector<2x3x256xf32>
    %51 = vector.extract_strided_slice %1 {offsets = [0, 2], sizes = [4, 1], strides = [1, 1]} : vector<4x27xf32> to vector<4x1xf32>
    %52 = vector.extract_strided_slice %50 {offsets = [0, 0, 0], sizes = [2, 1, 256], strides = [1, 1, 1]} : vector<2x3x256xf32> to vector<2x1x256xf32>
    %53 = vector.shape_cast %51 : vector<4x1xf32> to vector<1x4x1xf32>
    %54 = vector.broadcast %53 : vector<1x4x1xf32> to vector<2x4x256xf32>
    %55 = vector.broadcast %52 : vector<2x1x256xf32> to vector<2x4x256xf32>
    %56 = arith.mulf %54, %55 : vector<2x4x256xf32>
    %57 = arith.addf %47, %56 : vector<2x4x256xf32>
    %58 = vector.extract_strided_slice %1 {offsets = [0, 11], sizes = [4, 1], strides = [1, 1]} : vector<4x27xf32> to vector<4x1xf32>
    %59 = vector.extract_strided_slice %50 {offsets = [0, 1, 0], sizes = [2, 1, 256], strides = [1, 1, 1]} : vector<2x3x256xf32> to vector<2x1x256xf32>
    %60 = vector.shape_cast %58 : vector<4x1xf32> to vector<1x4x1xf32>
    %61 = vector.broadcast %60 : vector<1x4x1xf32> to vector<2x4x256xf32>
    %62 = vector.broadcast %59 : vector<2x1x256xf32> to vector<2x4x256xf32>
    %63 = arith.mulf %61, %62 : vector<2x4x256xf32>
    %64 = arith.addf %57, %63 : vector<2x4x256xf32>
    %65 = vector.extract_strided_slice %1 {offsets = [0, 20], sizes = [4, 1], strides = [1, 1]} : vector<4x27xf32> to vector<4x1xf32>
    %66 = vector.extract_strided_slice %50 {offsets = [0, 2, 0], sizes = [2, 1, 256], strides = [1, 1, 1]} : vector<2x3x256xf32> to vector<2x1x256xf32>
    %67 = vector.shape_cast %65 : vector<4x1xf32> to vector<1x4x1xf32>
    %68 = vector.broadcast %67 : vector<1x4x1xf32> to vector<2x4x256xf32>
    %69 = vector.broadcast %66 : vector<2x1x256xf32> to vector<2x4x256xf32>
    %70 = arith.mulf %68, %69 : vector<2x4x256xf32>
    %71 = arith.addf %64, %70 : vector<2x4x256xf32>
    %72 = vector.extract_strided_slice %0 {offsets = [0, 0, 16], sizes = [2, 3, 240], strides = [1, 1, 1]} : vector<2x3x256xf32> to vector<2x3x240xf32>
    %73 = vector.extract_strided_slice %0 {offsets = [0, 0, 0], sizes = [2, 3, 16], strides = [1, 1, 1]} : vector<2x3x256xf32> to vector<2x3x16xf32>
    %74 = tpu.concatenate %72, %73 in 2 : vector<2x3x240xf32>, vector<2x3x16xf32> -> vector<2x3x256xf32>
    %75 = vector.extract_strided_slice %1 {offsets = [0, 3], sizes = [4, 1], strides = [1, 1]} : vector<4x27xf32> to vector<4x1xf32>
    %76 = vector.extract_strided_slice %74 {offsets = [0, 0, 0], sizes = [2, 1, 256], strides = [1, 1, 1]} : vector<2x3x256xf32> to vector<2x1x256xf32>
    %77 = vector.shape_cast %75 : vector<4x1xf32> to vector<1x4x1xf32>
    %78 = vector.broadcast %77 : vector<1x4x1xf32> to vector<2x4x256xf32>
    %79 = vector.broadcast %76 : vector<2x1x256xf32> to vector<2x4x256xf32>
    %80 = arith.mulf %78, %79 : vector<2x4x256xf32>
    %81 = arith.addf %71, %80 : vector<2x4x256xf32>
    %82 = vector.extract_strided_slice %1 {offsets = [0, 12], sizes = [4, 1], strides = [1, 1]} : vector<4x27xf32> to vector<4x1xf32>
    %83 = vector.extract_strided_slice %74 {offsets = [0, 1, 0], sizes = [2, 1, 256], strides = [1, 1, 1]} : vector<2x3x256xf32> to vector<2x1x256xf32>
    %84 = vector.shape_cast %82 : vector<4x1xf32> to vector<1x4x1xf32>
    %85 = vector.broadcast %84 : vector<1x4x1xf32> to vector<2x4x256xf32>
    %86 = vector.broadcast %83 : vector<2x1x256xf32> to vector<2x4x256xf32>
    %87 = arith.mulf %85, %86 : vector<2x4x256xf32>
    %88 = arith.addf %81, %87 : vector<2x4x256xf32>
    %89 = vector.extract_strided_slice %1 {offsets = [0, 21], sizes = [4, 1], strides = [1, 1]} : vector<4x27xf32> to vector<4x1xf32>
    %90 = vector.extract_strided_slice %74 {offsets = [0, 2, 0], sizes = [2, 1, 256], strides = [1, 1, 1]} : vector<2x3x256xf32> to vector<2x1x256xf32>
    %91 = vector.shape_cast %89 : vector<4x1xf32> to vector<1x4x1xf32>
    %92 = vector.broadcast %91 : vector<1x4x1xf32> to vector<2x4x256xf32>
    %93 = vector.broadcast %90 : vector<2x1x256xf32> to vector<2x4x256xf32>
    %94 = arith.mulf %92, %93 : vector<2x4x256xf32>
    %95 = arith.addf %88, %94 : vector<2x4x256xf32>
    %96 = vector.extract_strided_slice %0 {offsets = [0, 0, 17], sizes = [2, 3, 239], strides = [1, 1, 1]} : vector<2x3x256xf32> to vector<2x3x239xf32>
    %97 = vector.extract_strided_slice %0 {offsets = [0, 0, 0], sizes = [2, 3, 17], strides = [1, 1, 1]} : vector<2x3x256xf32> to vector<2x3x17xf32>
    %98 = tpu.concatenate %96, %97 in 2 : vector<2x3x239xf32>, vector<2x3x17xf32> -> vector<2x3x256xf32>
    %99 = vector.extract_strided_slice %1 {offsets = [0, 4], sizes = [4, 1], strides = [1, 1]} : vector<4x27xf32> to vector<4x1xf32>
    %100 = vector.extract_strided_slice %98 {offsets = [0, 0, 0], sizes = [2, 1, 256], strides = [1, 1, 1]} : vector<2x3x256xf32> to vector<2x1x256xf32>
    %101 = vector.shape_cast %99 : vector<4x1xf32> to vector<1x4x1xf32>
    %102 = vector.broadcast %101 : vector<1x4x1xf32> to vector<2x4x256xf32>
    %103 = vector.broadcast %100 : vector<2x1x256xf32> to vector<2x4x256xf32>
    %104 = arith.mulf %102, %103 : vector<2x4x256xf32>
    %105 = arith.addf %95, %104 : vector<2x4x256xf32>
    %106 = vector.extract_strided_slice %1 {offsets = [0, 13], sizes = [4, 1], strides = [1, 1]} : vector<4x27xf32> to vector<4x1xf32>
    %107 = vector.extract_strided_slice %98 {offsets = [0, 1, 0], sizes = [2, 1, 256], strides = [1, 1, 1]} : vector<2x3x256xf32> to vector<2x1x256xf32>
    %108 = vector.shape_cast %106 : vector<4x1xf32> to vector<1x4x1xf32>
    %109 = vector.broadcast %108 : vector<1x4x1xf32> to vector<2x4x256xf32>
    %110 = vector.broadcast %107 : vector<2x1x256xf32> to vector<2x4x256xf32>
    %111 = arith.mulf %109, %110 : vector<2x4x256xf32>
    %112 = arith.addf %105, %111 : vector<2x4x256xf32>
    %113 = vector.extract_strided_slice %1 {offsets = [0, 22], sizes = [4, 1], strides = [1, 1]} : vector<4x27xf32> to vector<4x1xf32>
    %114 = vector.extract_strided_slice %98 {offsets = [0, 2, 0], sizes = [2, 1, 256], strides = [1, 1, 1]} : vector<2x3x256xf32> to vector<2x1x256xf32>
    %115 = vector.shape_cast %113 : vector<4x1xf32> to vector<1x4x1xf32>
    %116 = vector.broadcast %115 : vector<1x4x1xf32> to vector<2x4x256xf32>
    %117 = vector.broadcast %114 : vector<2x1x256xf32> to vector<2x4x256xf32>
    %118 = arith.mulf %116, %117 : vector<2x4x256xf32>
    %119 = arith.addf %112, %118 : vector<2x4x256xf32>
    %120 = vector.extract_strided_slice %0 {offsets = [0, 0, 18], sizes = [2, 3, 238], strides = [1, 1, 1]} : vector<2x3x256xf32> to vector<2x3x238xf32>
    %121 = vector.extract_strided_slice %0 {offsets = [0, 0, 0], sizes = [2, 3, 18], strides = [1, 1, 1]} : vector<2x3x256xf32> to vector<2x3x18xf32>
    %122 = tpu.concatenate %120, %121 in 2 : vector<2x3x238xf32>, vector<2x3x18xf32> -> vector<2x3x256xf32>
    %123 = vector.extract_strided_slice %1 {offsets = [0, 5], sizes = [4, 1], strides = [1, 1]} : vector<4x27xf32> to vector<4x1xf32>
    %124 = vector.extract_strided_slice %122 {offsets = [0, 0, 0], sizes = [2, 1, 256], strides = [1, 1, 1]} : vector<2x3x256xf32> to vector<2x1x256xf32>
    %125 = vector.shape_cast %123 : vector<4x1xf32> to vector<1x4x1xf32>
    %126 = vector.broadcast %125 : vector<1x4x1xf32> to vector<2x4x256xf32>
    %127 = vector.broadcast %124 : vector<2x1x256xf32> to vector<2x4x256xf32>
    %128 = arith.mulf %126, %127 : vector<2x4x256xf32>
    %129 = arith.addf %119, %128 : vector<2x4x256xf32>
    %130 = vector.extract_strided_slice %1 {offsets = [0, 14], sizes = [4, 1], strides = [1, 1]} : vector<4x27xf32> to vector<4x1xf32>
    %131 = vector.extract_strided_slice %122 {offsets = [0, 1, 0], sizes = [2, 1, 256], strides = [1, 1, 1]} : vector<2x3x256xf32> to vector<2x1x256xf32>
    %132 = vector.shape_cast %130 : vector<4x1xf32> to vector<1x4x1xf32>
    %133 = vector.broadcast %132 : vector<1x4x1xf32> to vector<2x4x256xf32>
    %134 = vector.broadcast %131 : vector<2x1x256xf32> to vector<2x4x256xf32>
    %135 = arith.mulf %133, %134 : vector<2x4x256xf32>
    %136 = arith.addf %129, %135 : vector<2x4x256xf32>
    %137 = vector.extract_strided_slice %1 {offsets = [0, 23], sizes = [4, 1], strides = [1, 1]} : vector<4x27xf32> to vector<4x1xf32>
    %138 = vector.extract_strided_slice %122 {offsets = [0, 2, 0], sizes = [2, 1, 256], strides = [1, 1, 1]} : vector<2x3x256xf32> to vector<2x1x256xf32>
    %139 = vector.shape_cast %137 : vector<4x1xf32> to vector<1x4x1xf32>
    %140 = vector.broadcast %139 : vector<1x4x1xf32> to vector<2x4x256xf32>
    %141 = vector.broadcast %138 : vector<2x1x256xf32> to vector<2x4x256xf32>
    %142 = arith.mulf %140, %141 : vector<2x4x256xf32>
    %143 = arith.addf %136, %142 : vector<2x4x256xf32>
    %144 = vector.extract_strided_slice %0 {offsets = [0, 0, 32], sizes = [2, 3, 224], strides = [1, 1, 1]} : vector<2x3x256xf32> to vector<2x3x224xf32>
    %145 = vector.extract_strided_slice %0 {offsets = [0, 0, 0], sizes = [2, 3, 32], strides = [1, 1, 1]} : vector<2x3x256xf32> to vector<2x3x32xf32>
    %146 = tpu.concatenate %144, %145 in 2 : vector<2x3x224xf32>, vector<2x3x32xf32> -> vector<2x3x256xf32>
    %147 = vector.extract_strided_slice %1 {offsets = [0, 6], sizes = [4, 1], strides = [1, 1]} : vector<4x27xf32> to vector<4x1xf32>
    %148 = vector.extract_strided_slice %146 {offsets = [0, 0, 0], sizes = [2, 1, 256], strides = [1, 1, 1]} : vector<2x3x256xf32> to vector<2x1x256xf32>
    %149 = vector.shape_cast %147 : vector<4x1xf32> to vector<1x4x1xf32>
    %150 = vector.broadcast %149 : vector<1x4x1xf32> to vector<2x4x256xf32>
    %151 = vector.broadcast %148 : vector<2x1x256xf32> to vector<2x4x256xf32>
    %152 = arith.mulf %150, %151 : vector<2x4x256xf32>
    %153 = arith.addf %143, %152 : vector<2x4x256xf32>
    %154 = vector.extract_strided_slice %1 {offsets = [0, 15], sizes = [4, 1], strides = [1, 1]} : vector<4x27xf32> to vector<4x1xf32>
    %155 = vector.extract_strided_slice %146 {offsets = [0, 1, 0], sizes = [2, 1, 256], strides = [1, 1, 1]} : vector<2x3x256xf32> to vector<2x1x256xf32>
    %156 = vector.shape_cast %154 : vector<4x1xf32> to vector<1x4x1xf32>
    %157 = vector.broadcast %156 : vector<1x4x1xf32> to vector<2x4x256xf32>
    %158 = vector.broadcast %155 : vector<2x1x256xf32> to vector<2x4x256xf32>
    %159 = arith.mulf %157, %158 : vector<2x4x256xf32>
    %160 = arith.addf %153, %159 : vector<2x4x256xf32>
    %161 = vector.extract_strided_slice %1 {offsets = [0, 24], sizes = [4, 1], strides = [1, 1]} : vector<4x27xf32> to vector<4x1xf32>
    %162 = vector.extract_strided_slice %146 {offsets = [0, 2, 0], sizes = [2, 1, 256], strides = [1, 1, 1]} : vector<2x3x256xf32> to vector<2x1x256xf32>
    %163 = vector.shape_cast %161 : vector<4x1xf32> to vector<1x4x1xf32>
    %164 = vector.broadcast %163 : vector<1x4x1xf32> to vector<2x4x256xf32>
    %165 = vector.broadcast %162 : vector<2x1x256xf32> to vector<2x4x256xf32>
    %166 = arith.mulf %164, %165 : vector<2x4x256xf32>
    %167 = arith.addf %160, %166 : vector<2x4x256xf32>
    %168 = vector.extract_strided_slice %0 {offsets = [0, 0, 33], sizes = [2, 3, 223], strides = [1, 1, 1]} : vector<2x3x256xf32> to vector<2x3x223xf32>
    %169 = vector.extract_strided_slice %0 {offsets = [0, 0, 0], sizes = [2, 3, 33], strides = [1, 1, 1]} : vector<2x3x256xf32> to vector<2x3x33xf32>
    %170 = tpu.concatenate %168, %169 in 2 : vector<2x3x223xf32>, vector<2x3x33xf32> -> vector<2x3x256xf32>
    %171 = vector.extract_strided_slice %1 {offsets = [0, 7], sizes = [4, 1], strides = [1, 1]} : vector<4x27xf32> to vector<4x1xf32>
    %172 = vector.extract_strided_slice %170 {offsets = [0, 0, 0], sizes = [2, 1, 256], strides = [1, 1, 1]} : vector<2x3x256xf32> to vector<2x1x256xf32>
    %173 = vector.shape_cast %171 : vector<4x1xf32> to vector<1x4x1xf32>
    %174 = vector.broadcast %173 : vector<1x4x1xf32> to vector<2x4x256xf32>
    %175 = vector.broadcast %172 : vector<2x1x256xf32> to vector<2x4x256xf32>
    %176 = arith.mulf %174, %175 : vector<2x4x256xf32>
    %177 = arith.addf %167, %176 : vector<2x4x256xf32>
    %178 = vector.extract_strided_slice %1 {offsets = [0, 16], sizes = [4, 1], strides = [1, 1]} : vector<4x27xf32> to vector<4x1xf32>
    %179 = vector.extract_strided_slice %170 {offsets = [0, 1, 0], sizes = [2, 1, 256], strides = [1, 1, 1]} : vector<2x3x256xf32> to vector<2x1x256xf32>
    %180 = vector.shape_cast %178 : vector<4x1xf32> to vector<1x4x1xf32>
    %181 = vector.broadcast %180 : vector<1x4x1xf32> to vector<2x4x256xf32>
    %182 = vector.broadcast %179 : vector<2x1x256xf32> to vector<2x4x256xf32>
    %183 = arith.mulf %181, %182 : vector<2x4x256xf32>
    %184 = arith.addf %177, %183 : vector<2x4x256xf32>
    %185 = vector.extract_strided_slice %1 {offsets = [0, 25], sizes = [4, 1], strides = [1, 1]} : vector<4x27xf32> to vector<4x1xf32>
    %186 = vector.extract_strided_slice %170 {offsets = [0, 2, 0], sizes = [2, 1, 256], strides = [1, 1, 1]} : vector<2x3x256xf32> to vector<2x1x256xf32>
    %187 = vector.shape_cast %185 : vector<4x1xf32> to vector<1x4x1xf32>
    %188 = vector.broadcast %187 : vector<1x4x1xf32> to vector<2x4x256xf32>
    %189 = vector.broadcast %186 : vector<2x1x256xf32> to vector<2x4x256xf32>
    %190 = arith.mulf %188, %189 : vector<2x4x256xf32>
    %191 = arith.addf %184, %190 : vector<2x4x256xf32>
    %192 = vector.extract_strided_slice %0 {offsets = [0, 0, 34], sizes = [2, 3, 222], strides = [1, 1, 1]} : vector<2x3x256xf32> to vector<2x3x222xf32>
    %193 = vector.extract_strided_slice %0 {offsets = [0, 0, 0], sizes = [2, 3, 34], strides = [1, 1, 1]} : vector<2x3x256xf32> to vector<2x3x34xf32>
    %194 = tpu.concatenate %192, %193 in 2 : vector<2x3x222xf32>, vector<2x3x34xf32> -> vector<2x3x256xf32>
    %195 = vector.extract_strided_slice %1 {offsets = [0, 8], sizes = [4, 1], strides = [1, 1]} : vector<4x27xf32> to vector<4x1xf32>
    %196 = vector.extract_strided_slice %194 {offsets = [0, 0, 0], sizes = [2, 1, 256], strides = [1, 1, 1]} : vector<2x3x256xf32> to vector<2x1x256xf32>
    %197 = vector.shape_cast %195 : vector<4x1xf32> to vector<1x4x1xf32>
    %198 = vector.broadcast %197 : vector<1x4x1xf32> to vector<2x4x256xf32>
    %199 = vector.broadcast %196 : vector<2x1x256xf32> to vector<2x4x256xf32>
    %200 = arith.mulf %198, %199 : vector<2x4x256xf32>
    %201 = arith.addf %191, %200 : vector<2x4x256xf32>
    %202 = vector.extract_strided_slice %1 {offsets = [0, 17], sizes = [4, 1], strides = [1, 1]} : vector<4x27xf32> to vector<4x1xf32>
    %203 = vector.extract_strided_slice %194 {offsets = [0, 1, 0], sizes = [2, 1, 256], strides = [1, 1, 1]} : vector<2x3x256xf32> to vector<2x1x256xf32>
    %204 = vector.shape_cast %202 : vector<4x1xf32> to vector<1x4x1xf32>
    %205 = vector.broadcast %204 : vector<1x4x1xf32> to vector<2x4x256xf32>
    %206 = vector.broadcast %203 : vector<2x1x256xf32> to vector<2x4x256xf32>
    %207 = arith.mulf %205, %206 : vector<2x4x256xf32>
    %208 = arith.addf %201, %207 : vector<2x4x256xf32>
    %209 = vector.extract_strided_slice %1 {offsets = [0, 26], sizes = [4, 1], strides = [1, 1]} : vector<4x27xf32> to vector<4x1xf32>
    %210 = vector.extract_strided_slice %194 {offsets = [0, 2, 0], sizes = [2, 1, 256], strides = [1, 1, 1]} : vector<2x3x256xf32> to vector<2x1x256xf32>
    %211 = vector.shape_cast %209 : vector<4x1xf32> to vector<1x4x1xf32>
    %212 = vector.broadcast %211 : vector<1x4x1xf32> to vector<2x4x256xf32>
    %213 = vector.broadcast %210 : vector<2x1x256xf32> to vector<2x4x256xf32>
    %214 = arith.mulf %212, %213 : vector<2x4x256xf32>
    %215 = arith.addf %208, %214 : vector<2x4x256xf32>
    %c0_4 = arith.constant 0 : index
    %c0_5 = arith.constant 0 : index
    %216 = vector.load %arg2[%c0_4, %c0_5] : memref<4x1xf32, #tpu.memory_space<vmem>>, vector<4x1xf32>
    %217 = vector.shape_cast %216 : vector<4x1xf32> to vector<1x4x1xf32>
    %218 = vector.broadcast %217 : vector<1x4x1xf32> to vector<2x4x256xf32>
    %219 = arith.addf %215, %218 : vector<2x4x256xf32>
    %220 = math.tanh %219 : vector<2x4x256xf32>
    %c0_6 = arith.constant 0 : index
    %c0_7 = arith.constant 0 : index
    %221 = vector.load %arg3[%c0_6, %c0_7] : memref<5x36xf32, #tpu.memory_space<vmem>>, vector<5x36xf32>
    %cst_8 = arith.constant 0.000000e+00 : f32
    %222 = vector.broadcast %cst_8 : f32 to vector<2x5x256xf32>
    %223 = vector.extract_strided_slice %221 {offsets = [0, 0], sizes = [5, 1], strides = [1, 1]} : vector<5x36xf32> to vector<5x1xf32>
    %224 = vector.extract_strided_slice %220 {offsets = [0, 0, 0], sizes = [2, 1, 256], strides = [1, 1, 1]} : vector<2x4x256xf32> to vector<2x1x256xf32>
    %225 = vector.shape_cast %223 : vector<5x1xf32> to vector<1x5x1xf32>
    %226 = vector.broadcast %225 : vector<1x5x1xf32> to vector<2x5x256xf32>
    %227 = vector.broadcast %224 : vector<2x1x256xf32> to vector<2x5x256xf32>
    %228 = arith.mulf %226, %227 : vector<2x5x256xf32>
    %229 = arith.addf %222, %228 : vector<2x5x256xf32>
    %230 = vector.extract_strided_slice %221 {offsets = [0, 9], sizes = [5, 1], strides = [1, 1]} : vector<5x36xf32> to vector<5x1xf32>
    %231 = vector.extract_strided_slice %220 {offsets = [0, 1, 0], sizes = [2, 1, 256], strides = [1, 1, 1]} : vector<2x4x256xf32> to vector<2x1x256xf32>
    %232 = vector.shape_cast %230 : vector<5x1xf32> to vector<1x5x1xf32>
    %233 = vector.broadcast %232 : vector<1x5x1xf32> to vector<2x5x256xf32>
    %234 = vector.broadcast %231 : vector<2x1x256xf32> to vector<2x5x256xf32>
    %235 = arith.mulf %233, %234 : vector<2x5x256xf32>
    %236 = arith.addf %229, %235 : vector<2x5x256xf32>
    %237 = vector.extract_strided_slice %221 {offsets = [0, 18], sizes = [5, 1], strides = [1, 1]} : vector<5x36xf32> to vector<5x1xf32>
    %238 = vector.extract_strided_slice %220 {offsets = [0, 2, 0], sizes = [2, 1, 256], strides = [1, 1, 1]} : vector<2x4x256xf32> to vector<2x1x256xf32>
    %239 = vector.shape_cast %237 : vector<5x1xf32> to vector<1x5x1xf32>
    %240 = vector.broadcast %239 : vector<1x5x1xf32> to vector<2x5x256xf32>
    %241 = vector.broadcast %238 : vector<2x1x256xf32> to vector<2x5x256xf32>
    %242 = arith.mulf %240, %241 : vector<2x5x256xf32>
    %243 = arith.addf %236, %242 : vector<2x5x256xf32>
    %244 = vector.extract_strided_slice %221 {offsets = [0, 27], sizes = [5, 1], strides = [1, 1]} : vector<5x36xf32> to vector<5x1xf32>
    %245 = vector.extract_strided_slice %220 {offsets = [0, 3, 0], sizes = [2, 1, 256], strides = [1, 1, 1]} : vector<2x4x256xf32> to vector<2x1x256xf32>
    %246 = vector.shape_cast %244 : vector<5x1xf32> to vector<1x5x1xf32>
    %247 = vector.broadcast %246 : vector<1x5x1xf32> to vector<2x5x256xf32>
    %248 = vector.broadcast %245 : vector<2x1x256xf32> to vector<2x5x256xf32>
    %249 = arith.mulf %247, %248 : vector<2x5x256xf32>
    %250 = arith.addf %243, %249 : vector<2x5x256xf32>
    %251 = vector.extract_strided_slice %220 {offsets = [0, 0, 1], sizes = [2, 4, 255], strides = [1, 1, 1]} : vector<2x4x256xf32> to vector<2x4x255xf32>
    %252 = vector.extract_strided_slice %220 {offsets = [0, 0, 0], sizes = [2, 4, 1], strides = [1, 1, 1]} : vector<2x4x256xf32> to vector<2x4x1xf32>
    %253 = tpu.concatenate %251, %252 in 2 : vector<2x4x255xf32>, vector<2x4x1xf32> -> vector<2x4x256xf32>
    %254 = vector.extract_strided_slice %221 {offsets = [0, 1], sizes = [5, 1], strides = [1, 1]} : vector<5x36xf32> to vector<5x1xf32>
    %255 = vector.extract_strided_slice %253 {offsets = [0, 0, 0], sizes = [2, 1, 256], strides = [1, 1, 1]} : vector<2x4x256xf32> to vector<2x1x256xf32>
    %256 = vector.shape_cast %254 : vector<5x1xf32> to vector<1x5x1xf32>
    %257 = vector.broadcast %256 : vector<1x5x1xf32> to vector<2x5x256xf32>
    %258 = vector.broadcast %255 : vector<2x1x256xf32> to vector<2x5x256xf32>
    %259 = arith.mulf %257, %258 : vector<2x5x256xf32>
    %260 = arith.addf %250, %259 : vector<2x5x256xf32>
    %261 = vector.extract_strided_slice %221 {offsets = [0, 10], sizes = [5, 1], strides = [1, 1]} : vector<5x36xf32> to vector<5x1xf32>
    %262 = vector.extract_strided_slice %253 {offsets = [0, 1, 0], sizes = [2, 1, 256], strides = [1, 1, 1]} : vector<2x4x256xf32> to vector<2x1x256xf32>
    %263 = vector.shape_cast %261 : vector<5x1xf32> to vector<1x5x1xf32>
    %264 = vector.broadcast %263 : vector<1x5x1xf32> to vector<2x5x256xf32>
    %265 = vector.broadcast %262 : vector<2x1x256xf32> to vector<2x5x256xf32>
    %266 = arith.mulf %264, %265 : vector<2x5x256xf32>
    %267 = arith.addf %260, %266 : vector<2x5x256xf32>
    %268 = vector.extract_strided_slice %221 {offsets = [0, 19], sizes = [5, 1], strides = [1, 1]} : vector<5x36xf32> to vector<5x1xf32>
    %269 = vector.extract_strided_slice %253 {offsets = [0, 2, 0], sizes = [2, 1, 256], strides = [1, 1, 1]} : vector<2x4x256xf32> to vector<2x1x256xf32>
    %270 = vector.shape_cast %268 : vector<5x1xf32> to vector<1x5x1xf32>
    %271 = vector.broadcast %270 : vector<1x5x1xf32> to vector<2x5x256xf32>
    %272 = vector.broadcast %269 : vector<2x1x256xf32> to vector<2x5x256xf32>
    %273 = arith.mulf %271, %272 : vector<2x5x256xf32>
    %274 = arith.addf %267, %273 : vector<2x5x256xf32>
    %275 = vector.extract_strided_slice %221 {offsets = [0, 28], sizes = [5, 1], strides = [1, 1]} : vector<5x36xf32> to vector<5x1xf32>
    %276 = vector.extract_strided_slice %253 {offsets = [0, 3, 0], sizes = [2, 1, 256], strides = [1, 1, 1]} : vector<2x4x256xf32> to vector<2x1x256xf32>
    %277 = vector.shape_cast %275 : vector<5x1xf32> to vector<1x5x1xf32>
    %278 = vector.broadcast %277 : vector<1x5x1xf32> to vector<2x5x256xf32>
    %279 = vector.broadcast %276 : vector<2x1x256xf32> to vector<2x5x256xf32>
    %280 = arith.mulf %278, %279 : vector<2x5x256xf32>
    %281 = arith.addf %274, %280 : vector<2x5x256xf32>
    %282 = vector.extract_strided_slice %220 {offsets = [0, 0, 2], sizes = [2, 4, 254], strides = [1, 1, 1]} : vector<2x4x256xf32> to vector<2x4x254xf32>
    %283 = vector.extract_strided_slice %220 {offsets = [0, 0, 0], sizes = [2, 4, 2], strides = [1, 1, 1]} : vector<2x4x256xf32> to vector<2x4x2xf32>
    %284 = tpu.concatenate %282, %283 in 2 : vector<2x4x254xf32>, vector<2x4x2xf32> -> vector<2x4x256xf32>
    %285 = vector.extract_strided_slice %221 {offsets = [0, 2], sizes = [5, 1], strides = [1, 1]} : vector<5x36xf32> to vector<5x1xf32>
    %286 = vector.extract_strided_slice %284 {offsets = [0, 0, 0], sizes = [2, 1, 256], strides = [1, 1, 1]} : vector<2x4x256xf32> to vector<2x1x256xf32>
    %287 = vector.shape_cast %285 : vector<5x1xf32> to vector<1x5x1xf32>
    %288 = vector.broadcast %287 : vector<1x5x1xf32> to vector<2x5x256xf32>
    %289 = vector.broadcast %286 : vector<2x1x256xf32> to vector<2x5x256xf32>
    %290 = arith.mulf %288, %289 : vector<2x5x256xf32>
    %291 = arith.addf %281, %290 : vector<2x5x256xf32>
    %292 = vector.extract_strided_slice %221 {offsets = [0, 11], sizes = [5, 1], strides = [1, 1]} : vector<5x36xf32> to vector<5x1xf32>
    %293 = vector.extract_strided_slice %284 {offsets = [0, 1, 0], sizes = [2, 1, 256], strides = [1, 1, 1]} : vector<2x4x256xf32> to vector<2x1x256xf32>
    %294 = vector.shape_cast %292 : vector<5x1xf32> to vector<1x5x1xf32>
    %295 = vector.broadcast %294 : vector<1x5x1xf32> to vector<2x5x256xf32>
    %296 = vector.broadcast %293 : vector<2x1x256xf32> to vector<2x5x256xf32>
    %297 = arith.mulf %295, %296 : vector<2x5x256xf32>
    %298 = arith.addf %291, %297 : vector<2x5x256xf32>
    %299 = vector.extract_strided_slice %221 {offsets = [0, 20], sizes = [5, 1], strides = [1, 1]} : vector<5x36xf32> to vector<5x1xf32>
    %300 = vector.extract_strided_slice %284 {offsets = [0, 2, 0], sizes = [2, 1, 256], strides = [1, 1, 1]} : vector<2x4x256xf32> to vector<2x1x256xf32>
    %301 = vector.shape_cast %299 : vector<5x1xf32> to vector<1x5x1xf32>
    %302 = vector.broadcast %301 : vector<1x5x1xf32> to vector<2x5x256xf32>
    %303 = vector.broadcast %300 : vector<2x1x256xf32> to vector<2x5x256xf32>
    %304 = arith.mulf %302, %303 : vector<2x5x256xf32>
    %305 = arith.addf %298, %304 : vector<2x5x256xf32>
    %306 = vector.extract_strided_slice %221 {offsets = [0, 29], sizes = [5, 1], strides = [1, 1]} : vector<5x36xf32> to vector<5x1xf32>
    %307 = vector.extract_strided_slice %284 {offsets = [0, 3, 0], sizes = [2, 1, 256], strides = [1, 1, 1]} : vector<2x4x256xf32> to vector<2x1x256xf32>
    %308 = vector.shape_cast %306 : vector<5x1xf32> to vector<1x5x1xf32>
    %309 = vector.broadcast %308 : vector<1x5x1xf32> to vector<2x5x256xf32>
    %310 = vector.broadcast %307 : vector<2x1x256xf32> to vector<2x5x256xf32>
    %311 = arith.mulf %309, %310 : vector<2x5x256xf32>
    %312 = arith.addf %305, %311 : vector<2x5x256xf32>
    %313 = vector.extract_strided_slice %220 {offsets = [0, 0, 16], sizes = [2, 4, 240], strides = [1, 1, 1]} : vector<2x4x256xf32> to vector<2x4x240xf32>
    %314 = vector.extract_strided_slice %220 {offsets = [0, 0, 0], sizes = [2, 4, 16], strides = [1, 1, 1]} : vector<2x4x256xf32> to vector<2x4x16xf32>
    %315 = tpu.concatenate %313, %314 in 2 : vector<2x4x240xf32>, vector<2x4x16xf32> -> vector<2x4x256xf32>
    %316 = vector.extract_strided_slice %221 {offsets = [0, 3], sizes = [5, 1], strides = [1, 1]} : vector<5x36xf32> to vector<5x1xf32>
    %317 = vector.extract_strided_slice %315 {offsets = [0, 0, 0], sizes = [2, 1, 256], strides = [1, 1, 1]} : vector<2x4x256xf32> to vector<2x1x256xf32>
    %318 = vector.shape_cast %316 : vector<5x1xf32> to vector<1x5x1xf32>
    %319 = vector.broadcast %318 : vector<1x5x1xf32> to vector<2x5x256xf32>
    %320 = vector.broadcast %317 : vector<2x1x256xf32> to vector<2x5x256xf32>
    %321 = arith.mulf %319, %320 : vector<2x5x256xf32>
    %322 = arith.addf %312, %321 : vector<2x5x256xf32>
    %323 = vector.extract_strided_slice %221 {offsets = [0, 12], sizes = [5, 1], strides = [1, 1]} : vector<5x36xf32> to vector<5x1xf32>
    %324 = vector.extract_strided_slice %315 {offsets = [0, 1, 0], sizes = [2, 1, 256], strides = [1, 1, 1]} : vector<2x4x256xf32> to vector<2x1x256xf32>
    %325 = vector.shape_cast %323 : vector<5x1xf32> to vector<1x5x1xf32>
    %326 = vector.broadcast %325 : vector<1x5x1xf32> to vector<2x5x256xf32>
    %327 = vector.broadcast %324 : vector<2x1x256xf32> to vector<2x5x256xf32>
    %328 = arith.mulf %326, %327 : vector<2x5x256xf32>
    %329 = arith.addf %322, %328 : vector<2x5x256xf32>
    %330 = vector.extract_strided_slice %221 {offsets = [0, 21], sizes = [5, 1], strides = [1, 1]} : vector<5x36xf32> to vector<5x1xf32>
    %331 = vector.extract_strided_slice %315 {offsets = [0, 2, 0], sizes = [2, 1, 256], strides = [1, 1, 1]} : vector<2x4x256xf32> to vector<2x1x256xf32>
    %332 = vector.shape_cast %330 : vector<5x1xf32> to vector<1x5x1xf32>
    %333 = vector.broadcast %332 : vector<1x5x1xf32> to vector<2x5x256xf32>
    %334 = vector.broadcast %331 : vector<2x1x256xf32> to vector<2x5x256xf32>
    %335 = arith.mulf %333, %334 : vector<2x5x256xf32>
    %336 = arith.addf %329, %335 : vector<2x5x256xf32>
    %337 = vector.extract_strided_slice %221 {offsets = [0, 30], sizes = [5, 1], strides = [1, 1]} : vector<5x36xf32> to vector<5x1xf32>
    %338 = vector.extract_strided_slice %315 {offsets = [0, 3, 0], sizes = [2, 1, 256], strides = [1, 1, 1]} : vector<2x4x256xf32> to vector<2x1x256xf32>
    %339 = vector.shape_cast %337 : vector<5x1xf32> to vector<1x5x1xf32>
    %340 = vector.broadcast %339 : vector<1x5x1xf32> to vector<2x5x256xf32>
    %341 = vector.broadcast %338 : vector<2x1x256xf32> to vector<2x5x256xf32>
    %342 = arith.mulf %340, %341 : vector<2x5x256xf32>
    %343 = arith.addf %336, %342 : vector<2x5x256xf32>
    %344 = vector.extract_strided_slice %220 {offsets = [0, 0, 17], sizes = [2, 4, 239], strides = [1, 1, 1]} : vector<2x4x256xf32> to vector<2x4x239xf32>
    %345 = vector.extract_strided_slice %220 {offsets = [0, 0, 0], sizes = [2, 4, 17], strides = [1, 1, 1]} : vector<2x4x256xf32> to vector<2x4x17xf32>
    %346 = tpu.concatenate %344, %345 in 2 : vector<2x4x239xf32>, vector<2x4x17xf32> -> vector<2x4x256xf32>
    %347 = vector.extract_strided_slice %221 {offsets = [0, 4], sizes = [5, 1], strides = [1, 1]} : vector<5x36xf32> to vector<5x1xf32>
    %348 = vector.extract_strided_slice %346 {offsets = [0, 0, 0], sizes = [2, 1, 256], strides = [1, 1, 1]} : vector<2x4x256xf32> to vector<2x1x256xf32>
    %349 = vector.shape_cast %347 : vector<5x1xf32> to vector<1x5x1xf32>
    %350 = vector.broadcast %349 : vector<1x5x1xf32> to vector<2x5x256xf32>
    %351 = vector.broadcast %348 : vector<2x1x256xf32> to vector<2x5x256xf32>
    %352 = arith.mulf %350, %351 : vector<2x5x256xf32>
    %353 = arith.addf %343, %352 : vector<2x5x256xf32>
    %354 = vector.extract_strided_slice %221 {offsets = [0, 13], sizes = [5, 1], strides = [1, 1]} : vector<5x36xf32> to vector<5x1xf32>
    %355 = vector.extract_strided_slice %346 {offsets = [0, 1, 0], sizes = [2, 1, 256], strides = [1, 1, 1]} : vector<2x4x256xf32> to vector<2x1x256xf32>
    %356 = vector.shape_cast %354 : vector<5x1xf32> to vector<1x5x1xf32>
    %357 = vector.broadcast %356 : vector<1x5x1xf32> to vector<2x5x256xf32>
    %358 = vector.broadcast %355 : vector<2x1x256xf32> to vector<2x5x256xf32>
    %359 = arith.mulf %357, %358 : vector<2x5x256xf32>
    %360 = arith.addf %353, %359 : vector<2x5x256xf32>
    %361 = vector.extract_strided_slice %221 {offsets = [0, 22], sizes = [5, 1], strides = [1, 1]} : vector<5x36xf32> to vector<5x1xf32>
    %362 = vector.extract_strided_slice %346 {offsets = [0, 2, 0], sizes = [2, 1, 256], strides = [1, 1, 1]} : vector<2x4x256xf32> to vector<2x1x256xf32>
    %363 = vector.shape_cast %361 : vector<5x1xf32> to vector<1x5x1xf32>
    %364 = vector.broadcast %363 : vector<1x5x1xf32> to vector<2x5x256xf32>
    %365 = vector.broadcast %362 : vector<2x1x256xf32> to vector<2x5x256xf32>
    %366 = arith.mulf %364, %365 : vector<2x5x256xf32>
    %367 = arith.addf %360, %366 : vector<2x5x256xf32>
    %368 = vector.extract_strided_slice %221 {offsets = [0, 31], sizes = [5, 1], strides = [1, 1]} : vector<5x36xf32> to vector<5x1xf32>
    %369 = vector.extract_strided_slice %346 {offsets = [0, 3, 0], sizes = [2, 1, 256], strides = [1, 1, 1]} : vector<2x4x256xf32> to vector<2x1x256xf32>
    %370 = vector.shape_cast %368 : vector<5x1xf32> to vector<1x5x1xf32>
    %371 = vector.broadcast %370 : vector<1x5x1xf32> to vector<2x5x256xf32>
    %372 = vector.broadcast %369 : vector<2x1x256xf32> to vector<2x5x256xf32>
    %373 = arith.mulf %371, %372 : vector<2x5x256xf32>
    %374 = arith.addf %367, %373 : vector<2x5x256xf32>
    %375 = vector.extract_strided_slice %220 {offsets = [0, 0, 18], sizes = [2, 4, 238], strides = [1, 1, 1]} : vector<2x4x256xf32> to vector<2x4x238xf32>
    %376 = vector.extract_strided_slice %220 {offsets = [0, 0, 0], sizes = [2, 4, 18], strides = [1, 1, 1]} : vector<2x4x256xf32> to vector<2x4x18xf32>
    %377 = tpu.concatenate %375, %376 in 2 : vector<2x4x238xf32>, vector<2x4x18xf32> -> vector<2x4x256xf32>
    %378 = vector.extract_strided_slice %221 {offsets = [0, 5], sizes = [5, 1], strides = [1, 1]} : vector<5x36xf32> to vector<5x1xf32>
    %379 = vector.extract_strided_slice %377 {offsets = [0, 0, 0], sizes = [2, 1, 256], strides = [1, 1, 1]} : vector<2x4x256xf32> to vector<2x1x256xf32>
    %380 = vector.shape_cast %378 : vector<5x1xf32> to vector<1x5x1xf32>
    %381 = vector.broadcast %380 : vector<1x5x1xf32> to vector<2x5x256xf32>
    %382 = vector.broadcast %379 : vector<2x1x256xf32> to vector<2x5x256xf32>
    %383 = arith.mulf %381, %382 : vector<2x5x256xf32>
    %384 = arith.addf %374, %383 : vector<2x5x256xf32>
    %385 = vector.extract_strided_slice %221 {offsets = [0, 14], sizes = [5, 1], strides = [1, 1]} : vector<5x36xf32> to vector<5x1xf32>
    %386 = vector.extract_strided_slice %377 {offsets = [0, 1, 0], sizes = [2, 1, 256], strides = [1, 1, 1]} : vector<2x4x256xf32> to vector<2x1x256xf32>
    %387 = vector.shape_cast %385 : vector<5x1xf32> to vector<1x5x1xf32>
    %388 = vector.broadcast %387 : vector<1x5x1xf32> to vector<2x5x256xf32>
    %389 = vector.broadcast %386 : vector<2x1x256xf32> to vector<2x5x256xf32>
    %390 = arith.mulf %388, %389 : vector<2x5x256xf32>
    %391 = arith.addf %384, %390 : vector<2x5x256xf32>
    %392 = vector.extract_strided_slice %221 {offsets = [0, 23], sizes = [5, 1], strides = [1, 1]} : vector<5x36xf32> to vector<5x1xf32>
    %393 = vector.extract_strided_slice %377 {offsets = [0, 2, 0], sizes = [2, 1, 256], strides = [1, 1, 1]} : vector<2x4x256xf32> to vector<2x1x256xf32>
    %394 = vector.shape_cast %392 : vector<5x1xf32> to vector<1x5x1xf32>
    %395 = vector.broadcast %394 : vector<1x5x1xf32> to vector<2x5x256xf32>
    %396 = vector.broadcast %393 : vector<2x1x256xf32> to vector<2x5x256xf32>
    %397 = arith.mulf %395, %396 : vector<2x5x256xf32>
    %398 = arith.addf %391, %397 : vector<2x5x256xf32>
    %399 = vector.extract_strided_slice %221 {offsets = [0, 32], sizes = [5, 1], strides = [1, 1]} : vector<5x36xf32> to vector<5x1xf32>
    %400 = vector.extract_strided_slice %377 {offsets = [0, 3, 0], sizes = [2, 1, 256], strides = [1, 1, 1]} : vector<2x4x256xf32> to vector<2x1x256xf32>
    %401 = vector.shape_cast %399 : vector<5x1xf32> to vector<1x5x1xf32>
    %402 = vector.broadcast %401 : vector<1x5x1xf32> to vector<2x5x256xf32>
    %403 = vector.broadcast %400 : vector<2x1x256xf32> to vector<2x5x256xf32>
    %404 = arith.mulf %402, %403 : vector<2x5x256xf32>
    %405 = arith.addf %398, %404 : vector<2x5x256xf32>
    %406 = vector.extract_strided_slice %220 {offsets = [0, 0, 32], sizes = [2, 4, 224], strides = [1, 1, 1]} : vector<2x4x256xf32> to vector<2x4x224xf32>
    %407 = vector.extract_strided_slice %220 {offsets = [0, 0, 0], sizes = [2, 4, 32], strides = [1, 1, 1]} : vector<2x4x256xf32> to vector<2x4x32xf32>
    %408 = tpu.concatenate %406, %407 in 2 : vector<2x4x224xf32>, vector<2x4x32xf32> -> vector<2x4x256xf32>
    %409 = vector.extract_strided_slice %221 {offsets = [0, 6], sizes = [5, 1], strides = [1, 1]} : vector<5x36xf32> to vector<5x1xf32>
    %410 = vector.extract_strided_slice %408 {offsets = [0, 0, 0], sizes = [2, 1, 256], strides = [1, 1, 1]} : vector<2x4x256xf32> to vector<2x1x256xf32>
    %411 = vector.shape_cast %409 : vector<5x1xf32> to vector<1x5x1xf32>
    %412 = vector.broadcast %411 : vector<1x5x1xf32> to vector<2x5x256xf32>
    %413 = vector.broadcast %410 : vector<2x1x256xf32> to vector<2x5x256xf32>
    %414 = arith.mulf %412, %413 : vector<2x5x256xf32>
    %415 = arith.addf %405, %414 : vector<2x5x256xf32>
    %416 = vector.extract_strided_slice %221 {offsets = [0, 15], sizes = [5, 1], strides = [1, 1]} : vector<5x36xf32> to vector<5x1xf32>
    %417 = vector.extract_strided_slice %408 {offsets = [0, 1, 0], sizes = [2, 1, 256], strides = [1, 1, 1]} : vector<2x4x256xf32> to vector<2x1x256xf32>
    %418 = vector.shape_cast %416 : vector<5x1xf32> to vector<1x5x1xf32>
    %419 = vector.broadcast %418 : vector<1x5x1xf32> to vector<2x5x256xf32>
    %420 = vector.broadcast %417 : vector<2x1x256xf32> to vector<2x5x256xf32>
    %421 = arith.mulf %419, %420 : vector<2x5x256xf32>
    %422 = arith.addf %415, %421 : vector<2x5x256xf32>
    %423 = vector.extract_strided_slice %221 {offsets = [0, 24], sizes = [5, 1], strides = [1, 1]} : vector<5x36xf32> to vector<5x1xf32>
    %424 = vector.extract_strided_slice %408 {offsets = [0, 2, 0], sizes = [2, 1, 256], strides = [1, 1, 1]} : vector<2x4x256xf32> to vector<2x1x256xf32>
    %425 = vector.shape_cast %423 : vector<5x1xf32> to vector<1x5x1xf32>
    %426 = vector.broadcast %425 : vector<1x5x1xf32> to vector<2x5x256xf32>
    %427 = vector.broadcast %424 : vector<2x1x256xf32> to vector<2x5x256xf32>
    %428 = arith.mulf %426, %427 : vector<2x5x256xf32>
    %429 = arith.addf %422, %428 : vector<2x5x256xf32>
    %430 = vector.extract_strided_slice %221 {offsets = [0, 33], sizes = [5, 1], strides = [1, 1]} : vector<5x36xf32> to vector<5x1xf32>
    %431 = vector.extract_strided_slice %408 {offsets = [0, 3, 0], sizes = [2, 1, 256], strides = [1, 1, 1]} : vector<2x4x256xf32> to vector<2x1x256xf32>
    %432 = vector.shape_cast %430 : vector<5x1xf32> to vector<1x5x1xf32>
    %433 = vector.broadcast %432 : vector<1x5x1xf32> to vector<2x5x256xf32>
    %434 = vector.broadcast %431 : vector<2x1x256xf32> to vector<2x5x256xf32>
    %435 = arith.mulf %433, %434 : vector<2x5x256xf32>
    %436 = arith.addf %429, %435 : vector<2x5x256xf32>
    %437 = vector.extract_strided_slice %220 {offsets = [0, 0, 33], sizes = [2, 4, 223], strides = [1, 1, 1]} : vector<2x4x256xf32> to vector<2x4x223xf32>
    %438 = vector.extract_strided_slice %220 {offsets = [0, 0, 0], sizes = [2, 4, 33], strides = [1, 1, 1]} : vector<2x4x256xf32> to vector<2x4x33xf32>
    %439 = tpu.concatenate %437, %438 in 2 : vector<2x4x223xf32>, vector<2x4x33xf32> -> vector<2x4x256xf32>
    %440 = vector.extract_strided_slice %221 {offsets = [0, 7], sizes = [5, 1], strides = [1, 1]} : vector<5x36xf32> to vector<5x1xf32>
    %441 = vector.extract_strided_slice %439 {offsets = [0, 0, 0], sizes = [2, 1, 256], strides = [1, 1, 1]} : vector<2x4x256xf32> to vector<2x1x256xf32>
    %442 = vector.shape_cast %440 : vector<5x1xf32> to vector<1x5x1xf32>
    %443 = vector.broadcast %442 : vector<1x5x1xf32> to vector<2x5x256xf32>
    %444 = vector.broadcast %441 : vector<2x1x256xf32> to vector<2x5x256xf32>
    %445 = arith.mulf %443, %444 : vector<2x5x256xf32>
    %446 = arith.addf %436, %445 : vector<2x5x256xf32>
    %447 = vector.extract_strided_slice %221 {offsets = [0, 16], sizes = [5, 1], strides = [1, 1]} : vector<5x36xf32> to vector<5x1xf32>
    %448 = vector.extract_strided_slice %439 {offsets = [0, 1, 0], sizes = [2, 1, 256], strides = [1, 1, 1]} : vector<2x4x256xf32> to vector<2x1x256xf32>
    %449 = vector.shape_cast %447 : vector<5x1xf32> to vector<1x5x1xf32>
    %450 = vector.broadcast %449 : vector<1x5x1xf32> to vector<2x5x256xf32>
    %451 = vector.broadcast %448 : vector<2x1x256xf32> to vector<2x5x256xf32>
    %452 = arith.mulf %450, %451 : vector<2x5x256xf32>
    %453 = arith.addf %446, %452 : vector<2x5x256xf32>
    %454 = vector.extract_strided_slice %221 {offsets = [0, 25], sizes = [5, 1], strides = [1, 1]} : vector<5x36xf32> to vector<5x1xf32>
    %455 = vector.extract_strided_slice %439 {offsets = [0, 2, 0], sizes = [2, 1, 256], strides = [1, 1, 1]} : vector<2x4x256xf32> to vector<2x1x256xf32>
    %456 = vector.shape_cast %454 : vector<5x1xf32> to vector<1x5x1xf32>
    %457 = vector.broadcast %456 : vector<1x5x1xf32> to vector<2x5x256xf32>
    %458 = vector.broadcast %455 : vector<2x1x256xf32> to vector<2x5x256xf32>
    %459 = arith.mulf %457, %458 : vector<2x5x256xf32>
    %460 = arith.addf %453, %459 : vector<2x5x256xf32>
    %461 = vector.extract_strided_slice %221 {offsets = [0, 34], sizes = [5, 1], strides = [1, 1]} : vector<5x36xf32> to vector<5x1xf32>
    %462 = vector.extract_strided_slice %439 {offsets = [0, 3, 0], sizes = [2, 1, 256], strides = [1, 1, 1]} : vector<2x4x256xf32> to vector<2x1x256xf32>
    %463 = vector.shape_cast %461 : vector<5x1xf32> to vector<1x5x1xf32>
    %464 = vector.broadcast %463 : vector<1x5x1xf32> to vector<2x5x256xf32>
    %465 = vector.broadcast %462 : vector<2x1x256xf32> to vector<2x5x256xf32>
    %466 = arith.mulf %464, %465 : vector<2x5x256xf32>
    %467 = arith.addf %460, %466 : vector<2x5x256xf32>
    %468 = vector.extract_strided_slice %220 {offsets = [0, 0, 34], sizes = [2, 4, 222], strides = [1, 1, 1]} : vector<2x4x256xf32> to vector<2x4x222xf32>
    %469 = vector.extract_strided_slice %220 {offsets = [0, 0, 0], sizes = [2, 4, 34], strides = [1, 1, 1]} : vector<2x4x256xf32> to vector<2x4x34xf32>
    %470 = tpu.concatenate %468, %469 in 2 : vector<2x4x222xf32>, vector<2x4x34xf32> -> vector<2x4x256xf32>
    %471 = vector.extract_strided_slice %221 {offsets = [0, 8], sizes = [5, 1], strides = [1, 1]} : vector<5x36xf32> to vector<5x1xf32>
    %472 = vector.extract_strided_slice %470 {offsets = [0, 0, 0], sizes = [2, 1, 256], strides = [1, 1, 1]} : vector<2x4x256xf32> to vector<2x1x256xf32>
    %473 = vector.shape_cast %471 : vector<5x1xf32> to vector<1x5x1xf32>
    %474 = vector.broadcast %473 : vector<1x5x1xf32> to vector<2x5x256xf32>
    %475 = vector.broadcast %472 : vector<2x1x256xf32> to vector<2x5x256xf32>
    %476 = arith.mulf %474, %475 : vector<2x5x256xf32>
    %477 = arith.addf %467, %476 : vector<2x5x256xf32>
    %478 = vector.extract_strided_slice %221 {offsets = [0, 17], sizes = [5, 1], strides = [1, 1]} : vector<5x36xf32> to vector<5x1xf32>
    %479 = vector.extract_strided_slice %470 {offsets = [0, 1, 0], sizes = [2, 1, 256], strides = [1, 1, 1]} : vector<2x4x256xf32> to vector<2x1x256xf32>
    %480 = vector.shape_cast %478 : vector<5x1xf32> to vector<1x5x1xf32>
    %481 = vector.broadcast %480 : vector<1x5x1xf32> to vector<2x5x256xf32>
    %482 = vector.broadcast %479 : vector<2x1x256xf32> to vector<2x5x256xf32>
    %483 = arith.mulf %481, %482 : vector<2x5x256xf32>
    %484 = arith.addf %477, %483 : vector<2x5x256xf32>
    %485 = vector.extract_strided_slice %221 {offsets = [0, 26], sizes = [5, 1], strides = [1, 1]} : vector<5x36xf32> to vector<5x1xf32>
    %486 = vector.extract_strided_slice %470 {offsets = [0, 2, 0], sizes = [2, 1, 256], strides = [1, 1, 1]} : vector<2x4x256xf32> to vector<2x1x256xf32>
    %487 = vector.shape_cast %485 : vector<5x1xf32> to vector<1x5x1xf32>
    %488 = vector.broadcast %487 : vector<1x5x1xf32> to vector<2x5x256xf32>
    %489 = vector.broadcast %486 : vector<2x1x256xf32> to vector<2x5x256xf32>
    %490 = arith.mulf %488, %489 : vector<2x5x256xf32>
    %491 = arith.addf %484, %490 : vector<2x5x256xf32>
    %492 = vector.extract_strided_slice %221 {offsets = [0, 35], sizes = [5, 1], strides = [1, 1]} : vector<5x36xf32> to vector<5x1xf32>
    %493 = vector.extract_strided_slice %470 {offsets = [0, 3, 0], sizes = [2, 1, 256], strides = [1, 1, 1]} : vector<2x4x256xf32> to vector<2x1x256xf32>
    %494 = vector.shape_cast %492 : vector<5x1xf32> to vector<1x5x1xf32>
    %495 = vector.broadcast %494 : vector<1x5x1xf32> to vector<2x5x256xf32>
    %496 = vector.broadcast %493 : vector<2x1x256xf32> to vector<2x5x256xf32>
    %497 = arith.mulf %495, %496 : vector<2x5x256xf32>
    %498 = arith.addf %491, %497 : vector<2x5x256xf32>
    %c0_9 = arith.constant 0 : index
    %c0_10 = arith.constant 0 : index
    %499 = vector.load %arg4[%c0_9, %c0_10] : memref<5x1xf32, #tpu.memory_space<vmem>>, vector<5x1xf32>
    %500 = vector.shape_cast %499 : vector<5x1xf32> to vector<1x5x1xf32>
    %501 = vector.broadcast %500 : vector<1x5x1xf32> to vector<2x5x256xf32>
    %502 = arith.addf %498, %501 : vector<2x5x256xf32>
    %c0_11 = arith.constant 0 : index
    %c0_12 = arith.constant 0 : index
    %c0_13 = arith.constant 0 : index
    %503 = vector.load %arg5[%c0_11, %c0_12, %c0_13] : memref<2x5x256xf32, #tpu.memory_space<vmem>>, vector<2x5x256xf32>
    %504 = arith.mulf %502, %503 : vector<2x5x256xf32>
    %cst_14 = arith.constant 0.000000e+00 : f32
    %505 = vector.broadcast %cst_14 : f32 to vector<2x5x256xf32>
    %506 = arith.maximumf %504, %505 : vector<2x5x256xf32>
    %507 = vector.extract_strided_slice %506 {offsets = [0, 0, 1], sizes = [2, 5, 255], strides = [1, 1, 1]} : vector<2x5x256xf32> to vector<2x5x255xf32>
    %508 = vector.extract_strided_slice %506 {offsets = [0, 0, 0], sizes = [2, 5, 1], strides = [1, 1, 1]} : vector<2x5x256xf32> to vector<2x5x1xf32>
    %509 = tpu.concatenate %507, %508 in 2 : vector<2x5x255xf32>, vector<2x5x1xf32> -> vector<2x5x256xf32>
    %510 = arith.addf %506, %509 : vector<2x5x256xf32>
    %511 = vector.extract_strided_slice %510 {offsets = [0, 0, 16], sizes = [2, 5, 240], strides = [1, 1, 1]} : vector<2x5x256xf32> to vector<2x5x240xf32>
    %512 = vector.extract_strided_slice %510 {offsets = [0, 0, 0], sizes = [2, 5, 16], strides = [1, 1, 1]} : vector<2x5x256xf32> to vector<2x5x16xf32>
    %513 = tpu.concatenate %511, %512 in 2 : vector<2x5x240xf32>, vector<2x5x16xf32> -> vector<2x5x256xf32>
    %514 = arith.addf %510, %513 : vector<2x5x256xf32>
    %515 = vector.extract_strided_slice %514 {offsets = [0, 0, 2], sizes = [2, 5, 254], strides = [1, 1, 1]} : vector<2x5x256xf32> to vector<2x5x254xf32>
    %516 = vector.extract_strided_slice %514 {offsets = [0, 0, 0], sizes = [2, 5, 2], strides = [1, 1, 1]} : vector<2x5x256xf32> to vector<2x5x2xf32>
    %517 = tpu.concatenate %515, %516 in 2 : vector<2x5x254xf32>, vector<2x5x2xf32> -> vector<2x5x256xf32>
    %518 = arith.maximumf %514, %517 : vector<2x5x256xf32>
    %519 = vector.extract_strided_slice %514 {offsets = [0, 0, 32], sizes = [2, 5, 224], strides = [1, 1, 1]} : vector<2x5x256xf32> to vector<2x5x224xf32>
    %520 = vector.extract_strided_slice %514 {offsets = [0, 0, 0], sizes = [2, 5, 32], strides = [1, 1, 1]} : vector<2x5x256xf32> to vector<2x5x32xf32>
    %521 = tpu.concatenate %519, %520 in 2 : vector<2x5x224xf32>, vector<2x5x32xf32> -> vector<2x5x256xf32>
    %522 = vector.extract_strided_slice %514 {offsets = [0, 0, 34], sizes = [2, 5, 222], strides = [1, 1, 1]} : vector<2x5x256xf32> to vector<2x5x222xf32>
    %523 = vector.extract_strided_slice %514 {offsets = [0, 0, 0], sizes = [2, 5, 34], strides = [1, 1, 1]} : vector<2x5x256xf32> to vector<2x5x34xf32>
    %524 = tpu.concatenate %522, %523 in 2 : vector<2x5x222xf32>, vector<2x5x34xf32> -> vector<2x5x256xf32>
    %525 = arith.maximumf %521, %524 : vector<2x5x256xf32>
    %526 = arith.maximumf %518, %525 : vector<2x5x256xf32>
    %527 = vector.extract_strided_slice %526 {offsets = [0, 0, 0], sizes = [2, 1, 256], strides = [1, 1, 1]} : vector<2x5x256xf32> to vector<2x1x256xf32>
    %528 = vector.shape_cast %527 : vector<2x1x256xf32> to vector<2x256xf32>
    %529 = vector.extract_strided_slice %526 {offsets = [0, 1, 0], sizes = [2, 1, 256], strides = [1, 1, 1]} : vector<2x5x256xf32> to vector<2x1x256xf32>
    %530 = vector.shape_cast %529 : vector<2x1x256xf32> to vector<2x256xf32>
    %531 = vector.extract_strided_slice %526 {offsets = [0, 2, 0], sizes = [2, 1, 256], strides = [1, 1, 1]} : vector<2x5x256xf32> to vector<2x1x256xf32>
    %532 = vector.shape_cast %531 : vector<2x1x256xf32> to vector<2x256xf32>
    %533 = vector.extract_strided_slice %526 {offsets = [0, 3, 0], sizes = [2, 1, 256], strides = [1, 1, 1]} : vector<2x5x256xf32> to vector<2x1x256xf32>
    %534 = vector.shape_cast %533 : vector<2x1x256xf32> to vector<2x256xf32>
    %535 = vector.extract_strided_slice %526 {offsets = [0, 4, 0], sizes = [2, 1, 256], strides = [1, 1, 1]} : vector<2x5x256xf32> to vector<2x1x256xf32>
    %536 = vector.shape_cast %535 : vector<2x1x256xf32> to vector<2x256xf32>
    %537 = tpu.concatenate %528, %530, %532, %534, %536 in 1 : vector<2x256xf32>, vector<2x256xf32>, vector<2x256xf32>, vector<2x256xf32>, vector<2x256xf32> -> vector<2x1280xf32>
    %c0_15 = arith.constant 0 : index
    %c0_16 = arith.constant 0 : index
    %538 = vector.load %arg6[%c0_15, %c0_16] : memref<7x1280xf32, #tpu.memory_space<vmem>>, vector<7x1280xf32>
    %cst_17 = arith.constant dense<0.000000e+00> : vector<2x7xf32>
    %539 = tpu.matmul %537, %538, %cst_17 {dimension_numbers = #tpu.dot_dimension_numbers<[1], [1], [0], [0], [0, 0, 1, 0], [], []>} : vector<2x1280xf32>, vector<7x1280xf32>, vector<2x7xf32> -> vector<2x7xf32>
    %c0_18 = arith.constant 0 : index
    %c0_19 = arith.constant 0 : index
    %540 = vector.load %arg7[%c0_18, %c0_19] : memref<1x7xf32, #tpu.memory_space<vmem>>, vector<1x7xf32>
    %541 = vector.broadcast %540 : vector<1x7xf32> to vector<2x7xf32>
    %542 = arith.addf %539, %541 : vector<2x7xf32>
    %c0_20 = arith.constant 0 : index
    %c0_21 = arith.constant 0 : index
    %543 = vector.load %arg9[%c0_20, %c0_21] : memref<2x7xf32, #tpu.memory_space<vmem>>, vector<2x7xf32>
    tpu.vector_store %arg9[%c0_20, %c0_21], %542 {strides = array<i32>} : memref<2x7xf32, #tpu.memory_space<vmem>>, vector<2x7xf32>,
    %c0_22 = arith.constant 0 : index
    %c0_23 = arith.constant 0 : index
    %544 = vector.load %arg8[%c0_22, %c0_23] : memref<2x7xf32, #tpu.memory_space<vmem>>, vector<2x7xf32>
    %545 = arith.subf %542, %544 : vector<2x7xf32>
    %546 = arith.mulf %545, %545 : vector<2x7xf32>
    %547 = vector.shape_cast %546 : vector<2x7xf32> to vector<1x2x7xf32>
    %cst_24 = arith.constant dense<0.000000e+00> : vector<1xf32>
    %548 = vector.multi_reduction <add>, %547, %cst_24 [1, 2] : vector<1x2x7xf32> to vector<1xf32>
    %549 = vector.shape_cast %548 : vector<1xf32> to vector<1x1x1xf32>
    %550 = vector.extract %549[0, 0, 0] : f32 from vector<1x1x1xf32>
    %551 = vector.broadcast %550 : f32 to vector<1x1xf32>
    %cst_25 = arith.constant 0.0714285746 : f32
    %552 = vector.broadcast %cst_25 : f32 to vector<1x1xf32>
    %553 = arith.mulf %551, %552 : vector<1x1xf32>
    %c0_26 = arith.constant 0 : index
    %c0_27 = arith.constant 0 : index
    %554 = vector.load %arg10[%c0_26, %c0_27] : memref<1x1xf32, #tpu.memory_space<vmem>>, vector<1x1xf32>
    tpu.vector_store %arg10[%c0_26, %c0_27], %553 {strides = array<i32>} : memref<1x1xf32, #tpu.memory_space<vmem>>, vector<1x1xf32>,
    return
  }
}

</mosaic_0001>

<bundles_post_ra>
// kernel: tpu_custom_call.1
= control target key start
LH: loop header
LB: loop body
LE: loop exit
PB: predicated region body
PF: predicated region fallthrough
CT: control target
= control target key end

     0   :  { %16 = vsyncpa [#allocation3], 0  ;;  %v2994_v1 = vmov 18   ;;  %v4417_v2 = vmov 0   ;;  %s4404_s0 = inlined_call_operand.vmem [shape: f32[2,3,256], index: 0, kind: input, shape index: {}]   ;;  %s4405_s1 = inlined_call_operand.vmem [shape: f32[4,27], index: 1, kind: input, shape index: {}]   ;;  %s4406_s2 = inlined_call_operand.vmem [shape: f32[4,1], index: 2, kind: input, shape index: {}]   ;;  %s4407_s3 = inlined_call_operand.vmem [shape: f32[5,36], index: 3, kind: input, shape index: {}]   ;;  %s4408_s4 = inlined_call_operand.vmem [shape: f32[5,1], index: 4, kind: input, shape index: {}]   ;;  %s4409_s5 = inlined_call_operand.vmem [shape: f32[2,5,256], index: 5, kind: input, shape index: {}]   ;;  %s4410_s6 = inlined_call_operand.vmem [shape: f32[7,1280], index: 6, kind: input, shape index: {}]   ;;  %s4411_s7 = inlined_call_operand.vmem [shape: f32[1,7], index: 7, kind: input, shape index: {}]   ;;  %s4412_s8 = inlined_call_operand.vmem [shape: f32[2,7], index: 8, kind: input, shape index: {}]   ;;  %s4413_s9 = inlined_call_operand.hbm [shape: f32[2,7], index: 9, kind: output, shape index: {0}]   ;;  %s4414_s10 = inlined_call_operand.hbm [shape: f32[1,1], index: 10, kind: output, shape index: {1}]  }
   0x1   :  { %v3098_v0 = vld [vmem:[%s4405_s1] sm:$0xf]  ;;  %2842 = vset.pattern.permute.xlu1 %v2994_v1  ;;  %2840 = vset.pattern.permute.xlu0 %v4417_v2 }
   0x2   :  { %139 = vperm.xlu1 %2842, %v3098_v0   ;;  %41 = vperm.xlu0 %2840, %v3098_v0  }
   0x3   :  { %17 = vsyncpa [#allocation5], 0  ;;  %v2996_v3 = vmov 1   ;;  %v2997_v4 = vmov 9   ;;  %v3111_v5 = vld [vmem:[%s4404_s0] sm:$0x77]  ;;  %v46_v49 = vlaneseq }
   0x4   :  { %v2998_v6 = vmov 10   ;;  %s2999_s16 = smov 127   ;;  %v3120_v7 = vld [vmem:[%s4404_s0 + $0x8] sm:$0x77]  ;;  %v3124_v8 = vcombine.high %v3111_v5, %v3111_v5  ;;  %v3000_v9 = vmov 19   ;;  %v3001_v11 = vmov 2  }
   0x5   :  { %v3133_v10 = vcombine.high %v3120_v7, %v3120_v7  ;;  %s3002_s0 = smov 126   ;;  %v3003_v12 = vmov 20   ;;  %v3004_v13 = vmov 11   ;;  %v3005_v14 = vmov 3   ;;  %s3006_s19 = smov 112  }
   0x6   :  { %2843 = vset.pattern.permute.xlu1 %v2996_v3  ;;  %2841 = vset.pattern.permute.xlu0 %v2997_v4  ;;  %v3007_v15 = vmov 21   ;;  %v3008_v16 = vmov 12   ;;  %s3009_s20 = smov 111   ;;  %v3010_v17 = vmov 22   ;;  %v3011_v18 = vmov 4   ;;  %s3012_s21 = smov 110  }
   0x7   :  { %208 = vperm.xlu1 %2843, %v3098_v0   ;;  %91 = vperm.xlu0 %2841, %v3098_v0   ;;  %v3013_v19 = vmov 23   ;;  %v3014_v20 = vmov 13   ;;  %v3015_v21 = vmov 5   ;;  %s3016_s22 = smov 96   ;;  %v3017_v22 = vmov 24   ;;  %s3019_s23 = smov 95  }
   0x8   :  { %v3018_v23 = vmov 14   ;;  %v3020_v24 = vmov 25   ;;  %v3021_v25 = vmov 6   ;;  %s3022_s24 = smov 94   ;;  %v3023_v26 = vmov 15   ;;  %s3038_s1 = smov [#allocation2]  }
   0x9   :  { %v3024_v27 = vmov 26   ;;  %v4416_v28 = vmov 7   ;;  %v3224_v29 = vld [vmem:[%s4407_s3] sm:$0x1f]  ;;  %v3026_v30 = vmov 16   ;;  %v4415_v31 = vmov 8  }
   0xa   :  { %v3028_v34 = vmov 17   ;;  %v3029_v35 = vmov 28   ;;  %v1012_v40 = vld [vmem:[%s4406_s2] sm:$0xf]  ;;  %v3030_v48 = vmov 27   ;;  %v3291_v52 = vshrl.u32 %v46_v49, 7 }
   0xb   :  { %2844 = vset.pattern.permute.xlu1 %v2998_v6  ;;  %188 = vrot.lane.b32.xlu0 %v3111_v5, %s2999_s16  ;;  %vm196_vm0 = vcmask 1039360   ;;  %vm299_vm1 = vcmask 1031168   ;;  %vm402_vm2 = vcmask 916480   ;;  %vm505_vm3 = vcmask 908288   ;;  %s2761_s15 = sshll.u32 %s3038_s1, 4  ;;  %s2762_s15 = int_to_ptr.vmem [resolvable:$true] %s2761_s15 }
   0xc   :  { %236 = vperm.xlu1 %2844, %v3098_v0   ;;  %2845 = vset.pattern.permute.xlu0 %v3000_v9  ;;  %v3296_v54 = vsub.s32 0, %v3291_v52  ;;  %v3299_v55 = vsub.s32 1, %v3291_v52  ;;  %v52_v56 = vsub.s32 4, %v3291_v52  ;;  %v100_v58 = vsub.s32 5, %v3291_v52  ;;  %s2946_s17 = scalar_lea.vmem %s2762_s15, 32  ;;  %p2951_p1 = scmp.lt.s32.totalorder %s2762_s15, %s2762_s15 }
   0xd   :  { %v3310_v60 = vsub.s32 2, %v3291_v52  ;;  %vm608_vm4 = vcmask 900096   ;;  %vm711_vm5 = vcmask 785408   ;;  %vm814_vm6 = vcmask 777216   ;;  %p2947_p0 = scmp.ne.s32.totalorder %s2762_s15, %s2946_s17  ;;  %p2952_p2 = scmp.lt.s32.totalorder %s2946_s17, %s2946_s17 }
   0xe   :  { %v49_v61 = vrot.slane %v3111_v5, %v3296_v54  ;;  %v53_v62 = vrot.slane %v3111_v5, %v52_v56  ;;  %v57_v63 = vrot.slane %v3120_v7, %v3296_v54  ;;  %vm917_vm7 = vcmask 769024  }
   0xf   :  { %192 = vrot.lane.b32.xlu0 %v3120_v7, %s2999_s16  ;;  %vm2333_vm8 = vcmask 1041409   ;;  %vm2736_vm9 = vcmask 50176   ;;  %p2953_p3 = por %p2952_p2, %p2951_p1 }
  0x10   :  { %190 = vrot.lane.b32.xlu1 %v3124_v8, %s2999_s16 }
  0x11   :  { %2846 = vset.pattern.permute.xlu1 %v3001_v11  ;;  %p2954_p4 = pnand %p2953_p3, %p2947_p0 }
  0x13   :  { %264 = vperm.xlu0 %2845, %v3098_v0  }
  0x14   :  { %194 = vrot.lane.b32.xlu1 %v3133_v10, %s2999_s16 }
  0x17   :  { %291 = vrot.lane.b32.xlu0 %v3111_v5, %s3002_s0 }
  0x18   :  { %311 = vperm.xlu1 %2846, %v3098_v0   ;;  %2848 = vset.pattern.permute.xlu0 %v3003_v12 }
  0x1b   :  { %295 = vrot.lane.b32.xlu0 %v3120_v7, %s3002_s0 }
  0x1c   :  { %2847 = vset.pattern.permute.xlu1 %v3004_v13 }
  0x1d   :  { %339 = vperm.xlu1 %2847, %v3098_v0  }
  0x1f   :  { %367 = vperm.xlu0 %2848, %v3098_v0  }
  0x21   :  { %293 = vrot.lane.b32.xlu1 %v3124_v8, %s3002_s0 }
  0x22   :  { %2849 = vset.pattern.permute.xlu1 %v3005_v14 }
  0x23   :  { %394 = vrot.lane.b32.xlu0 %v3111_v5, %s3006_s19 }
  0x24   :  { %2851 = vset.pattern.permute.xlu0 %v3007_v15 }
  0x25   :  { %297 = vrot.lane.b32.xlu1 %v3133_v10, %s3002_s0 }
  0x27   :  { %398 = vrot.lane.b32.xlu0 %v3120_v7, %s3006_s19 }
  0x29   :  { %414 = vperm.xlu1 %2849, %v3098_v0  }
  0x2b   :  { %470 = vperm.xlu0 %2851, %v3098_v0  }
  0x2d   :  { %2850 = vset.pattern.permute.xlu1 %v3008_v16 }
  0x2e   :  { %442 = vperm.xlu1 %2850, %v3098_v0  }
  0x2f   :  { %497 = vrot.lane.b32.xlu0 %v3111_v5, %s3009_s20 }
  0x30   :  { %2854 = vset.pattern.permute.xlu0 %v3010_v17 }
  0x32   :  { %396 = vrot.lane.b32.xlu1 %v3124_v8, %s3006_s19 }
  0x33   :  { %2852 = vset.pattern.permute.xlu1 %v3011_v18  ;;  %501 = vrot.lane.b32.xlu0 %v3120_v7, %s3009_s20 }
  0x36   :  { %400 = vrot.lane.b32.xlu1 %v3133_v10, %s3006_s19 }
  0x37   :  { %573 = vperm.xlu0 %2854, %v3098_v0  }
  0x3a   :  { %517 = vperm.xlu1 %2852, %v3098_v0  }
  0x3b   :  { %600 = vrot.lane.b32.xlu0 %v3111_v5, %s3012_s21 }
  0x3c   :  { %2857 = vset.pattern.permute.xlu0 %v3013_v19 }
  0x3e   :  { %2853 = vset.pattern.permute.xlu1 %v3014_v20 }
  0x3f   :  { %545 = vperm.xlu1 %2853, %v3098_v0   ;;  %604 = vrot.lane.b32.xlu0 %v3120_v7, %s3012_s21 }
  0x43   :  { %499 = vrot.lane.b32.xlu1 %v3124_v8, %s3009_s20  ;;  %676 = vperm.xlu0 %2857, %v3098_v0  }
  0x44   :  { %2855 = vset.pattern.permute.xlu1 %v3015_v21 }
  0x47   :  { %503 = vrot.lane.b32.xlu1 %v3133_v10, %s3009_s20  ;;  %703 = vrot.lane.b32.xlu0 %v3111_v5, %s3016_s22 }
  0x48   :  { %2860 = vset.pattern.permute.xlu0 %v3017_v22 }
  0x4b   :  { %620 = vperm.xlu1 %2855, %v3098_v0   ;;  %707 = vrot.lane.b32.xlu0 %v3120_v7, %s3016_s22 }
  0x4f   :  { %2856 = vset.pattern.permute.xlu1 %v3018_v23  ;;  %779 = vperm.xlu0 %2860, %v3098_v0  }
  0x50   :  { %648 = vperm.xlu1 %2856, %v3098_v0  }
  0x53   :  { %806 = vrot.lane.b32.xlu0 %v3111_v5, %s3019_s23 }
  0x54   :  { %602 = vrot.lane.b32.xlu1 %v3124_v8, %s3012_s21  ;;  %2863 = vset.pattern.permute.xlu0 %v3020_v24 }
  0x55   :  { %2858 = vset.pattern.permute.xlu1 %v3021_v25 }
  0x57   :  { %810 = vrot.lane.b32.xlu0 %v3120_v7, %s3019_s23 }
  0x58   :  { %606 = vrot.lane.b32.xlu1 %v3133_v10, %s3012_s21 }
  0x5b   :  { %882 = vperm.xlu0 %2863, %v3098_v0  }
  0x5c   :  { %723 = vperm.xlu1 %2858, %v3098_v0  }
  0x5f   :  { %909 = vrot.lane.b32.xlu0 %v3111_v5, %s3022_s24 }
  0x60   :  { %2859 = vset.pattern.permute.xlu1 %v3023_v26  ;;  %2866 = vset.pattern.permute.xlu0 %v3024_v27 }
  0x61   :  { %751 = vperm.xlu1 %2859, %v3098_v0  }
  0x63   :  { %913 = vrot.lane.b32.xlu0 %v3120_v7, %s3022_s24 }
  0x65   :  { %705 = vrot.lane.b32.xlu1 %v3124_v8, %s3016_s22 }
  0x66   :  { %2861 = vset.pattern.permute.xlu1 %v4416_v28 }
  0x67   :  { %985 = vperm.xlu0 %2866, %v3098_v0  }
  0x69   :  { %709 = vrot.lane.b32.xlu1 %v3133_v10, %s3016_s22 }
  0x6b   :  { %2868 = vset.pattern.permute.xlu0 %v2997_v4  ;;  %v105_v4 = vrot.slane %v3120_v7, %v3299_v55 }
  0x6c   :  { %1057 = vperm.xlu0 %2868, %v3224_v29  }
  0x6d   :  { %826 = vperm.xlu1 %2861, %v3098_v0  }
  0x70   :  { %2871 = vset.pattern.permute.xlu0 %v2996_v3  ;;  %v101_v3 = vrot.slane %v3111_v5, %v100_v58 }
  0x71   :  { %2862 = vset.pattern.permute.xlu1 %v3026_v30  ;;  %1163 = vperm.xlu0 %2871, %v3224_v29  }
  0x72   :  { %854 = vperm.xlu1 %2862, %v3098_v0  }
  0x75   :  { %2874 = vset.pattern.permute.xlu0 %v3029_v35  ;;  %v77_v35 = vrot.slane %v57_v63, %v3296_v54 }
  0x76   :  { %808 = vrot.lane.b32.xlu1 %v3124_v8, %s3019_s23  ;;  %1247 = vperm.xlu0 %2874, %v3224_v29  }
  0x77   :  { %2864 = vset.pattern.permute.xlu1 %v4415_v31 }
  0x7a   :  { %812 = vrot.lane.b32.xlu1 %v3133_v10, %s3019_s23  ;;  %2877 = vset.pattern.permute.xlu0 %v3003_v12  ;;  %v69_v12 = vrot.slane %v49_v61, %v3296_v54 }
  0x7b   :  { %1349 = vperm.xlu0 %2877, %v3224_v29  }
  0x7e   :  { %929 = vperm.xlu1 %2864, %v3098_v0  }
  0x7f   :  { %2880 = vset.pattern.permute.xlu0 %v3008_v16  ;;  %v73_v16 = vrot.slane %v53_v62, %v3296_v54  ;;  %v153_v62 = vrot.slane %v3120_v7, %v3310_v60 }
  0x80   :  { %1451 = vperm.xlu0 %2880, %v3224_v29  }
  0x81   :  { %v3239_v32 = vpop.permute.xlu1 %139  ;;  %v3241_v33 = vpop.permute.xlu0 %41 }
  0x82   :  { %2865 = vset.pattern.permute.xlu1 %v3028_v34 }
  0x83   :  { %957 = vperm.xlu1 %2865, %v3098_v0   ;;  %v97_v0 = vrot.slane %v3111_v5, %v3299_v55 }
  0x84   :  { %2881 = vset.pattern.permute.xlu0 %v3007_v15 }
  0x86   :  { %v3245_v36 = vpop.permute.xlu1 %208  ;;  %v3247_v37 = vpop.permute.xlu0 %91 }
  0x87   :  { %911 = vrot.lane.b32.xlu1 %v3124_v8, %s3022_s24  ;;  %v61_v8 = vrot.slane %v3120_v7, %v52_v56 }
  0x88   :  { %2867 = vset.pattern.permute.xlu1 %v4417_v2 }
  0x89   :  { %v81_v56 = vrot.slane %v61_v8, %v3296_v54  ;;  %v84_v8 = vmul.f32 %v77_v35, %v3241_v33 }
  0x8a   :  { %v3253_v38 = vpop.permute.xlu0 %188 }
  0x8b   :  { %v3256_v39 = vpop.permute.xlu1 %236  ;;  %915 = vrot.lane.b32.xlu1 %v3133_v10, %s3022_s24  ;;  %v145_v10 = vrot.slane %v3111_v5, %v3310_v60 }
  0x8e   :  { %v3266_v42 = vpop.permute.xlu0 %192 }
  0x8f   :  { %1015 = vperm.xlu1 %2867, %v1012_v40   ;;  %v3264_v41 = vpop.permute.xlu1 %190  ;;  %v121_v40 = vrot.slane %v101_v3, %v3299_v55  ;;  %v82_v3 = vmul.f32 %v69_v12, %v3241_v33 }
  0x92   :  { %v3274_v44 = vpop.permute.xlu0 %264 }
  0x93   :  { %1029 = vperm.xlu1 %2867, %v3224_v29   ;;  %v3271_v43 = vpop.permute.xlu1 %194 }
  0x94   :  { %v3378_v35 = vsel %vm196_vm0, %v3271_v43, %v3266_v42 }
  0x96   :  { %v3280_v46 = vpop.permute.xlu0 %291 }
  0x97   :  { %v3276_v45 = vpop.permute.xlu1 %311  ;;  %2869 = vset.pattern.permute.xlu1 %v2994_v1 }
  0x98   :  { %1085 = vperm.xlu1 %2869, %v3224_v29  }
  0x9a   :  { %v3285_v50 = vpop.permute.xlu0 %295 }
  0x9c   :  { %v3282_v47 = vpop.permute.xlu1 %339  ;;  %2870 = vset.pattern.permute.xlu1 %v3030_v48  ;;  %v125_v48 = vrot.slane %v105_v4, %v3299_v55 }
  0x9d   :  { %1113 = vperm.xlu1 %2870, %v3224_v29  }
  0x9e   :  { %v3302_v57 = vpop.permute.xlu0 %367  ;;  %v132_v31 = vmul.f32 %v125_v48, %v3247_v37 }
  0xa0   :  { %v3287_v51 = vpop.permute.xlu1 %293 }
  0xa1   :  { %2872 = vset.pattern.permute.xlu1 %v2998_v6  ;;  %v148_v6 = vsub.s32 6, %v3291_v52 }
  0xa2   :  { %1191 = vperm.xlu1 %2872, %v3224_v29   ;;  %v3319_v1 = vpop.permute.xlu0 %394 }
  0xa3   :  { %v149_v49 = vrot.slane %v3111_v5, %v148_v6  ;;  %v157_v63 = vrot.slane %v3120_v7, %v148_v6  ;;  %v83_v5 = vmul.f32 %v73_v16, %v3241_v33  ;;  %v3366_v6 = vsel %vm196_vm0, %v3264_v41, %v3253_v38 }
  0xa4   :  { %v3293_v53 = vpop.permute.xlu1 %297  ;;  %v3373_v16 = vsel %vm196_vm0, %v3266_v42, %v3271_v43  ;;  %v136_v43 = vadd.f32 %v132_v31, %v84_v8 }
  0xa6   :  { %2873 = vset.pattern.permute.xlu1 %v3000_v9  ;;  %v109_v9 = vrot.slane %v3120_v7, %v100_v58  ;;  %v3342_v61 = vpop.permute.xlu0 %398  ;;  %v3361_v7 = vsel %vm196_vm0, %v3253_v38, %v3264_v41  ;;  %v3031_v41 = vmov 29  }
  0xa7   :  { %1219 = vperm.xlu1 %2873, %v3224_v29   ;;  %v214_v48 = vrot.slane %v3361_v7, %v3296_v54 }
  0xa8   :  { %v3307_v59 = vpop.permute.xlu1 %414  ;;  %v129_v58 = vrot.slane %v109_v9, %v3299_v55 }
  0xa9   :  { %v227_v31 = vmul.f32 %v214_v48, %v3245_v36  ;;  %v250_v48 = vrot.slane %v3373_v16, %v3299_v55 }
  0xaa   :  { %v133_v12 = vmul.f32 %v129_v58, %v3247_v37  ;;  %v3389_v58 = vpop.permute.xlu0 %470 }
  0xab   :  { %2875 = vset.pattern.permute.xlu1 %v3001_v11  ;;  %v117_v11 = vrot.slane %v97_v0, %v3299_v55  ;;  %v165_v0 = vrot.slane %v145_v10, %v3310_v60  ;;  %v85_v10 = vmul.f32 %v81_v56, %v3241_v33  ;;  %v177_v33 = vrot.slane %v157_v63, %v3310_v60 }
  0xac   :  { %1293 = vperm.xlu1 %2875, %v3224_v29   ;;  %v218_v56 = vrot.slane %v3366_v6, %v3296_v54 }
  0xad   :  { %v3332_v15 = vpop.permute.xlu1 %442  ;;  %v130_v9 = vmul.f32 %v117_v11, %v3247_v37  ;;  %v169_v11 = vrot.slane %v149_v49, %v3310_v60  ;;  %v222_v49 = vrot.slane %v3373_v16, %v3296_v54  ;;  %v178_v63 = vmul.f32 %v165_v0, %v3239_v32 }
  0xae   :  { %v181_v2 = vmul.f32 %v177_v33, %v3239_v32  ;;  %v228_v8 = vmul.f32 %v218_v56, %v3245_v36 }
  0xb0   :  { %2876 = vset.pattern.permute.xlu1 %v3004_v13  ;;  %v131_v13 = vmul.f32 %v121_v40, %v3247_v37  ;;  %v173_v40 = vrot.slane %v153_v62, %v3310_v60  ;;  %v134_v37 = vadd.f32 %v130_v9, %v82_v3  ;;  %v226_v62 = vrot.slane %v3378_v35, %v3296_v54 }
  0xb1   :  { %v3350_v4 = vpop.permute.xlu1 %396  ;;  %1321 = vperm.xlu1 %2876, %v3224_v29   ;;  %v137_v3 = vadd.f32 %v133_v12, %v85_v10  ;;  %v179_v9 = vmul.f32 %v169_v11, %v3239_v32  ;;  %v229_v12 = vmul.f32 %v222_v49, %v3245_v36  ;;  %v3437_v49 = vsel %vm299_vm1, %v3285_v50, %v3293_v53 }
  0xb2   :  { %v135_v42 = vadd.f32 %v131_v13, %v83_v5  ;;  %v182_v5 = vadd.f32 %v178_v63, %v134_v37  ;;  %v3404_v13 = vpop.permute.xlu0 %497  ;;  %v230_v11 = vmul.f32 %v226_v62, %v3245_v36  ;;  %v270_v37 = vrot.slane %v3361_v7, %v3310_v60 }
  0xb3   :  { %v185_v33 = vadd.f32 %v181_v2, %v137_v3  ;;  %v254_v36 = vrot.slane %v3378_v35, %v3299_v55  ;;  %v3430_v2 = vsel %vm299_vm1, %v3287_v51, %v3280_v46  ;;  %v3442_v62 = vsel %vm299_vm1, %v3293_v53, %v3285_v50 }
  0xb4   :  { %v183_v0 = vadd.f32 %v179_v9, %v135_v42  ;;  %v3425_v42 = vsel %vm299_vm1, %v3280_v46, %v3287_v51  ;;  %v3032_v63 = vmov 30   ;;  %v278_v51 = vrot.slane %v3373_v16, %v3310_v60 }
  0xb5   :  { %v3382_v38 = vpop.permute.xlu1 %400  ;;  %2878 = vset.pattern.permute.xlu1 %v3031_v41  ;;  %v180_v41 = vmul.f32 %v173_v40, %v3239_v32  ;;  %v242_v32 = vrot.slane %v3361_v7, %v3299_v55  ;;  %v246_v40 = vrot.slane %v3366_v6, %v3299_v55  ;;  %v282_v9 = vrot.slane %v3378_v35, %v3310_v60 }
  0xb6   :  { %1377 = vperm.xlu1 %2878, %v3224_v29   ;;  %v232_v56 = vadd.f32 %v228_v8, %v183_v0  ;;  %v317_v50 = vrot.slane %v3425_v42, %v3296_v54  ;;  %v321_v53 = vrot.slane %v3430_v2, %v3296_v54  ;;  %v325_v16 = vrot.slane %v3437_v49, %v3296_v54 }
  0xb7   :  { %v184_v10 = vadd.f32 %v180_v41, %v136_v43  ;;  %v234_v43 = vadd.f32 %v230_v11, %v185_v33  ;;  %v255_v3 = vmul.f32 %v242_v32, %v3256_v39  ;;  %v256_v46 = vmul.f32 %v246_v40, %v3256_v39  ;;  %v3450_v41 = vpop.permute.xlu0 %501 }
  0xb8   :  { %v329_v35 = vrot.slane %v3442_v62, %v3296_v54  ;;  %v285_v40 = vmul.f32 %v278_v51, %v3274_v44  ;;  %v286_v33 = vmul.f32 %v282_v9, %v3274_v44  ;;  %v373_v51 = vrot.slane %v3425_v42, %v3310_v60 }
  0xb9   :  { %v3399_v28 = vpop.permute.xlu1 %517  ;;  %v260_v0 = vadd.f32 %v256_v46, %v232_v56  ;;  %v345_v46 = vrot.slane %v3425_v42, %v3299_v55  ;;  %v377_v9 = vrot.slane %v3430_v2, %v3310_v60  ;;  %v3496_v42 = vsel %vm402_vm2, %v3350_v4, %v3319_v1 }
  0xba   :  { %2879 = vset.pattern.permute.xlu1 %v3005_v14  ;;  %v274_v14 = vrot.slane %v3366_v6, %v3310_v60  ;;  %v233_v6 = vadd.f32 %v229_v12, %v184_v10 }
  0xbb   :  { %1423 = vperm.xlu1 %2879, %v3224_v29   ;;  %v231_v29 = vadd.f32 %v227_v31, %v182_v5  ;;  %v257_v5 = vmul.f32 %v250_v48, %v3256_v39  ;;  %v258_v31 = vmul.f32 %v254_v36, %v3256_v39  ;;  %v283_v39 = vmul.f32 %v270_v37, %v3274_v44 }
  0xbc   :  { %v284_v32 = vmul.f32 %v274_v14, %v3274_v44  ;;  %v330_v48 = vmul.f32 %v317_v50, %v3276_v45  ;;  %v331_v36 = vmul.f32 %v321_v53, %v3276_v45  ;;  %v349_v44 = vrot.slane %v3430_v2, %v3299_v55 }
  0xbd   :  { %v259_v8 = vadd.f32 %v255_v3, %v231_v29  ;;  %v261_v12 = vadd.f32 %v257_v5, %v233_v6  ;;  %v262_v11 = vadd.f32 %v258_v31, %v234_v43  ;;  %v333_v6 = vmul.f32 %v329_v35, %v3276_v45  ;;  %v3472_v43 = vpop.permute.xlu0 %573 }
  0xbe   :  { %v3432_v7 = vpop.permute.xlu1 %545  ;;  %v288_v56 = vadd.f32 %v284_v32, %v260_v0  ;;  %v357_v5 = vrot.slane %v3442_v62, %v3299_v55  ;;  %v3491_v53 = vsel %vm402_vm2, %v3319_v1, %v3350_v4  ;;  %v3501_v0 = vsel %vm402_vm2, %v3342_v61, %v3382_v38 }
  0xbf   :  { %2882 = vset.pattern.permute.xlu1 %v3032_v63  ;;  %v287_v29 = vadd.f32 %v283_v39, %v259_v8  ;;  %v332_v63 = vmul.f32 %v325_v16, %v3276_v45  ;;  %v289_v14 = vadd.f32 %v285_v40, %v261_v12  ;;  %v290_v3 = vadd.f32 %v286_v33, %v262_v11 }
  0xc0   :  { %v353_v45 = vrot.slane %v3437_v49, %v3299_v55  ;;  %v335_v50 = vadd.f32 %v331_v36, %v288_v56  ;;  %v3506_v16 = vsel %vm402_vm2, %v3382_v38, %v3342_v61  ;;  %v358_v11 = vmul.f32 %v345_v46, %v3282_v47 }
  0xc1   :  { %v334_v31 = vadd.f32 %v330_v48, %v287_v29  ;;  %v336_v8 = vadd.f32 %v332_v63, %v289_v14  ;;  %v337_v2 = vadd.f32 %v333_v6, %v290_v3  ;;  %v3510_v12 = vpop.permute.xlu0 %600  ;;  %v359_v1 = vmul.f32 %v349_v44, %v3282_v47 }
  0xc2   :  { %v3462_v10 = vpop.permute.xlu1 %499  ;;  %v381_v4 = vrot.slane %v3437_v49, %v3310_v60  ;;  %v385_v39 = vrot.slane %v3442_v62, %v3310_v60  ;;  %v360_v32 = vmul.f32 %v353_v45, %v3282_v47  ;;  %v361_v40 = vmul.f32 %v357_v5, %v3282_v47 }
  0xc3   :  { %v420_v61 = vrot.slane %v3491_v53, %v3296_v54  ;;  %v424_v38 = vrot.slane %v3496_v42, %v3296_v54  ;;  %v362_v33 = vadd.f32 %v358_v11, %v334_v31  ;;  %v363_v48 = vadd.f32 %v359_v1, %v335_v50 }
  0xc4   :  { %v428_v36 = vrot.slane %v3501_v0, %v3296_v54  ;;  %v432_v49 = vrot.slane %v3506_v16, %v3296_v54  ;;  %v364_v29 = vadd.f32 %v360_v32, %v336_v8  ;;  %v365_v62 = vadd.f32 %v361_v40, %v337_v2 }
  0xc5   :  { %v386_v56 = vmul.f32 %v373_v51, %v3302_v57  ;;  %v387_v47 = vmul.f32 %v377_v9, %v3302_v57  ;;  %v388_v6 = vmul.f32 %v381_v4, %v3302_v57  ;;  %v389_v14 = vmul.f32 %v385_v39, %v3302_v57  ;;  %v3536_v44 = vpop.permute.xlu0 %604 }
  0xc6   :  { %v3474_v37 = vpop.permute.xlu1 %503  ;;  %v433_v3 = vmul.f32 %v420_v61, %v3307_v59  ;;  %v434_v46 = vmul.f32 %v424_v38, %v3307_v59  ;;  %v435_v31 = vmul.f32 %v428_v36, %v3307_v59  ;;  %v436_v51 = vmul.f32 %v432_v49, %v3307_v59 }
  0xc7   :  { %v390_v45 = vadd.f32 %v386_v56, %v362_v33  ;;  %v391_v5 = vadd.f32 %v387_v47, %v363_v48  ;;  %v392_v9 = vadd.f32 %v388_v6, %v364_v29  ;;  %v393_v50 = vadd.f32 %v389_v14, %v365_v62 }
  0xc8   :  { %v448_v8 = vrot.slane %v3491_v53, %v3299_v55  ;;  %v452_v57 = vrot.slane %v3496_v42, %v3299_v55  ;;  %v476_v2 = vrot.slane %v3491_v53, %v3310_v60  ;;  %v480_v11 = vrot.slane %v3496_v42, %v3310_v60 }
  0xc9   :  { %v456_v1 = vrot.slane %v3501_v0, %v3299_v55  ;;  %v460_v59 = vrot.slane %v3506_v16, %v3299_v55  ;;  %v437_v39 = vadd.f32 %v433_v3, %v390_v45  ;;  %v438_v32 = vadd.f32 %v434_v46, %v391_v5  ;;  %v3578_v49 = vpop.permute.xlu0 %676 }
  0xca   :  { %v3508_v35 = vpop.permute.xlu1 %620  ;;  %v3555_v40 = vsel %vm505_vm3, %v3404_v13, %v3462_v10  ;;  %v3560_v53 = vsel %vm505_vm3, %v3462_v10, %v3404_v13  ;;  %v439_v42 = vadd.f32 %v435_v31, %v392_v9  ;;  %v440_v61 = vadd.f32 %v436_v51, %v393_v50 }
  0xcb   :  { %v3565_v38 = vsel %vm505_vm3, %v3450_v41, %v3474_v37  ;;  %v3570_v33 = vsel %vm505_vm3, %v3474_v37, %v3450_v41  ;;  %v461_v48 = vmul.f32 %v448_v8, %v3332_v15  ;;  %v462_v36 = vmul.f32 %v452_v57, %v3332_v15 }
  0xcc   :  { %v484_v13 = vrot.slane %v3501_v0, %v3310_v60  ;;  %v488_v10 = vrot.slane %v3506_v16, %v3310_v60  ;;  %v463_v29 = vmul.f32 %v456_v1, %v3332_v15  ;;  %v464_v62 = vmul.f32 %v460_v59, %v3332_v15 }
  0xcd   :  { %v523_v41 = vrot.slane %v3555_v40, %v3296_v54  ;;  %v527_v37 = vrot.slane %v3560_v53, %v3296_v54  ;;  %v465_v47 = vadd.f32 %v461_v48, %v437_v39  ;;  %v466_v6 = vadd.f32 %v462_v36, %v438_v32  ;;  %v3592_v45 = vpop.permute.xlu0 %703 }
  0xce   :  { %v531_v0 = vrot.slane %v3565_v38, %v3296_v54  ;;  %v535_v16 = vrot.slane %v3570_v33, %v3296_v54  ;;  %v467_v14 = vadd.f32 %v463_v29, %v439_v42  ;;  %v468_v3 = vadd.f32 %v464_v62, %v440_v61 }
  0xcf   :  { %v3530_v63 = vpop.permute.xlu1 %648  ;;  %v489_v46 = vmul.f32 %v476_v2, %v3389_v58  ;;  %v490_v15 = vmul.f32 %v480_v11, %v3389_v58  ;;  %v491_v5 = vmul.f32 %v484_v13, %v3389_v58  ;;  %v492_v31 = vmul.f32 %v488_v10, %v3389_v58 }
  0xd0   :  { %v536_v51 = vmul.f32 %v523_v41, %v3399_v28  ;;  %v537_v9 = vmul.f32 %v527_v37, %v3399_v28  ;;  %v538_v1 = vmul.f32 %v531_v0, %v3399_v28  ;;  %v539_v2 = vmul.f32 %v535_v16, %v3399_v28 }
  0xd1   :  { %v493_v8 = vadd.f32 %v489_v46, %v465_v47  ;;  %v494_v57 = vadd.f32 %v490_v15, %v466_v6  ;;  %v495_v11 = vadd.f32 %v491_v5, %v467_v14  ;;  %v496_v59 = vadd.f32 %v492_v31, %v468_v3  ;;  %v708_v37 = vpop.permute.xlu0 %707 }
  0xd2   :  { %v551_v39 = vrot.slane %v3555_v40, %v3299_v55  ;;  %v555_v58 = vrot.slane %v3560_v53, %v3299_v55  ;;  %v579_v32 = vrot.slane %v3555_v40, %v3310_v60  ;;  %v583_v42 = vrot.slane %v3560_v53, %v3310_v60 }
  0xd3   :  { %v603_v4 = vpop.permute.xlu1 %602  ;;  %v559_v61 = vrot.slane %v3565_v38, %v3299_v55  ;;  %v563_v28 = vrot.slane %v3570_v33, %v3299_v55  ;;  %v540_v48 = vadd.f32 %v536_v51, %v493_v8  ;;  %v541_v36 = vadd.f32 %v537_v9, %v494_v57 }
  0xd4   :  { %v3616_v13 = vsel %vm608_vm4, %v3510_v12, %v603_v4  ;;  %v3620_v10 = vsel %vm608_vm4, %v603_v4, %v3510_v12  ;;  %v542_v40 = vadd.f32 %v538_v1, %v495_v11  ;;  %v543_v29 = vadd.f32 %v539_v2, %v496_v59 }
  0xd5   :  { %v564_v47 = vmul.f32 %v551_v39, %v3432_v7  ;;  %v565_v6 = vmul.f32 %v555_v58, %v3432_v7  ;;  %v587_v12 = vrot.slane %v3565_v38, %v3310_v60  ;;  %v591_v4 = vrot.slane %v3570_v33, %v3310_v60  ;;  %v3654_v1 = vpop.permute.xlu0 %779 }
  0xd6   :  { %v566_v0 = vmul.f32 %v559_v61, %v3432_v7  ;;  %v567_v16 = vmul.f32 %v563_v28, %v3432_v7  ;;  %v592_v31 = vmul.f32 %v579_v32, %v3472_v43  ;;  %v593_v7 = vmul.f32 %v583_v42, %v3472_v43 }
  0xd7   :  { %v607_v56 = vpop.permute.xlu1 %606  ;;  %v568_v14 = vadd.f32 %v564_v47, %v540_v48  ;;  %v569_v3 = vadd.f32 %v565_v6, %v541_v36  ;;  %v594_v51 = vmul.f32 %v587_v12, %v3472_v43  ;;  %v595_v9 = vmul.f32 %v591_v4, %v3472_v43 }
  0xd8   :  { %v3624_v53 = vsel %vm608_vm4, %v3536_v44, %v607_v56  ;;  %v3628_v62 = vsel %vm608_vm4, %v607_v56, %v3536_v44  ;;  %v626_v44 = vrot.slane %v3616_v13, %v3296_v54  ;;  %v630_v56 = vrot.slane %v3620_v10, %v3296_v54 }
  0xd9   :  { %v634_v46 = vrot.slane %v3624_v53, %v3296_v54  ;;  %v638_v38 = vrot.slane %v3628_v62, %v3296_v54  ;;  %v570_v15 = vadd.f32 %v566_v0, %v542_v40  ;;  %v571_v33 = vadd.f32 %v567_v16, %v543_v29 }
  0xda   :  { %v639_v8 = vmul.f32 %v626_v44, %v3508_v35  ;;  %v640_v57 = vmul.f32 %v630_v56, %v3508_v35  ;;  %v596_v2 = vadd.f32 %v592_v31, %v568_v14  ;;  %v597_v11 = vadd.f32 %v593_v7, %v569_v3  ;;  %v807_v14 = vpop.permute.xlu0 %806 }
  0xdb   :  { %v3598_v50 = vpop.permute.xlu1 %723  ;;  %v641_v59 = vmul.f32 %v634_v46, %v3508_v35  ;;  %v642_v39 = vmul.f32 %v638_v38, %v3508_v35  ;;  %v598_v58 = vadd.f32 %v594_v51, %v570_v15  ;;  %v599_v32 = vadd.f32 %v595_v9, %v571_v33 }
  0xdc   :  { %v654_v42 = vrot.slane %v3616_v13, %v3299_v55  ;;  %v658_v43 = vrot.slane %v3620_v10, %v3299_v55  ;;  %v662_v28 = vrot.slane %v3624_v53, %v3299_v55  ;;  %v666_v48 = vrot.slane %v3628_v62, %v3299_v55 }
  0xdd   :  { %v643_v40 = vadd.f32 %v639_v8, %v596_v2  ;;  %v644_v29 = vadd.f32 %v640_v57, %v597_v11  ;;  %v682_v47 = vrot.slane %v3616_v13, %v3310_v60  ;;  %v686_v6 = vrot.slane %v3620_v10, %v3310_v60 }
  0xde   :  { %v645_v12 = vadd.f32 %v641_v59, %v598_v58  ;;  %v646_v4 = vadd.f32 %v642_v39, %v599_v32  ;;  %v667_v44 = vmul.f32 %v654_v42, %v3530_v63  ;;  %v669_v3 = vmul.f32 %v662_v28, %v3530_v63 }
  0xdf   :  { %v670_v46 = vmul.f32 %v666_v48, %v3530_v63  ;;  %v694_v38 = vrot.slane %v3628_v62, %v3310_v60  ;;  %v695_v9 = vmul.f32 %v682_v47, %v3578_v49 }
  0xe0   :  { %v3630_v41 = vpop.permute.xlu1 %751  ;;  %v671_v15 = vadd.f32 %v667_v44, %v643_v40  ;;  %v673_v7 = vadd.f32 %v669_v3, %v645_v12 }
  0xe1   :  { %v674_v51 = vadd.f32 %v670_v46, %v646_v4  ;;  %v698_v57 = vmul.f32 %v694_v38, %v3578_v49 }
  0xe2   :  { %v699_v39 = vadd.f32 %v695_v9, %v671_v15 }
  0xe3   :  { %v702_v28 = vadd.f32 %v698_v57, %v674_v51 }
  0xe4   :  { %v706_v5 = vpop.permute.xlu1 %705 }
  0xe5   :  { %v3668_v36 = vsel %vm711_vm5, %v3592_v45, %v706_v5  ;;  %v3672_v35 = vsel %vm711_vm5, %v706_v5, %v3592_v45  ;;  %v668_v45 = vmul.f32 %v658_v43, %v3530_v63  ;;  %v696_v63 = vmul.f32 %v686_v6, %v3578_v49  ;;  %v811_v43 = vpop.permute.xlu0 %810 }
  0xe6   :  { %v729_v56 = vrot.slane %v3668_v36, %v3296_v54  ;;  %v733_v13 = vrot.slane %v3672_v35, %v3296_v54  ;;  %v757_v2 = vrot.slane %v3668_v36, %v3299_v55  ;;  %v761_v11 = vrot.slane %v3672_v35, %v3299_v55 }
  0xe7   :  { %v672_v33 = vadd.f32 %v668_v45, %v644_v29  ;;  %v785_v12 = vrot.slane %v3668_v36, %v3310_v60 }
  0xe8   :  { %v710_v61 = vpop.permute.xlu1 %709  ;;  %v742_v8 = vmul.f32 %v729_v56, %v3598_v50  ;;  %v770_v47 = vmul.f32 %v757_v2, %v3630_v41  ;;  %v771_v6 = vmul.f32 %v761_v11, %v3630_v41 }
  0xe9   :  { %v3679_v0 = vsel %vm711_vm5, %v708_v37, %v710_v61  ;;  %v3682_v16 = vsel %vm711_vm5, %v710_v61, %v708_v37  ;;  %v690_v37 = vrot.slane %v3624_v53, %v3310_v60  ;;  %v743_v53 = vmul.f32 %v733_v13, %v3598_v50 }
  0xea   :  { %v737_v5 = vrot.slane %v3679_v0, %v3296_v54  ;;  %v741_v31 = vrot.slane %v3682_v16, %v3296_v54  ;;  %v700_v58 = vadd.f32 %v696_v63, %v672_v33  ;;  %v746_v48 = vadd.f32 %v742_v8, %v699_v39 }
  0xeb   :  { %v697_v62 = vmul.f32 %v690_v37, %v3578_v49  ;;  %v765_v40 = vrot.slane %v3679_v0, %v3299_v55  ;;  %v769_v29 = vrot.slane %v3682_v16, %v3299_v55  ;;  %v793_v3 = vrot.slane %v3679_v0, %v3310_v60 }
  0xec   :  { %v3690_v10 = vpop.permute.xlu1 %826  ;;  %v744_v32 = vmul.f32 %v737_v5, %v3598_v50  ;;  %v745_v42 = vmul.f32 %v741_v31, %v3598_v50  ;;  %v747_v49 = vadd.f32 %v743_v53, %v700_v58  ;;  %v789_v50 = vrot.slane %v3672_v35, %v3310_v60  ;;  %v883_v5 = vpop.permute.xlu0 %882 }
  0xed   :  { %v701_v61 = vadd.f32 %v697_v62, %v673_v7  ;;  %v797_v46 = vrot.slane %v3682_v16, %v3310_v60  ;;  %v774_v38 = vadd.f32 %v770_v47, %v746_v48  ;;  %v772_v35 = vmul.f32 %v765_v40, %v3630_v41 }
  0xee   :  { %v749_v45 = vadd.f32 %v745_v42, %v702_v28  ;;  %v775_v15 = vadd.f32 %v771_v6, %v747_v49  ;;  %v773_v33 = vmul.f32 %v769_v29, %v3630_v41  ;;  %v798_v31 = vmul.f32 %v785_v12, %v3654_v1 }
  0xef   :  { %v748_v44 = vadd.f32 %v744_v32, %v701_v61  ;;  %v800_v2 = vmul.f32 %v793_v3, %v3654_v1  ;;  %v801_v11 = vmul.f32 %v797_v46, %v3654_v1 }
  0xf0   :  { %v777_v51 = vadd.f32 %v773_v33, %v749_v45  ;;  %v802_v62 = vadd.f32 %v798_v31, %v774_v38  ;;  %v910_v48 = vpop.permute.xlu0 %909 }
  0xf1   :  { %v3712_v59 = vpop.permute.xlu1 %854  ;;  %v776_v0 = vadd.f32 %v772_v35, %v748_v44 }
  0xf2   :  { %v805_v28 = vadd.f32 %v801_v11, %v777_v51 }
  0xf3   :  { %v804_v61 = vadd.f32 %v800_v2, %v776_v0 }
  0xf5   :  { %v809_v4 = vpop.permute.xlu1 %808 }
  0xf6   :  { %v815_v56 = vsel %vm814_vm6, %v807_v14, %v809_v4  ;;  %v823_v13 = vsel %vm814_vm6, %v809_v4, %v807_v14  ;;  %v799_v14 = vmul.f32 %v789_v50, %v3654_v1 }
  0xf7   :  { %v832_v37 = vrot.slane %v815_v56, %v3296_v54  ;;  %v836_v36 = vrot.slane %v823_v13, %v3296_v54  ;;  %v860_v39 = vrot.slane %v815_v56, %v3299_v55  ;;  %v864_v58 = vrot.slane %v823_v13, %v3299_v55 }
  0xf8   :  { %v803_v57 = vadd.f32 %v799_v14, %v775_v15  ;;  %v888_v1 = vrot.slane %v815_v56, %v3310_v60  ;;  %v892_v6 = vrot.slane %v823_v13, %v3310_v60  ;;  %v914_v56 = vpop.permute.xlu0 %913 }
  0xf9   :  { %v813_v7 = vpop.permute.xlu1 %812  ;;  %v845_v63 = vmul.f32 %v832_v37, %v3690_v10  ;;  %v846_v8 = vmul.f32 %v836_v36, %v3690_v10  ;;  %v873_v12 = vmul.f32 %v860_v39, %v3712_v59  ;;  %v874_v50 = vmul.f32 %v864_v58, %v3712_v59 }
  0xfa   :  { %v816_v16 = vsel %vm814_vm6, %v811_v43, %v813_v7  ;;  %v824_v9 = vsel %vm814_vm6, %v813_v7, %v811_v43  ;;  %v901_v13 = vmul.f32 %v888_v1, %v883_v5  ;;  %v902_v15 = vmul.f32 %v892_v6, %v883_v5 }
  0xfb   :  { %v840_v53 = vrot.slane %v816_v16, %v3296_v54  ;;  %v844_v41 = vrot.slane %v824_v9, %v3296_v54  ;;  %v849_v49 = vadd.f32 %v845_v63, %v802_v62  ;;  %v850_v40 = vadd.f32 %v846_v8, %v803_v57 }
  0xfc   :  { %v868_v29 = vrot.slane %v816_v16, %v3299_v55  ;;  %v872_v47 = vrot.slane %v824_v9, %v3299_v55  ;;  %v896_v44 = vrot.slane %v816_v16, %v3310_v60  ;;  %v900_v45 = vrot.slane %v824_v9, %v3310_v60 }
  0xfd   :  { %v847_v32 = vmul.f32 %v840_v53, %v3690_v10  ;;  %v848_v42 = vmul.f32 %v844_v41, %v3690_v10  ;;  %v3750_v43 = vpop.permute.xlu1 %929  ;;  %v877_v46 = vadd.f32 %v873_v12, %v849_v49  ;;  %v878_v37 = vadd.f32 %v874_v50, %v850_v40  ;;  %v986_v41 = vpop.permute.xlu0 %985 }
  0xfe   :  { %v875_v36 = vmul.f32 %v868_v29, %v3712_v59  ;;  %v876_v38 = vmul.f32 %v872_v47, %v3712_v59  ;;  %v903_v31 = vmul.f32 %v896_v44, %v883_v5  ;;  %v904_v14 = vmul.f32 %v900_v45, %v883_v5 }
  0xff   :  { %v851_v10 = vadd.f32 %v847_v32, %v804_v61  ;;  %v852_v4 = vadd.f32 %v848_v42, %v805_v28  ;;  %v905_v0 = vadd.f32 %v901_v13, %v877_v46  ;;  %v906_v51 = vadd.f32 %v902_v15, %v878_v37 }
 0x101   :  { %v879_v35 = vadd.f32 %v875_v36, %v851_v10  ;;  %v880_v33 = vadd.f32 %v876_v38, %v852_v4 }
 0x102   :  { %v958_v3 = vpop.permute.xlu1 %957 }
 0x103   :  { %v907_v62 = vadd.f32 %v903_v31, %v879_v35  ;;  %v908_v57 = vadd.f32 %v904_v14, %v880_v33 }
 0x106   :  { %v912_v7 = vpop.permute.xlu1 %911 }
 0x107   :  { %v918_v16 = vsel %vm917_vm7, %v910_v48, %v912_v7  ;;  %v926_v9 = vsel %vm917_vm7, %v912_v7, %v910_v48 }
 0x108   :  { %v935_v63 = vrot.slane %v918_v16, %v3296_v54  ;;  %v939_v8 = vrot.slane %v926_v9, %v3296_v54  ;;  %v963_v59 = vrot.slane %v918_v16, %v3299_v55  ;;  %v967_v53 = vrot.slane %v926_v9, %v3299_v55 }
 0x109   :  { %v991_v5 = vrot.slane %v918_v16, %v3310_v60  ;;  %v995_v2 = vrot.slane %v926_v9, %v3310_v60 }
 0x10a   :  { %v948_v11 = vmul.f32 %v935_v63, %v3750_v43  ;;  %v949_v39 = vmul.f32 %v939_v8, %v3750_v43  ;;  %v976_v58 = vmul.f32 %v963_v59, %v958_v3  ;;  %v977_v32 = vmul.f32 %v967_v53, %v958_v3  ;;  %v916_v42 = vpop.permute.xlu1 %915 }
 0x10b   :  { %v1004_v61 = vmul.f32 %v991_v5, %v986_v41  ;;  %v1005_v28 = vmul.f32 %v995_v2, %v986_v41  ;;  %v919_v48 = vsel %vm917_vm7, %v914_v56, %v916_v42  ;;  %v927_v49 = vsel %vm917_vm7, %v916_v42, %v914_v56 }
 0x10c   :  { %v952_v40 = vadd.f32 %v948_v11, %v905_v0  ;;  %v953_v29 = vadd.f32 %v949_v39, %v906_v51  ;;  %v943_v47 = vrot.slane %v919_v48, %v3296_v54  ;;  %v947_v1 = vrot.slane %v927_v49, %v3296_v54 }
 0x10d   :  { %v971_v6 = vrot.slane %v919_v48, %v3299_v55  ;;  %v975_v12 = vrot.slane %v927_v49, %v3299_v55  ;;  %v999_v50 = vrot.slane %v919_v48, %v3310_v60  ;;  %v1003_v10 = vrot.slane %v927_v49, %v3310_v60 }
 0x10e   :  { %v980_v4 = vadd.f32 %v976_v58, %v952_v40  ;;  %v981_v44 = vadd.f32 %v977_v32, %v953_v29  ;;  %v950_v45 = vmul.f32 %v943_v47, %v3750_v43  ;;  %v951_v46 = vmul.f32 %v947_v1, %v3750_v43  ;;  %v1016_v38 = vpop.permute.xlu1 %1015 }
 0x10f   :  { %v978_v37 = vmul.f32 %v971_v6, %v958_v3  ;;  %v979_v36 = vmul.f32 %v975_v12, %v958_v3  ;;  %v1006_v33 = vmul.f32 %v999_v50, %v986_v41  ;;  %v1007_v31 = vmul.f32 %v1003_v10, %v986_v41  ;;  %v1058_v41 = vpop.permute.xlu0 %1057 }
 0x110   :  { %v1008_v56 = vadd.f32 %v1004_v61, %v980_v4  ;;  %v1009_v13 = vadd.f32 %v1005_v28, %v981_v44  ;;  %v954_v15 = vadd.f32 %v950_v45, %v907_v62  ;;  %v955_v35 = vadd.f32 %v951_v46, %v908_v57 }
 0x111   :  { %v3783_v59 = vsub.s32 3, %v3291_v52 }
 0x112   :  { %v982_v14 = vadd.f32 %v978_v37, %v954_v15  ;;  %v983_v7 = vadd.f32 %v979_v36, %v955_v35  ;;  %v1018_v0 = vadd.f32 %v1016_v38, %v1008_v56  ;;  %v1019_v51 = vadd.f32 %v1016_v38, %v1009_v13  ;;  %v1030_v63 = vpop.permute.xlu1 %1029 }
 0x114   :  { %v1010_v16 = vadd.f32 %v1006_v33, %v982_v14  ;;  %v1011_v9 = vadd.f32 %v1007_v31, %v983_v7  ;;  %2937 = vtanh.f32 %v1018_v0 }
 0x115   :  { %2939 = vtanh.f32 %v1019_v51 }
 0x116   :  { %v1020_v8 = vadd.f32 %v1016_v38, %v1010_v16  ;;  %v1021_v43 = vadd.f32 %v1016_v38, %v1011_v9 }
 0x117   :  { %v1086_v3 = vpop.permute.xlu1 %1085 }
 0x118   :  { %2941 = vtanh.f32 %v1020_v8 }
 0x119   :  { %2943 = vtanh.f32 %v1021_v43 }
 0x11c   :  { %v1114_v11 = vpop.permute.xlu1 %1113 }
 0x11e   :  { %v3785_v53 = vpop.eup %2937 }
 0x11f   :  { %v3787_v62 = vpop.eup %2939  ;;  %v1035_v57 = vrot.slane %v3785_v53, %v3296_v54  ;;  %v1091_v5 = vrot.slane %v3785_v53, %v3310_v60  ;;  %1144 = vrot.lane.b32.xlu1 %v3785_v53, %s2999_s16  ;;  %v1063_v2 = vrot.slane %v3785_v53, %v3299_v55  ;;  %v1119_v52 = vrot.slane %v3785_v53, %v3783_v59 }
 0x120   :  { %v1039_v39 = vrot.slane %v3787_v62, %v3296_v54  ;;  %1146 = vrot.lane.b32.xlu0 %v3787_v62, %s2999_s16  ;;  %v1067_v58 = vrot.slane %v3787_v62, %v3299_v55  ;;  %v1095_v42 = vrot.slane %v3787_v62, %v3310_v60  ;;  %v1123_v28 = vrot.slane %v3787_v62, %v3783_v59 }
 0x121   :  { %v1048_v32 = vmul.f32 %v1035_v57, %v1030_v63  ;;  %v1076_v61 = vmul.f32 %v1063_v2, %v1058_v41  ;;  %v1104_v40 = vmul.f32 %v1091_v5, %v1086_v3  ;;  %v1132_v47 = vmul.f32 %v1119_v52, %v1114_v11 }
 0x122   :  { %v3809_v48 = vpop.eup %2941  ;;  %v1049_v49 = vmul.f32 %v1039_v39, %v1030_v63  ;;  %v1077_v29 = vmul.f32 %v1067_v58, %v1058_v41  ;;  %v1105_v36 = vmul.f32 %v1095_v42, %v1086_v3  ;;  %v1133_v33 = vmul.f32 %v1123_v28, %v1114_v11 }
 0x123   :  { %v3811_v1 = vpop.eup %2943  ;;  %v1043_v6 = vrot.slane %v3809_v48, %v3296_v54  ;;  %v1099_v12 = vrot.slane %v3809_v48, %v3310_v60  ;;  %v1071_v50 = vrot.slane %v3809_v48, %v3299_v55  ;;  %v1080_v10 = vadd.f32 %v1076_v61, %v1048_v32  ;;  %1148 = vrot.lane.b32.xlu1 %v3809_v48, %s2999_s16 }
 0x124   :  { %v1047_v4 = vrot.slane %v3811_v1, %v3296_v54  ;;  %v1103_v44 = vrot.slane %v3811_v1, %v3310_v60  ;;  %v1075_v45 = vrot.slane %v3811_v1, %v3299_v55  ;;  %v1081_v46 = vadd.f32 %v1077_v29, %v1049_v49  ;;  %1150 = vrot.lane.b32.xlu0 %v3811_v1, %s2999_s16 }
 0x125   :  { %v1050_v37 = vmul.f32 %v1043_v6, %v1030_v63  ;;  %v1078_v38 = vmul.f32 %v1071_v50, %v1058_v41  ;;  %v1127_v56 = vrot.slane %v3809_v48, %v3783_v59  ;;  %v1131_v35 = vrot.slane %v3811_v1, %v3783_v59 }
 0x126   :  { %v1051_v13 = vmul.f32 %v1047_v4, %v1030_v63  ;;  %v1079_v15 = vmul.f32 %v1075_v45, %v1058_v41  ;;  %v1106_v31 = vmul.f32 %v1099_v12, %v1086_v3  ;;  %v1108_v7 = vadd.f32 %v1104_v40, %v1080_v10 }
 0x127   :  { %v1082_v14 = vadd.f32 %v1078_v38, %v1050_v37  ;;  %v1109_v0 = vadd.f32 %v1105_v36, %v1081_v46  ;;  %1276 = vrot.lane.b32.xlu1 %v3787_v62, %s3002_s0  ;;  %v1107_v51 = vmul.f32 %v1103_v44, %v1086_v3  ;;  %v1134_v8 = vmul.f32 %v1127_v56, %v1114_v11  ;;  %v3858_v3 = vld [vmem:[%s4407_s3] sm:$0x1f] }
 0x128   :  { %v1083_v16 = vadd.f32 %v1079_v15, %v1051_v13  ;;  %1274 = vrot.lane.b32.xlu0 %v3785_v53, %s3002_s0  ;;  %v3837_v63 = vadd.f32 %v1132_v47, %v1108_v7  ;;  %v1135_v57 = vmul.f32 %v1131_v35, %v1114_v11  ;;  %v4421_v28 = vmov 8  }
 0x129   :  { %v1110_v9 = vadd.f32 %v1106_v31, %v1082_v14  ;;  %v3839_v43 = vadd.f32 %v1133_v33, %v1109_v0 }
 0x12a   :  { %v1111_v41 = vadd.f32 %v1107_v51, %v1083_v16 }
 0x12b   :  { %v3841_v5 = vadd.f32 %v1134_v8, %v1110_v9  ;;  %1280 = vrot.lane.b32.xlu1 %v3811_v1, %s3002_s0  ;;  %v3037_v9 = vmov 35  }
 0x12c   :  { %v3845_v2 = vadd.f32 %v1135_v57, %v1111_v41  ;;  %1278 = vrot.lane.b32.xlu0 %v3809_v48, %s3002_s0 }
 0x12f   :  { %1404 = vrot.lane.b32.xlu1 %v3785_v53, %s3006_s19 }
 0x130   :  { %1408 = vrot.lane.b32.xlu0 %v3809_v48, %s3006_s19 }
 0x133   :  { %1406 = vrot.lane.b32.xlu1 %v3787_v62, %s3006_s19 }
 0x134   :  { %1479 = vperm.xlu0 %2881, %v3858_v3  }
 0x137   :  { %1410 = vrot.lane.b32.xlu1 %v3811_v1, %s3006_s19 }
 0x138   :  { %2884 = vset.pattern.permute.xlu0 %v3014_v20  ;;  %v3033_v20 = vmov 31  }
 0x139   :  { %1581 = vperm.xlu0 %2884, %v3858_v3  }
 0x13b   :  { %1507 = vperm.xlu1 %2882, %v3858_v3  }
 0x13d   :  { %1538 = vrot.lane.b32.xlu0 %v3809_v48, %s3009_s20 }
 0x13e   :  { %2885 = vset.pattern.permute.xlu0 %v3010_v17  ;;  %v3034_v17 = vmov 32  }
 0x13f   :  { %2883 = vset.pattern.permute.xlu1 %v3011_v18  ;;  %v3910_v18 = vpop.permute.xlu1 %1191 }
 0x140   :  { %1553 = vperm.xlu1 %2883, %v3858_v3  }
 0x141   :  { %1609 = vperm.xlu0 %2885, %v3858_v3  }
 0x144   :  { %1534 = vrot.lane.b32.xlu1 %v3785_v53, %s3009_s20 }
 0x145   :  { %2888 = vset.pattern.permute.xlu0 %v3018_v23  ;;  %2886 = vset.pattern.permute.xlu1 %v3033_v20  ;;  %v4419_v23 = vmov 0  }
 0x146   :  { %1711 = vperm.xlu0 %2888, %v3858_v3  }
 0x148   :  { %1536 = vrot.lane.b32.xlu1 %v3787_v62, %s3009_s20 }
 0x14a   :  { %1668 = vrot.lane.b32.xlu0 %v3809_v48, %s3012_s21 }
 0x14b   :  { %2889 = vset.pattern.permute.xlu0 %v3013_v19  ;;  %v3035_v19 = vmov 33  }
 0x14c   :  { %1540 = vrot.lane.b32.xlu1 %v3811_v1, %s3009_s20 }
 0x14e   :  { %1739 = vperm.xlu0 %2889, %v3858_v3  }
 0x150   :  { %1637 = vperm.xlu1 %2886, %v3858_v3  }
 0x152   :  { %2892 = vset.pattern.permute.xlu0 %v3023_v26 }
 0x153   :  { %1841 = vperm.xlu0 %2892, %v3858_v3  }
 0x154   :  { %2887 = vset.pattern.permute.xlu1 %v3015_v21  ;;  %v3919_v21 = vpop.permute.xlu1 %1219 }
 0x155   :  { %1683 = vperm.xlu1 %2887, %v3858_v3  }
 0x157   :  { %1798 = vrot.lane.b32.xlu0 %v3809_v48, %s3016_s22 }
 0x158   :  { %2893 = vset.pattern.permute.xlu0 %v3017_v22  ;;  %v3924_v22 = vpop.permute.xlu1 %1293 }
 0x159   :  { %1664 = vrot.lane.b32.xlu1 %v3785_v53, %s3012_s21 }
 0x15a   :  { %2890 = vset.pattern.permute.xlu1 %v3034_v17 }
 0x15b   :  { %1869 = vperm.xlu0 %2893, %v3858_v3  }
 0x15c   :  { %v3930_v26 = vpop.permute.xlu1 %1321 }
 0x15d   :  { %1666 = vrot.lane.b32.xlu1 %v3787_v62, %s3012_s21 }
 0x15f   :  { %2896 = vset.pattern.permute.xlu0 %v3026_v30  ;;  %v3036_v30 = vmov 34  }
 0x160   :  { %1971 = vperm.xlu0 %2896, %v3858_v3  }
 0x161   :  { %1670 = vrot.lane.b32.xlu1 %v3811_v1, %s3012_s21 }
 0x164   :  { %1928 = vrot.lane.b32.xlu0 %v3809_v48, %s3019_s23 }
 0x165   :  { %1767 = vperm.xlu1 %2890, %v3858_v3   ;;  %2897 = vset.pattern.permute.xlu0 %v3020_v24  ;;  %v1164_v24 = vpop.permute.xlu0 %1163 }
 0x168   :  { %1999 = vperm.xlu0 %2897, %v3858_v3  }
 0x169   :  { %2891 = vset.pattern.permute.xlu1 %v3021_v25  ;;  %v4420_v25 = vmov 7  }
 0x16a   :  { %1813 = vperm.xlu1 %2891, %v3858_v3  }
 0x16c   :  { %2900 = vset.pattern.permute.xlu0 %v3028_v34  ;;  %v3936_v34 = vpop.permute.xlu1 %1377 }
 0x16d   :  { %2101 = vperm.xlu0 %2900, %v3858_v3  }
 0x16e   :  { %1794 = vrot.lane.b32.xlu1 %v3785_v53, %s3016_s22 }
 0x16f   :  { %2894 = vset.pattern.permute.xlu1 %v3035_v19 }
 0x170   :  { %v3944_v52 = vpop.permute.xlu1 %1423 }
 0x171   :  { %2058 = vrot.lane.b32.xlu0 %v3809_v48, %s3022_s24 }
 0x172   :  { %1796 = vrot.lane.b32.xlu1 %v3787_v62, %s3016_s22  ;;  %2901 = vset.pattern.permute.xlu0 %v3024_v27  ;;  %v3932_v27 = vpop.permute.xlu0 %1247 }
 0x175   :  { %2129 = vperm.xlu0 %2901, %v3858_v3  }
 0x176   :  { %1800 = vrot.lane.b32.xlu1 %v3811_v1, %s3016_s22  ;;  %v3938_v11 = vpop.permute.xlu0 %1349 }
 0x179   :  { %2934 = vset.pattern.permute.xlu0 %v4419_v23 }
 0x17a   :  { %1897 = vperm.xlu1 %2894, %v3858_v3   ;;  %v3946_v39 = vpop.permute.xlu0 %1451 }
 0x17e   :  { %2895 = vset.pattern.permute.xlu1 %v4420_v25 }
 0x17f   :  { %1943 = vperm.xlu1 %2895, %v3858_v3  }
 0x183   :  { %1924 = vrot.lane.b32.xlu1 %v3785_v53, %s3019_s23 }
 0x184   :  { %2898 = vset.pattern.permute.xlu1 %v3036_v30 }
 0x187   :  { %1926 = vrot.lane.b32.xlu1 %v3787_v62, %s3019_s23 }
 0x18b   :  { %1930 = vrot.lane.b32.xlu1 %v3811_v1, %s3019_s23 }
 0x18f   :  { %2027 = vperm.xlu1 %2898, %v3858_v3  }
 0x191   :  { %v1145_v58 = vpop.permute.xlu1 %1144 }
 0x192   :  { %v1147_v32 = vpop.permute.xlu0 %1146 }
 0x193   :  { %v1152_v42 = vsel %vm196_vm0, %v1145_v58, %v1147_v32  ;;  %v1160_v61 = vsel %vm196_vm0, %v1147_v32, %v1145_v58  ;;  %2899 = vset.pattern.permute.xlu1 %v4421_v28 }
 0x194   :  { %v1169_v48 = vrot.slane %v1152_v42, %v3296_v54  ;;  %v1173_v49 = vrot.slane %v1160_v61, %v3296_v54  ;;  %v1197_v40 = vrot.slane %v1152_v42, %v3299_v55  ;;  %v1201_v29 = vrot.slane %v1160_v61, %v3299_v55  ;;  %2073 = vperm.xlu1 %2899, %v3858_v3  }
 0x195   :  { %v1225_v47 = vrot.slane %v1152_v42, %v3310_v60  ;;  %v1229_v6 = vrot.slane %v1160_v61, %v3310_v60  ;;  %v1253_v12 = vrot.slane %v1152_v42, %v3783_v59  ;;  %v1257_v50 = vrot.slane %v1160_v61, %v3783_v59  ;;  %v1149_v10 = vpop.permute.xlu1 %1148 }
 0x196   :  { %v1182_v4 = vmul.f32 %v1169_v48, %v1164_v24  ;;  %v1183_v44 = vmul.f32 %v1173_v49, %v1164_v24  ;;  %v1210_v45 = vmul.f32 %v1197_v40, %v3910_v18  ;;  %v1211_v46 = vmul.f32 %v1201_v29, %v3910_v18  ;;  %v1151_v37 = vpop.permute.xlu0 %1150 }
 0x197   :  { %v1238_v36 = vmul.f32 %v1225_v47, %v3919_v21  ;;  %v1239_v38 = vmul.f32 %v1229_v6, %v3919_v21  ;;  %v1266_v56 = vmul.f32 %v1253_v12, %v3932_v27  ;;  %v1267_v13 = vmul.f32 %v1257_v50, %v3932_v27 }
 0x198   :  { %v1186_v15 = vadd.f32 %v1182_v4, %v3837_v63  ;;  %v1187_v35 = vadd.f32 %v1183_v44, %v3839_v43  ;;  %v1153_v33 = vsel %vm196_vm0, %v1149_v10, %v1151_v37  ;;  %v1161_v31 = vsel %vm196_vm0, %v1151_v37, %v1149_v10  ;;  %2054 = vrot.lane.b32.xlu1 %v3785_v53, %s3022_s24 }
 0x199   :  { %v1177_v14 = vrot.slane %v1153_v33, %v3296_v54  ;;  %v1181_v7 = vrot.slane %v1161_v31, %v3296_v54  ;;  %v1205_v0 = vrot.slane %v1153_v33, %v3299_v55  ;;  %v1209_v51 = vrot.slane %v1161_v31, %v3299_v55  ;;  %v1277_v16 = vpop.permute.xlu1 %1276  ;;  %2902 = vset.pattern.permute.xlu1 %v3037_v9 }
 0x19a   :  { %v1214_v8 = vadd.f32 %v1210_v45, %v1186_v15  ;;  %v1215_v63 = vadd.f32 %v1211_v46, %v1187_v35  ;;  %v1233_v43 = vrot.slane %v1153_v33, %v3310_v60  ;;  %v1237_v41 = vrot.slane %v1161_v31, %v3310_v60  ;;  %v1275_v19 = vpop.permute.xlu0 %1274 }
 0x19b   :  { %v1184_v57 = vmul.f32 %v1177_v14, %v1164_v24  ;;  %v1185_v20 = vmul.f32 %v1181_v7, %v1164_v24  ;;  %v1212_v53 = vmul.f32 %v1205_v0, %v3910_v18  ;;  %v1213_v17 = vmul.f32 %v1209_v51, %v3910_v18 }
 0x19c   :  { %v1242_v25 = vadd.f32 %v1238_v36, %v1214_v8  ;;  %v1243_v30 = vadd.f32 %v1239_v38, %v1215_v63  ;;  %v1240_v58 = vmul.f32 %v1233_v43, %v3919_v21  ;;  %v1241_v32 = vmul.f32 %v1237_v41, %v3919_v21  ;;  %2056 = vrot.lane.b32.xlu1 %v3787_v62, %s3022_s24  ;;  %v2184_v41 = vld [vmem:[%s4408_s4] sm:$0x1f] }
 0x19d   :  { %v1188_v42 = vadd.f32 %v1184_v57, %v3841_v5  ;;  %v1189_v61 = vadd.f32 %v1185_v20, %v3845_v2  ;;  %v1261_v24 = vrot.slane %v1153_v33, %v3783_v59  ;;  %v1265_v28 = vrot.slane %v1161_v31, %v3783_v59  ;;  %v1281_v48 = vpop.permute.xlu1 %1280 }
 0x19e   :  { %v1270_v18 = vadd.f32 %v1266_v56, %v1242_v25  ;;  %v1271_v49 = vadd.f32 %v1267_v13, %v1243_v30  ;;  %v1282_v40 = vsel %vm299_vm1, %v1275_v19, %v1277_v16  ;;  %v1290_v29 = vsel %vm299_vm1, %v1277_v16, %v1275_v19  ;;  %v1279_v36 = vpop.permute.xlu0 %1278 }
 0x19f   :  { %v1216_v47 = vadd.f32 %v1212_v53, %v1188_v42  ;;  %v1217_v21 = vadd.f32 %v1213_v17, %v1189_v61  ;;  %v1268_v6 = vmul.f32 %v1261_v24, %v3932_v27  ;;  %v1269_v62 = vmul.f32 %v1265_v28, %v3932_v27 }
 0x1a0   :  { %v1299_v5 = vrot.slane %v1282_v40, %v3296_v54  ;;  %v1303_v2 = vrot.slane %v1290_v29, %v3296_v54  ;;  %v1327_v12 = vrot.slane %v1282_v40, %v3299_v55  ;;  %v1331_v50 = vrot.slane %v1290_v29, %v3299_v55  ;;  %2060 = vrot.lane.b32.xlu1 %v3811_v1, %s3022_s24 }
 0x1a1   :  { %v1244_v10 = vadd.f32 %v1240_v58, %v1216_v47  ;;  %v1245_v4 = vadd.f32 %v1241_v32, %v1217_v21  ;;  %v1355_v44 = vrot.slane %v1282_v40, %v3310_v60  ;;  %v1359_v45 = vrot.slane %v1290_v29, %v3310_v60  ;;  %v1405_v46 = vpop.permute.xlu1 %1404 }
 0x1a2   :  { %v1312_v27 = vmul.f32 %v1299_v5, %v3924_v22  ;;  %v1313_v37 = vmul.f32 %v1303_v2, %v3924_v22  ;;  %v1340_v13 = vmul.f32 %v1327_v12, %v3930_v26  ;;  %v1341_v15 = vmul.f32 %v1331_v50, %v3930_v26  ;;  %v1409_v21 = vpop.permute.xlu0 %1408 }
 0x1a3   :  { %v1272_v38 = vadd.f32 %v1268_v6, %v1244_v10  ;;  %v1273_v56 = vadd.f32 %v1269_v62, %v1245_v4  ;;  %v1383_v33 = vrot.slane %v1282_v40, %v3783_v59  ;;  %v1387_v31 = vrot.slane %v1290_v29, %v3783_v59 }
 0x1a4   :  { %v1316_v35 = vadd.f32 %v1312_v27, %v1270_v18  ;;  %v1317_v1 = vadd.f32 %v1313_v37, %v1271_v49  ;;  %2157 = vperm.xlu1 %2902, %v3858_v3   ;;  %v1368_v14 = vmul.f32 %v1355_v44, %v3938_v11  ;;  %v1369_v7 = vmul.f32 %v1359_v45, %v3938_v11 }
 0x1a5   :  { %v1283_v0 = vsel %vm299_vm1, %v1279_v36, %v1281_v48  ;;  %v1291_v51 = vsel %vm299_vm1, %v1281_v48, %v1279_v36  ;;  %v1407_v16 = vpop.permute.xlu1 %1406  ;;  %v1396_v63 = vmul.f32 %v1383_v33, %v3936_v34  ;;  %v1397_v43 = vmul.f32 %v1387_v31, %v3936_v34 }
 0x1a6   :  { %v1344_v9 = vadd.f32 %v1340_v13, %v1316_v35  ;;  %v1345_v8 = vadd.f32 %v1341_v15, %v1317_v1  ;;  %v1307_v3 = vrot.slane %v1283_v0, %v3296_v54  ;;  %v1311_v57 = vrot.slane %v1291_v51, %v3296_v54 }
 0x1a7   :  { %v1335_v20 = vrot.slane %v1283_v0, %v3299_v55  ;;  %v1339_v53 = vrot.slane %v1291_v51, %v3299_v55  ;;  %v1363_v25 = vrot.slane %v1283_v0, %v3310_v60  ;;  %v1367_v30 = vrot.slane %v1291_v51, %v3310_v60 }
 0x1a8   :  { %v1372_v17 = vadd.f32 %v1368_v14, %v1344_v9  ;;  %v1373_v19 = vadd.f32 %v1369_v7, %v1345_v8  ;;  %2903 = vset.pattern.permute.xlu1 %v4419_v23  ;;  %v1314_v58 = vmul.f32 %v1307_v3, %v3924_v22  ;;  %v1315_v32 = vmul.f32 %v1311_v57, %v3924_v22 }
 0x1a9   :  { %2187 = vperm.xlu1 %2903, %v2184_v41   ;;  %v1342_v24 = vmul.f32 %v1335_v20, %v3930_v26  ;;  %v1343_v28 = vmul.f32 %v1339_v53, %v3930_v26  ;;  %v1411_v48 = vpop.permute.xlu1 %1410  ;;  %v1391_v40 = vrot.slane %v1283_v0, %v3783_v59  ;;  %v1395_v29 = vrot.slane %v1291_v51, %v3783_v59 }
 0x1aa   :  { %v1400_v42 = vadd.f32 %v1396_v63, %v1372_v17  ;;  %v1401_v61 = vadd.f32 %v1397_v43, %v1373_v19  ;;  %v1318_v18 = vadd.f32 %v1314_v58, %v1272_v38  ;;  %v1319_v49 = vadd.f32 %v1315_v32, %v1273_v56 }
 0x1ab   :  { %v1370_v23 = vmul.f32 %v1363_v25, %v3938_v11  ;;  %v1371_v47 = vmul.f32 %v1367_v30, %v3938_v11  ;;  %v1412_v22 = vsel %vm402_vm2, %v1405_v46, %v1407_v16  ;;  %v1420_v6 = vsel %vm402_vm2, %v1407_v16, %v1405_v46 }
 0x1ac   :  { %v1346_v62 = vadd.f32 %v1342_v24, %v1318_v18  ;;  %v1347_v5 = vadd.f32 %v1343_v28, %v1319_v49  ;;  %v1413_v26 = vsel %vm402_vm2, %v1409_v21, %v1411_v48  ;;  %v1421_v2 = vsel %vm402_vm2, %v1411_v48, %v1409_v21 }
 0x1ad   :  { %v1398_v12 = vmul.f32 %v1391_v40, %v3936_v34  ;;  %v1399_v50 = vmul.f32 %v1395_v29, %v3936_v34  ;;  %v1429_v10 = vrot.slane %v1412_v22, %v3296_v54  ;;  %v1433_v4 = vrot.slane %v1420_v6, %v3296_v54 }
 0x1ae   :  { %v1374_v11 = vadd.f32 %v1370_v23, %v1346_v62  ;;  %v1375_v44 = vadd.f32 %v1371_v47, %v1347_v5  ;;  %v1457_v45 = vrot.slane %v1412_v22, %v3299_v55  ;;  %v1461_v46 = vrot.slane %v1420_v6, %v3299_v55 }
 0x1af   :  { %v1442_v27 = vmul.f32 %v1429_v10, %v3944_v52  ;;  %v1443_v37 = vmul.f32 %v1433_v4, %v3944_v52  ;;  %v1485_v56 = vrot.slane %v1412_v22, %v3310_v60  ;;  %v1489_v34 = vrot.slane %v1420_v6, %v3310_v60 }
 0x1b0   :  { %v1402_v36 = vadd.f32 %v1398_v12, %v1374_v11  ;;  %v1403_v38 = vadd.f32 %v1399_v50, %v1375_v44  ;;  %v1437_v35 = vrot.slane %v1413_v26, %v3296_v54  ;;  %v1441_v1 = vrot.slane %v1421_v2, %v3296_v54 }
 0x1b1   :  { %v1446_v13 = vadd.f32 %v1442_v27, %v1400_v42  ;;  %v1447_v15 = vadd.f32 %v1443_v37, %v1401_v61  ;;  %v1470_v33 = vmul.f32 %v1457_v45, %v3946_v39  ;;  %v1471_v31 = vmul.f32 %v1461_v46, %v3946_v39 }
 0x1b2   :  { %v1465_v14 = vrot.slane %v1413_v26, %v3299_v55  ;;  %v1469_v7 = vrot.slane %v1421_v2, %v3299_v55  ;;  %v1444_v51 = vmul.f32 %v1437_v35, %v3944_v52  ;;  %v1445_v16 = vmul.f32 %v1441_v1, %v3944_v52 }
 0x1b3   :  { %v1480_v0 = vpop.permute.xlu0 %1479  ;;  %v1493_v9 = vrot.slane %v1413_v26, %v3310_v60  ;;  %v1497_v8 = vrot.slane %v1421_v2, %v3310_v60  ;;  %v1474_v41 = vadd.f32 %v1470_v33, %v1446_v13  ;;  %v1475_v3 = vadd.f32 %v1471_v31, %v1447_v15 }
 0x1b4   :  { %v1472_v63 = vmul.f32 %v1465_v14, %v3946_v39  ;;  %v1473_v43 = vmul.f32 %v1469_v7, %v3946_v39  ;;  %v1448_v57 = vadd.f32 %v1444_v51, %v1402_v36  ;;  %v1449_v20 = vadd.f32 %v1445_v16, %v1403_v38 }
 0x1b5   :  { %v1498_v53 = vmul.f32 %v1485_v56, %v1480_v0  ;;  %v1499_v17 = vmul.f32 %v1489_v34, %v1480_v0  ;;  %v1500_v19 = vmul.f32 %v1493_v9, %v1480_v0  ;;  %v1501_v25 = vmul.f32 %v1497_v8, %v1480_v0 }
 0x1b6   :  { %v1476_v30 = vadd.f32 %v1472_v63, %v1448_v57  ;;  %v1477_v58 = vadd.f32 %v1473_v43, %v1449_v20  ;;  %v1513_v42 = vrot.slane %v1412_v22, %v3783_v59  ;;  %v1517_v61 = vrot.slane %v1420_v6, %v3783_v59 }
 0x1b7   :  { %v1502_v32 = vadd.f32 %v1498_v53, %v1474_v41  ;;  %v1503_v52 = vadd.f32 %v1499_v17, %v1475_v3  ;;  %v1521_v24 = vrot.slane %v1413_v26, %v3783_v59  ;;  %v1525_v39 = vrot.slane %v1421_v2, %v3783_v59 }
 0x1b8   :  { %v1504_v28 = vadd.f32 %v1500_v19, %v1476_v30  ;;  %v1505_v48 = vadd.f32 %v1501_v25, %v1477_v58  ;;  %v1582_v10 = vpop.permute.xlu0 %1581 }
 0x1ba   :  { %v1508_v18 = vpop.permute.xlu1 %1507 }
 0x1bb   :  { %v1526_v49 = vmul.f32 %v1513_v42, %v1508_v18  ;;  %v1527_v40 = vmul.f32 %v1517_v61, %v1508_v18  ;;  %v1528_v29 = vmul.f32 %v1521_v24, %v1508_v18  ;;  %v1529_v23 = vmul.f32 %v1525_v39, %v1508_v18 }
 0x1bc   :  { %v1539_v26 = vpop.permute.xlu0 %1538 }
 0x1bd   :  { %v1530_v47 = vadd.f32 %v1526_v49, %v1502_v32  ;;  %v1531_v21 = vadd.f32 %v1527_v40, %v1503_v52  ;;  %v1532_v62 = vadd.f32 %v1528_v29, %v1504_v28  ;;  %v1533_v5 = vadd.f32 %v1529_v23, %v1505_v48 }
 0x1bf   :  { %v1554_v12 = vpop.permute.xlu1 %1553 }
 0x1c0   :  { %v1610_v11 = vpop.permute.xlu0 %1609 }
 0x1c3   :  { %v1535_v50 = vpop.permute.xlu1 %1534 }
 0x1c5   :  { %v4080_v15 = vpop.permute.xlu0 %1711 }
 0x1c7   :  { %v1537_v22 = vpop.permute.xlu1 %1536 }
 0x1c8   :  { %v1542_v44 = vsel %vm505_vm3, %v1535_v50, %v1537_v22  ;;  %v1550_v45 = vsel %vm505_vm3, %v1537_v22, %v1535_v50 }
 0x1c9   :  { %v1559_v36 = vrot.slane %v1542_v44, %v3296_v54  ;;  %v1563_v38 = vrot.slane %v1550_v45, %v3296_v54  ;;  %v1587_v7 = vrot.slane %v1542_v44, %v3299_v55  ;;  %v1591_v0 = vrot.slane %v1550_v45, %v3299_v55  ;;  %v1669_v63 = vpop.permute.xlu0 %1668 }
 0x1ca   :  { %v1615_v43 = vrot.slane %v1542_v44, %v3310_v60  ;;  %v1619_v41 = vrot.slane %v1550_v45, %v3310_v60  ;;  %v1643_v24 = vrot.slane %v1542_v44, %v3783_v59  ;;  %v1647_v39 = vrot.slane %v1550_v45, %v3783_v59 }
 0x1cb   :  { %v1541_v6 = vpop.permute.xlu1 %1540  ;;  %v1572_v35 = vmul.f32 %v1559_v36, %v1554_v12  ;;  %v1573_v1 = vmul.f32 %v1563_v38, %v1554_v12  ;;  %v1600_v53 = vmul.f32 %v1587_v7, %v1582_v10  ;;  %v1601_v17 = vmul.f32 %v1591_v0, %v1582_v10 }
 0x1cc   :  { %v4069_v27 = vsel %vm505_vm3, %v1539_v26, %v1541_v6  ;;  %v4072_v37 = vsel %vm505_vm3, %v1541_v6, %v1539_v26  ;;  %v1628_v28 = vmul.f32 %v1615_v43, %v1610_v11  ;;  %v1629_v48 = vmul.f32 %v1619_v41, %v1610_v11 }
 0x1cd   :  { %v1567_v56 = vrot.slane %v4069_v27, %v3296_v54  ;;  %v1571_v34 = vrot.slane %v4072_v37, %v3296_v54  ;;  %v1595_v51 = vrot.slane %v4069_v27, %v3299_v55  ;;  %v1599_v16 = vrot.slane %v4072_v37, %v3299_v55  ;;  %v1740_v40 = vpop.permute.xlu0 %1739 }
 0x1ce   :  { %v1576_v9 = vadd.f32 %v1572_v35, %v1530_v47  ;;  %v1577_v8 = vadd.f32 %v1573_v1, %v1531_v21  ;;  %v1623_v19 = vrot.slane %v4069_v27, %v3310_v60  ;;  %v1627_v25 = vrot.slane %v4072_v37, %v3310_v60 }
 0x1cf   :  { %v4062_v4 = vpop.permute.xlu1 %1637  ;;  %v1574_v33 = vmul.f32 %v1567_v56, %v1554_v12  ;;  %v1575_v31 = vmul.f32 %v1571_v34, %v1554_v12  ;;  %v1602_v30 = vmul.f32 %v1595_v51, %v1582_v10  ;;  %v1603_v58 = vmul.f32 %v1599_v16, %v1582_v10 }
 0x1d0   :  { %v1604_v42 = vadd.f32 %v1600_v53, %v1576_v9  ;;  %v1605_v61 = vadd.f32 %v1601_v17, %v1577_v8  ;;  %v1631_v12 = vmul.f32 %v1627_v25, %v1610_v11  ;;  %v1651_v50 = vrot.slane %v4069_v27, %v3783_v59 }
 0x1d1   :  { %v1578_v3 = vadd.f32 %v1574_v33, %v1532_v62  ;;  %v1579_v57 = vadd.f32 %v1575_v31, %v1533_v5  ;;  %v1630_v5 = vmul.f32 %v1623_v19, %v1610_v11  ;;  %v1655_v22 = vrot.slane %v4072_v37, %v3783_v59 }
 0x1d2   :  { %v1633_v10 = vadd.f32 %v1629_v48, %v1605_v61  ;;  %v1632_v6 = vadd.f32 %v1628_v28, %v1604_v42  ;;  %v1656_v26 = vmul.f32 %v1643_v24, %v4062_v4  ;;  %v1657_v44 = vmul.f32 %v1647_v39, %v4062_v4  ;;  %v4130_v1 = vpop.permute.xlu0 %1841 }
 0x1d3   :  { %v1606_v18 = vadd.f32 %v1602_v30, %v1578_v3  ;;  %v1607_v49 = vadd.f32 %v1603_v58, %v1579_v57  ;;  %v1658_v37 = vmul.f32 %v1651_v50, %v4062_v4  ;;  %v1659_v34 = vmul.f32 %v1655_v22, %v4062_v4 }
 0x1d4   :  { %v4064_v2 = vpop.permute.xlu1 %1683  ;;  %v1661_v35 = vadd.f32 %v1657_v44, %v1633_v10 }
 0x1d5   :  { %v1634_v36 = vadd.f32 %v1630_v5, %v1606_v18  ;;  %v1635_v11 = vadd.f32 %v1631_v12, %v1607_v49 }
 0x1d6   :  { %v1799_v25 = vpop.permute.xlu0 %1798 }
 0x1d7   :  { %v1662_v0 = vadd.f32 %v1658_v37, %v1634_v36  ;;  %v1663_v51 = vadd.f32 %v1659_v34, %v1635_v11 }
 0x1d8   :  { %v1665_v46 = vpop.permute.xlu1 %1664 }
 0x1da   :  { %v1870_v36 = vpop.permute.xlu0 %1869 }
 0x1dc   :  { %v1667_v13 = vpop.permute.xlu1 %1666 }
 0x1dd   :  { %v4097_v32 = vsel %vm608_vm4, %v1665_v46, %v1667_v13  ;;  %v4100_v52 = vsel %vm608_vm4, %v1667_v13, %v1665_v46  ;;  %v1660_v13 = vadd.f32 %v1656_v26, %v1632_v6 }
 0x1de   :  { %v1689_v29 = vrot.slane %v4097_v32, %v3296_v54  ;;  %v1693_v23 = vrot.slane %v4100_v52, %v3296_v54  ;;  %v1717_v33 = vrot.slane %v4097_v32, %v3299_v55  ;;  %v1721_v31 = vrot.slane %v4100_v52, %v3299_v55 }
 0x1df   :  { %v1745_v4 = vrot.slane %v4097_v32, %v3310_v60  ;;  %v1773_v42 = vrot.slane %v4097_v32, %v3783_v59  ;;  %v1777_v61 = vrot.slane %v4100_v52, %v3783_v59 }
 0x1e0   :  { %v1671_v14 = vpop.permute.xlu1 %1670  ;;  %v1702_v38 = vmul.f32 %v1689_v29, %v4064_v2  ;;  %v1703_v27 = vmul.f32 %v1693_v23, %v4064_v2  ;;  %v1730_v3 = vmul.f32 %v1717_v33, %v4080_v15 }
 0x1e1   :  { %v4109_v47 = vsel %vm608_vm4, %v1669_v63, %v1671_v14  ;;  %v4112_v21 = vsel %vm608_vm4, %v1671_v14, %v1669_v63  ;;  %v1749_v63 = vrot.slane %v4100_v52, %v3310_v60  ;;  %v1758_v49 = vmul.f32 %v1745_v4, %v1740_v40 }
 0x1e2   :  { %v1697_v45 = vrot.slane %v4109_v47, %v3296_v54  ;;  %v1701_v46 = vrot.slane %v4112_v21, %v3296_v54  ;;  %v1706_v16 = vadd.f32 %v1702_v38, %v1660_v13  ;;  %v1707_v9 = vadd.f32 %v1703_v27, %v1661_v35 }
 0x1e3   :  { %v1725_v43 = vrot.slane %v4109_v47, %v3299_v55  ;;  %v1729_v41 = vrot.slane %v4112_v21, %v3299_v55  ;;  %v1753_v57 = vrot.slane %v4109_v47, %v3310_v60  ;;  %v1757_v53 = vrot.slane %v4112_v21, %v3310_v60 }
 0x1e4   :  { %v4090_v20 = vpop.permute.xlu1 %1767  ;;  %v1704_v14 = vmul.f32 %v1697_v45, %v4064_v2  ;;  %v1705_v7 = vmul.f32 %v1701_v46, %v4064_v2  ;;  %v1731_v2 = vmul.f32 %v1721_v31, %v4080_v15  ;;  %v1734_v30 = vadd.f32 %v1730_v3, %v1706_v16 }
 0x1e5   :  { %v1732_v39 = vmul.f32 %v1725_v43, %v4080_v15  ;;  %v1733_v28 = vmul.f32 %v1729_v41, %v4080_v15  ;;  %v1759_v29 = vmul.f32 %v1749_v63, %v1740_v40  ;;  %v1760_v23 = vmul.f32 %v1753_v57, %v1740_v40 }
 0x1e6   :  { %v1708_v17 = vadd.f32 %v1704_v14, %v1662_v0  ;;  %v1709_v19 = vadd.f32 %v1705_v7, %v1663_v51  ;;  %v1735_v58 = vadd.f32 %v1731_v2, %v1707_v9  ;;  %v1761_v5 = vmul.f32 %v1757_v53, %v1740_v40  ;;  %v4196_v9 = vpop.permute.xlu0 %1971 }
 0x1e7   :  { %v1781_v15 = vrot.slane %v4109_v47, %v3783_v59  ;;  %v1785_v22 = vrot.slane %v4112_v21, %v3783_v59  ;;  %v1762_v44 = vadd.f32 %v1758_v49, %v1734_v30  ;;  %v1786_v45 = vmul.f32 %v1773_v42, %v4090_v20 }
 0x1e8   :  { %v1736_v12 = vadd.f32 %v1732_v39, %v1708_v17  ;;  %v1737_v32 = vadd.f32 %v1733_v28, %v1709_v19  ;;  %v1763_v26 = vadd.f32 %v1759_v29, %v1735_v58  ;;  %v1787_v46 = vmul.f32 %v1777_v61, %v4090_v20 }
 0x1e9   :  { %v4114_v62 = vpop.permute.xlu1 %1813  ;;  %v1788_v37 = vmul.f32 %v1781_v15, %v4090_v20  ;;  %v1789_v34 = vmul.f32 %v1785_v22, %v4090_v20  ;;  %v1790_v13 = vadd.f32 %v1786_v45, %v1762_v44 }
 0x1ea   :  { %v1764_v11 = vadd.f32 %v1760_v23, %v1736_v12  ;;  %v1765_v38 = vadd.f32 %v1761_v5, %v1737_v32  ;;  %v1791_v35 = vadd.f32 %v1787_v46, %v1763_v26  ;;  %v1929_v5 = vpop.permute.xlu0 %1928 }
 0x1ec   :  { %v1792_v51 = vadd.f32 %v1788_v37, %v1764_v11  ;;  %v1793_v16 = vadd.f32 %v1789_v34, %v1765_v38 }
 0x1ed   :  { %v1795_v56 = vpop.permute.xlu1 %1794 }
 0x1f1   :  { %v1797_v8 = vpop.permute.xlu1 %1796 }
 0x1f2   :  { %v4159_v48 = vsel %vm711_vm5, %v1795_v56, %v1797_v8  ;;  %v4162_v18 = vsel %vm711_vm5, %v1797_v8, %v1795_v56 }
 0x1f3   :  { %v1819_v10 = vrot.slane %v4159_v48, %v3296_v54  ;;  %v1823_v40 = vrot.slane %v4162_v18, %v3296_v54  ;;  %v1847_v31 = vrot.slane %v4159_v48, %v3299_v55  ;;  %v1851_v14 = vrot.slane %v4162_v18, %v3299_v55 }
 0x1f4   :  { %v1875_v43 = vrot.slane %v4159_v48, %v3310_v60  ;;  %v1879_v41 = vrot.slane %v4162_v18, %v3310_v60  ;;  %v1907_v30 = vrot.slane %v4162_v18, %v3783_v59 }
 0x1f5   :  { %v1801_v24 = vpop.permute.xlu1 %1800  ;;  %v1832_v27 = vmul.f32 %v1819_v10, %v4114_v62  ;;  %v1833_v56 = vmul.f32 %v1823_v40, %v4114_v62  ;;  %v1860_v57 = vmul.f32 %v1847_v31, %v4130_v1  ;;  %v1861_v53 = vmul.f32 %v1851_v14, %v4130_v1 }
 0x1f6   :  { %v4165_v50 = vsel %vm711_vm5, %v1799_v25, %v1801_v24  ;;  %v4168_v52 = vsel %vm711_vm5, %v1801_v24, %v1799_v25  ;;  %v1903_v25 = vrot.slane %v4159_v48, %v3783_v59  ;;  %v1888_v39 = vmul.f32 %v1875_v43, %v1870_v36 }
 0x1f7   :  { %v1827_v47 = vrot.slane %v4165_v50, %v3296_v54  ;;  %v1831_v21 = vrot.slane %v4168_v52, %v3296_v54  ;;  %v1836_v8 = vadd.f32 %v1832_v27, %v1790_v13  ;;  %v1837_v4 = vadd.f32 %v1833_v56, %v1791_v35  ;;  %v2000_v56 = vpop.permute.xlu0 %1999 }
 0x1f8   :  { %v1855_v20 = vrot.slane %v4165_v50, %v3299_v55  ;;  %v1859_v63 = vrot.slane %v4168_v52, %v3299_v55  ;;  %v1887_v3 = vrot.slane %v4168_v52, %v3310_v60  ;;  %v1889_v28 = vmul.f32 %v1879_v41, %v1870_v36 }
 0x1f9   :  { %v4178_v6 = vpop.permute.xlu1 %1897  ;;  %v1834_v7 = vmul.f32 %v1827_v47, %v4114_v62  ;;  %v1835_v0 = vmul.f32 %v1831_v21, %v4114_v62  ;;  %v1883_v62 = vrot.slane %v4165_v50, %v3310_v60  ;;  %v1864_v58 = vadd.f32 %v1860_v57, %v1836_v8 }
 0x1fa   :  { %v1865_v42 = vadd.f32 %v1861_v53, %v1837_v4  ;;  %v1862_v61 = vmul.f32 %v1855_v20, %v4130_v1  ;;  %v1863_v24 = vmul.f32 %v1859_v63, %v4130_v1  ;;  %v1891_v29 = vmul.f32 %v1887_v3, %v1870_v36 }
 0x1fb   :  { %v1838_v17 = vadd.f32 %v1834_v7, %v1792_v51  ;;  %v1839_v19 = vadd.f32 %v1835_v0, %v1793_v16  ;;  %v1890_v49 = vmul.f32 %v1883_v62, %v1870_v36  ;;  %v1911_v18 = vrot.slane %v4165_v50, %v3783_v59  ;;  %v4252_v57 = vpop.permute.xlu0 %2101 }
 0x1fc   :  { %v1915_v1 = vrot.slane %v4168_v52, %v3783_v59  ;;  %v1893_v40 = vadd.f32 %v1889_v28, %v1865_v42  ;;  %v1892_v26 = vadd.f32 %v1888_v39, %v1864_v58  ;;  %v1916_v44 = vmul.f32 %v1903_v25, %v4178_v6 }
 0x1fd   :  { %v1866_v12 = vadd.f32 %v1862_v61, %v1838_v17  ;;  %v1867_v32 = vadd.f32 %v1863_v24, %v1839_v19  ;;  %v1917_v45 = vmul.f32 %v1907_v30, %v4178_v6  ;;  %v1918_v37 = vmul.f32 %v1911_v18, %v4178_v6 }
 0x1fe   :  { %v1944_v33 = vpop.permute.xlu1 %1943  ;;  %v1919_v34 = vmul.f32 %v1915_v1, %v4178_v6  ;;  %v1920_v13 = vadd.f32 %v1916_v44, %v1892_v26 }
 0x1ff   :  { %v1894_v36 = vadd.f32 %v1890_v49, %v1866_v12  ;;  %v1895_v47 = vadd.f32 %v1891_v29, %v1867_v32  ;;  %v1921_v35 = vadd.f32 %v1917_v45, %v1893_v40  ;;  %v2059_v40 = vpop.permute.xlu0 %2058 }
 0x201   :  { %v1922_v16 = vadd.f32 %v1918_v37, %v1894_v36  ;;  %v1923_v8 = vadd.f32 %v1919_v34, %v1895_v47 }
 0x202   :  { %v1925_v2 = vpop.permute.xlu1 %1924 }
 0x206   :  { %v1927_v23 = vpop.permute.xlu1 %1926 }
 0x207   :  { %v4219_v15 = vsel %vm814_vm6, %v1925_v2, %v1927_v23  ;;  %v4222_v48 = vsel %vm814_vm6, %v1927_v23, %v1925_v2 }
 0x208   :  { %v1949_v22 = vrot.slane %v4219_v15, %v3296_v54  ;;  %v1953_v10 = vrot.slane %v4222_v48, %v3296_v54  ;;  %v1977_v31 = vrot.slane %v4219_v15, %v3299_v55  ;;  %v1981_v14 = vrot.slane %v4222_v48, %v3299_v55 }
 0x209   :  { %v2005_v6 = vrot.slane %v4219_v15, %v3310_v60  ;;  %v2009_v41 = vrot.slane %v4222_v48, %v3310_v60  ;;  %v2033_v61 = vrot.slane %v4219_v15, %v3783_v59  ;;  %v2037_v24 = vrot.slane %v4222_v48, %v3783_v59 }
 0x20a   :  { %v1931_v46 = vpop.permute.xlu1 %1930  ;;  %v1962_v52 = vmul.f32 %v1949_v22, %v1944_v33  ;;  %v1963_v11 = vmul.f32 %v1953_v10, %v1944_v33  ;;  %v1990_v62 = vmul.f32 %v1977_v31, %v4196_v9  ;;  %v1991_v3 = vmul.f32 %v1981_v14, %v4196_v9 }
 0x20b   :  { %v1933_v50 = vsel %vm814_vm6, %v1929_v5, %v1931_v46  ;;  %v1941_v21 = vsel %vm814_vm6, %v1931_v46, %v1929_v5  ;;  %v2018_v39 = vmul.f32 %v2005_v6, %v2000_v56  ;;  %v2019_v28 = vmul.f32 %v2009_v41, %v2000_v56 }
 0x20c   :  { %v1957_v38 = vrot.slane %v1933_v50, %v3296_v54  ;;  %v1961_v27 = vrot.slane %v1941_v21, %v3296_v54  ;;  %v1966_v4 = vadd.f32 %v1962_v52, %v1920_v13  ;;  %v1967_v20 = vadd.f32 %v1963_v11, %v1921_v35 }
 0x20d   :  { %v1985_v63 = vrot.slane %v1933_v50, %v3299_v55  ;;  %v1989_v43 = vrot.slane %v1941_v21, %v3299_v55  ;;  %v2013_v53 = vrot.slane %v1933_v50, %v3310_v60  ;;  %v2017_v17 = vrot.slane %v1941_v21, %v3310_v60 }
 0x20e   :  { %v1964_v7 = vmul.f32 %v1957_v38, %v1944_v33  ;;  %v1965_v0 = vmul.f32 %v1961_v27, %v1944_v33  ;;  %v2028_v51 = vpop.permute.xlu1 %2027  ;;  %v1994_v25 = vadd.f32 %v1990_v62, %v1966_v4  ;;  %v1995_v30 = vadd.f32 %v1991_v3, %v1967_v20  ;;  %v2130_v27 = vpop.permute.xlu0 %2129 }
 0x20f   :  { %v1992_v58 = vmul.f32 %v1985_v63, %v4196_v9  ;;  %v1993_v42 = vmul.f32 %v1989_v43, %v4196_v9  ;;  %v2020_v23 = vmul.f32 %v2013_v53, %v2000_v56  ;;  %v2021_v5 = vmul.f32 %v2017_v17, %v2000_v56 }
 0x210   :  { %v1968_v33 = vadd.f32 %v1964_v7, %v1922_v16  ;;  %v1969_v2 = vadd.f32 %v1965_v0, %v1923_v8  ;;  %v2041_v12 = vrot.slane %v1933_v50, %v3783_v59  ;;  %v2045_v32 = vrot.slane %v1941_v21, %v3783_v59 }
 0x211   :  { %v2023_v1 = vadd.f32 %v2019_v28, %v1995_v30  ;;  %v2022_v22 = vadd.f32 %v2018_v39, %v1994_v25  ;;  %v2046_v9 = vmul.f32 %v2033_v61, %v2028_v51  ;;  %v2047_v10 = vmul.f32 %v2037_v24, %v2028_v51 }
 0x212   :  { %v1996_v49 = vadd.f32 %v1992_v58, %v1968_v33  ;;  %v1997_v29 = vadd.f32 %v1993_v42, %v1969_v2  ;;  %v2048_v44 = vmul.f32 %v2041_v12, %v2028_v51  ;;  %v2049_v48 = vmul.f32 %v2045_v32, %v2028_v51 }
 0x213   :  { %v2074_v19 = vpop.permute.xlu1 %2073  ;;  %v2050_v46 = vadd.f32 %v2046_v9, %v2022_v22  ;;  %v2051_v36 = vadd.f32 %v2047_v10, %v2023_v1 }
 0x214   :  { %v2024_v15 = vadd.f32 %v2020_v23, %v1996_v49  ;;  %v2025_v26 = vadd.f32 %v2021_v5, %v1997_v29 }
 0x216   :  { %v2052_v56 = vadd.f32 %v2048_v44, %v2024_v15  ;;  %v2053_v37 = vadd.f32 %v2049_v48, %v2025_v26  ;;  %v2194_v15 = vld [vmem:[%s4409_s5] sm:$0x1f] }
 0x217   :  { %v2055_v18 = vpop.permute.xlu1 %2054 }
 0x21b   :  { %v2057_v45 = vpop.permute.xlu1 %2056 }
 0x21c   :  { %v2062_v47 = vsel %vm917_vm7, %v2055_v18, %v2057_v45  ;;  %v2070_v52 = vsel %vm917_vm7, %v2057_v45, %v2055_v18 }
 0x21d   :  { %v2079_v50 = vrot.slane %v2062_v47, %v3296_v54  ;;  %v2083_v21 = vrot.slane %v2070_v52, %v3296_v54  ;;  %v2107_v11 = vrot.slane %v2062_v47, %v3299_v55  ;;  %v2111_v38 = vrot.slane %v2070_v52, %v3299_v55 }
 0x21e   :  { %v2135_v34 = vrot.slane %v2062_v47, %v3310_v60  ;;  %v2139_v13 = vrot.slane %v2070_v52, %v3310_v60  ;;  %v2163_v58 = vrot.slane %v2062_v47, %v3783_v59  ;;  %v2167_v42 = vrot.slane %v2070_v52, %v3783_v59 }
 0x21f   :  { %v2092_v35 = vmul.f32 %v2079_v50, %v2074_v19  ;;  %v2093_v31 = vmul.f32 %v2083_v21, %v2074_v19  ;;  %v2120_v14 = vmul.f32 %v2107_v11, %v4252_v57  ;;  %v2121_v7 = vmul.f32 %v2111_v38, %v4252_v57  ;;  %v2061_v0 = vpop.permute.xlu1 %2060 }
 0x220   :  { %v2148_v51 = vmul.f32 %v2135_v34, %v2130_v27  ;;  %v2149_v16 = vmul.f32 %v2139_v13, %v2130_v27  ;;  %v2063_v8 = vsel %vm917_vm7, %v2059_v40, %v2061_v0  ;;  %v2071_v4 = vsel %vm917_vm7, %v2061_v0, %v2059_v40 }
 0x221   :  { %v2096_v20 = vadd.f32 %v2092_v35, %v2050_v46  ;;  %v2097_v63 = vadd.f32 %v2093_v31, %v2051_v36  ;;  %v2087_v43 = vrot.slane %v2063_v8, %v3296_v54  ;;  %v2091_v6 = vrot.slane %v2071_v4, %v3296_v54  ;;  %v2196_v46 = vld [vmem:[%s4409_s5 + $0x10] sm:$0x1f]  ;;  %v2197_v36 = vld [vmem:[%s4409_s5 + $0x18] sm:$0x1f] }
 0x222   :  { %v2115_v41 = vrot.slane %v2063_v8, %v3299_v55  ;;  %v2119_v62 = vrot.slane %v2071_v4, %v3299_v55  ;;  %v2143_v3 = vrot.slane %v2063_v8, %v3310_v60  ;;  %v2147_v33 = vrot.slane %v2071_v4, %v3310_v60 }
 0x223   :  { %v2124_v2 = vadd.f32 %v2120_v14, %v2096_v20  ;;  %v2125_v53 = vadd.f32 %v2121_v7, %v2097_v63  ;;  %v2094_v17 = vmul.f32 %v2087_v43, %v2074_v19  ;;  %v2095_v25 = vmul.f32 %v2091_v6, %v2074_v19  ;;  %v2158_v30 = vpop.permute.xlu1 %2157 }
 0x224   :  { %v2122_v61 = vmul.f32 %v2115_v41, %v4252_v57  ;;  %v2123_v54 = vmul.f32 %v2119_v62, %v4252_v57  ;;  %v2171_v49 = vrot.slane %v2063_v8, %v3783_v59  ;;  %v2175_v60 = vrot.slane %v2071_v4, %v3783_v59  ;;  %v2195_v59 = vld [vmem:[%s4409_s5 + $0x8] sm:$0x1f] }
 0x225   :  { %v2152_v24 = vadd.f32 %v2148_v51, %v2124_v2  ;;  %v2153_v39 = vadd.f32 %v2149_v16, %v2125_v53  ;;  %v2098_v55 = vadd.f32 %v2094_v17, %v2052_v56  ;;  %v2099_v28 = vadd.f32 %v2095_v25, %v2053_v37 }
 0x226   :  { %v2176_v29 = vmul.f32 %v2163_v58, %v2158_v30  ;;  %v2177_v23 = vmul.f32 %v2167_v42, %v2158_v30  ;;  %v2150_v12 = vmul.f32 %v2143_v3, %v2130_v27  ;;  %v2151_v32 = vmul.f32 %v2147_v33, %v2130_v27 }
 0x227   :  { %v2126_v19 = vadd.f32 %v2122_v61, %v2098_v55  ;;  %v2127_v5 = vadd.f32 %v2123_v54, %v2099_v28  ;;  %v2178_v9 = vmul.f32 %v2171_v49, %v2158_v30  ;;  %v2179_v10 = vmul.f32 %v2175_v60, %v2158_v30  ;;  %v2374_v54 = vld [vmem:[%s4410_s6 + $0x28] sm:$0x7f]  ;;  %v2369_v55 = vld [vmem:[%s4410_s6] sm:$0x7f]  ;;  %v2376_v28 = vld [vmem:[%s4410_s6 + $0x38] sm:$0x7f] }
 0x228   :  { %v2181_v18 = vadd.f32 %v2177_v23, %v2153_v39  ;;  %v2188_v1 = vpop.permute.xlu1 %2187  ;;  %v2180_v22 = vadd.f32 %v2176_v29, %v2152_v24  ;;  %v2370_v24 = vld [vmem:[%s4410_s6 + $0x8] sm:$0x7f]  ;;  %2526 = vmatprep.subr.mxu0 %v2374_v54  ;;  %v2373_v39 = vld [vmem:[%s4410_s6 + $0x20] sm:$0x7f]  ;;  %v2372_v49 = vld [vmem:[%s4410_s6 + $0x18] sm:$0x7f] }
 0x229   :  { %v2154_v57 = vadd.f32 %v2150_v12, %v2126_v19  ;;  %v2155_v40 = vadd.f32 %v2151_v32, %v2127_v5  ;;  %2386 = vmatprep.subr.mxu1 %v2370_v24  ;;  %2527 = vmatpush1.xpose.msra.mxu0 %v2373_v39  ;;  %v2378_v54 = vld [vmem:[%s4410_s6 + $0x48] sm:$0x7f] }
 0x22a   :  { %v2190_v26 = vadd.f32 %v2188_v1, %v2180_v22  ;;  %v2191_v44 = vadd.f32 %v2188_v1, %v2181_v18  ;;  %2387 = vmatpush1.xpose.msra.mxu1 %v2369_v55  ;;  %2596 = vmatprep.subr.mxu0 %v2376_v28 }
 0x22b   :  { %v2182_v48 = vadd.f32 %v2178_v9, %v2154_v57  ;;  %v2183_v45 = vadd.f32 %v2179_v10, %v2155_v40  ;;  %2456 = vmatprep.subr.mxu1 %v2372_v49 }
 0x22c   :  { %v2198_v47 = vmul.f32 %v2194_v15, %v2190_v26  ;;  %v2199_v52 = vmul.f32 %v2195_v59, %v2191_v44 }
 0x22d   :  { %v2192_v50 = vadd.f32 %v2188_v1, %v2182_v48  ;;  %v2193_v21 = vadd.f32 %v2188_v1, %v2183_v45 }
 0x22e   :  { %v2203_v11 = vmax.f32 %v2199_v52, 0.0  ;;  %v2202_v38 = vmax.f32 %v2198_v47, 0.0 }
 0x22f   :  { %v2200_v27 = vmul.f32 %v2196_v46, %v2192_v50  ;;  %v2201_v56 = vmul.f32 %v2197_v36, %v2193_v21 }
 0x230   :  { %2212 = vrot.lane.b32.xlu1 %v2203_v11, %s2999_s16  ;;  %2210 = vrot.lane.b32.xlu0 %v2202_v38, %s2999_s16 }
 0x231   :  { %v2205_v37 = vmax.f32 %v2201_v56, 0.0  ;;  %v2204_v34 = vmax.f32 %v2200_v27, 0.0 }
 0x234   :  { %2216 = vrot.lane.b32.xlu1 %v2205_v37, %s2999_s16  ;;  %2214 = vrot.lane.b32.xlu0 %v2204_v34, %s2999_s16 }
 0x2a2   :  { %v2213_v13 = vpop.permute.xlu1 %2212  ;;  %v2211_v35 = vpop.permute.xlu0 %2210 }
 0x2a3   :  { %v2218_v31 = vsel %vm196_vm0, %v2211_v35, %v2213_v13  ;;  %v2226_v14 = vsel %vm196_vm0, %v2213_v13, %v2211_v35 }
 0x2a4   :  { %v2228_v7 = vadd.f32 %v2218_v31, %v2202_v38  ;;  %v2229_v0 = vadd.f32 %v2226_v14, %v2203_v11 }
 0x2a6   :  { %v2217_v51 = vpop.permute.xlu1 %2216  ;;  %2238 = vrot.lane.b32.xlu1 %v2229_v0, %s3006_s19  ;;  %2236 = vrot.lane.b32.xlu0 %v2228_v7, %s3006_s19  ;;  %v2215_v16 = vpop.permute.xlu0 %2214 }
 0x2a7   :  { %v2219_v8 = vsel %vm196_vm0, %v2215_v16, %v2217_v51  ;;  %v2227_v4 = vsel %vm196_vm0, %v2217_v51, %v2215_v16 }
 0x2a8   :  { %v2230_v20 = vadd.f32 %v2219_v8, %v2204_v34  ;;  %v2231_v63 = vadd.f32 %v2227_v4, %v2205_v37 }
 0x2aa   :  { %2242 = vrot.lane.b32.xlu1 %v2231_v63, %s3006_s19  ;;  %2240 = vrot.lane.b32.xlu0 %v2230_v20, %s3006_s19 }
 0x318   :  { %v2239_v43 = vpop.permute.xlu1 %2238  ;;  %v2237_v6 = vpop.permute.xlu0 %2236 }
 0x319   :  { %v2244_v41 = vsel %vm402_vm2, %v2237_v6, %v2239_v43  ;;  %v2252_v62 = vsel %vm402_vm2, %v2239_v43, %v2237_v6 }
 0x31a   :  { %v2254_v3 = vadd.f32 %v2244_v41, %v2228_v7  ;;  %v2255_v33 = vadd.f32 %v2252_v62, %v2229_v0 }
 0x31c   :  { %v2243_v2 = vpop.permute.xlu1 %2242  ;;  %v2241_v53 = vpop.permute.xlu0 %2240  ;;  %v2904_v17 = vpack.i.bf16 %v2255_v33, %v2254_v3 }
 0x31d   :  { %v2245_v25 = vsel %vm402_vm2, %v2241_v53, %v2243_v2  ;;  %v2253_v30 = vsel %vm402_vm2, %v2243_v2, %v2241_v53 }
 0x31e   :  { %v2256_v58 = vadd.f32 %v2245_v25, %v2230_v20  ;;  %v2257_v42 = vadd.f32 %v2253_v30, %v2231_v63  ;;  %2905 = vrot.lane.b32.xlu0 %v2904_v17, %s3002_s0  ;;  %v2375_v30 = vld [vmem:[%s4410_s6 + $0x30] sm:$0x7f] }
 0x320   :  { %v2909_v61 = vpack.i.bf16 %v2257_v42, %v2256_v58 }
 0x322   :  { %2915 = vrot.lane.b32.xlu0 %v2904_v17, %s3016_s22  ;;  %2910 = vrot.lane.b32.xlu1 %v2909_v61, %s3002_s0 }
 0x326   :  { %2925 = vrot.lane.b32.xlu0 %v2904_v17, %s3022_s24  ;;  %2920 = vrot.lane.b32.xlu1 %v2909_v61, %s3016_s22 }
 0x32a   :  { %2930 = vrot.lane.b32.xlu1 %v2909_v61, %s3022_s24 }
 0x390   :  { %v2906_v60 = vpop.permute.xlu0 %2905 }
 0x391   :  { %v2908_v29 = vunpack.i.h.bf16 %v2906_v60  ;;  %v2907_v23 = vunpack.i.l.bf16 %v2906_v60  ;;  %v2377_v60 = vld [vmem:[%s4410_s6 + $0x40] sm:$0x7f] }
 0x393   :  { %v2270_v18 = vsel %vm299_vm1, %v2907_v23, %v2908_v29  ;;  %v2278_v1 = vsel %vm299_vm1, %v2908_v29, %v2907_v23 }
 0x394   :  { %v2911_v19 = vpop.permute.xlu1 %2910  ;;  %v2916_v5 = vpop.permute.xlu0 %2915  ;;  %v2280_v36 = vmax.f32 %v2254_v3, %v2270_v18  ;;  %v2281_v47 = vmax.f32 %v2255_v33, %v2278_v1 }
 0x395   :  { %v2918_v12 = vunpack.i.h.bf16 %v2916_v5  ;;  %v2917_v32 = vunpack.i.l.bf16 %v2916_v5  ;;  %v2913_v10 = vunpack.i.h.bf16 %v2911_v19  ;;  %v2912_v57 = vunpack.i.l.bf16 %v2911_v19 }
 0x397   :  { %v2292_v44 = vsel %vm711_vm5, %v2917_v32, %v2918_v12  ;;  %v2300_v48 = vsel %vm711_vm5, %v2918_v12, %v2917_v32  ;;  %v2271_v11 = vsel %vm299_vm1, %v2912_v57, %v2913_v10  ;;  %v2279_v38 = vsel %vm299_vm1, %v2913_v10, %v2912_v57 }
 0x398   :  { %v2921_v22 = vpop.permute.xlu1 %2920  ;;  %v2926_v9 = vpop.permute.xlu0 %2925  ;;  %v2282_v7 = vmax.f32 %v2256_v58, %v2271_v11  ;;  %v2283_v0 = vmax.f32 %v2257_v42, %v2279_v38  ;;  %v2371_v42 = vld [vmem:[%s4410_s6 + $0x10] sm:$0x7f] }
 0x399   :  { %v2928_v40 = vunpack.i.h.bf16 %v2926_v9  ;;  %v2927_v15 = vunpack.i.l.bf16 %v2926_v9  ;;  %v2923_v59 = vunpack.i.h.bf16 %v2921_v22  ;;  %v2922_v26 = vunpack.i.l.bf16 %v2921_v22  ;;  %v2783_v9 = vld [vmem:[%s4411_s7] ss:$0 sm:$0xff] }
 0x39b   :  { %v2310_v45 = vsel %vm917_vm7, %v2927_v15, %v2928_v40  ;;  %v2318_v46 = vsel %vm917_vm7, %v2928_v40, %v2927_v15  ;;  %v2293_v37 = vsel %vm711_vm5, %v2922_v26, %v2923_v59  ;;  %v2301_v34 = vsel %vm711_vm5, %v2923_v59, %v2922_v26  ;;  %v2738_v40 = vld [vmem:[%s4412_s8] sm:$0x3] }
 0x39c   :  { %v2320_v52 = vmax.f32 %v2292_v44, %v2310_v45  ;;  %v2321_v50 = vmax.f32 %v2300_v48, %v2318_v46  ;;  %v2931_v21 = vpop.permute.xlu1 %2930 }
 0x39d   :  { %v2933_v27 = vunpack.i.h.bf16 %v2931_v21  ;;  %v2932_v56 = vunpack.i.l.bf16 %v2931_v21 }
 0x39e   :  { %v2324_v13 = vmax.f32 %v2280_v36, %v2320_v52  ;;  %v2325_v35 = vmax.f32 %v2281_v47, %v2321_v50 }
 0x39f   :  { %v2311_v31 = vsel %vm917_vm7, %v2932_v56, %v2933_v27  ;;  %v2319_v14 = vsel %vm917_vm7, %v2933_v27, %v2932_v56 }
 0x3a0   :  { %v2322_v51 = vmax.f32 %v2293_v37, %v2311_v31  ;;  %v2323_v16 = vmax.f32 %v2301_v34, %v2319_v14  ;;  %v2348_v20 = vrot.slane %v2325_v35, 2  ;;  %v2345_v63 = vrot.slane %v2324_v13, 2 }
 0x3a1   :  { %v2341_v3 = vrot.slane %v2325_v35, 1  ;;  %v2356_v58 = vrot.slane %v2325_v35, 3  ;;  %v2339_v28 = vrot.slane %v2324_v13, 1  ;;  %v2353_v49 = vrot.slane %v2324_v13, 3 }
 0x3a2   :  { %v2326_v8 = vmax.f32 %v2282_v7, %v2322_v51  ;;  %v2327_v4 = vmax.f32 %v2283_v0, %v2323_v16  ;;  %v2364_v29 = vrot.slane %v2325_v35, 4  ;;  %v2361_v32 = vrot.slane %v2324_v13, 4 }
 0x3a4   :  { %v2335_v43 = vrot.slane %v2327_v4, 7  ;;  %v2349_v6 = vrot.slane %v2327_v4, 1  ;;  %v2332_v41 = vrot.slane %v2326_v8, 7  ;;  %v2346_v62 = vrot.slane %v2326_v8, 1 }
 0x3a5   :  { %v2357_v33 = vrot.slane %v2327_v4, 2  ;;  %v2342_v61 = vsel %vm2333_vm8, %v2327_v4, %v2341_v3  ;;  %v2354_v39 = vrot.slane %v2326_v8, 2  ;;  %v2365_v55 = vrot.slane %v2327_v4, 3 }
 0x3a6   :  { %v2336_v2 = vsel %vm2333_vm8, %v2335_v43, %v2325_v35  ;;  %v2350_v53 = vsel %vm2333_vm8, %v2349_v6, %v2348_v20  ;;  %v2334_v17 = vsel %vm2333_vm8, %v2332_v41, %v2324_v13  ;;  %v2347_v25 = vsel %vm2333_vm8, %v2346_v62, %v2345_v63 }
 0x3a7   :  { %2450 = vmatprep.mubr.f32.mxu1 %v2336_v2  ;;  %2590 = vmatprep.mubr.f32.mxu0 %v2350_v53  ;;  %v2358_v24 = vsel %vm2333_vm8, %v2357_v33, %v2356_v58  ;;  %v2340_v23 = vsel %vm2333_vm8, %v2326_v8, %v2339_v28  ;;  %v2355_v19 = vsel %vm2333_vm8, %v2354_v39, %v2353_v49  ;;  %v2362_v12 = vrot.slane %v2326_v8, 3 }
 0x3a8   :  { %2451 = vmatmul.mubr.f32.vlgmr.msra.gmra.mrb[0].mxu1 %v2334_v17  ;;  %2591 = vmatmul.mubr.f32.vlgmr.msra.gmra.mrb[0].mxu0 %v2347_v25  ;;  %v2366_v5 = vsel %vm2333_vm8, %v2365_v55, %v2364_v29 }
 0x3a9   :  { %2597 = vmatpush1.xpose.msra.mxu0 %v2375_v30  ;;  %2520 = vmatprep.mubr.f32.mxu1 %v2342_v61  ;;  %v2363_v18 = vsel %vm2333_vm8, %v2362_v12, %v2361_v32 }
 0x3aa   :  { %2660 = vmatprep.mubr.f32.mxu0 %v2358_v24  ;;  %2457 = vmatpush1.xpose.msra.mxu1 %v2371_v42 }
 0x3ab   :  { %2666 = vmatprep.subr.mxu0 %v2378_v54 }
 0x3b0   :  { %2521 = vmatmul.mubr.f32.vlgmr.msra.gmra.mrb[0].mxu1 %v2340_v23  ;;  %2661 = vmatmul.mubr.f32.vlgmr.msra.gmra.mrb[0].mxu0 %v2355_v19 }
 0x3b1   :  { %2667 = vmatpush1.xpose.msra.mxu0 %v2377_v60  ;;  %2730 = vmatprep.mubr.f32.mxu0 %v2366_v5 }
 0x3b8   :  { %2731 = vmatmul.mubr.f32.vlgmr.msra.gmra.mrb[0].mxu0 %v2363_v18 }
 0x483   :  { %v2522_v1 = vpop.f32.mrb[0].mxu1 }
 0x484   :  { %v2524_v22 = vpop.f32.mrb[1].mxu1  ;;  %v2784_v10 = vadd.f32 %v2783_v9, %v2522_v1 }
 0x48b   :  { %v2732_v57 = vpop.f32.mrb[0].mxu0 }
 0x48c   :  { %v2785_v15 = vadd.f32 %v2784_v10, %v2732_v57  ;;  %v2734_v59 = vpop.f32.mrb[1].mxu0 }
 0x48e   :  { %v2739_v26 = vsub.f32 %v2785_v15, %v2738_v40  ;;  %2737 = vst.msk [vmem:[#allocation2] sm:$0x3] %vm2736_vm9, %v2785_v15 }
 0x490   :  { %v2740_v44 = vmul.f32 %v2739_v26, %v2739_v26 }
 0x492   :  { %v2741_v48 = vsel %vm2736_vm9, %v2740_v44, 0.0 }
 0x493   :  { %2742 = vadd.xlane.f32.xlu0 %v2741_v48 }
 0x494   :  { %2957 = shalt.err (!%p2954_p4)
}
 0x495   :  { %s2958_s5 = scalar_lea.hbm %s4413_s9, 32 }
 0x496   :  { %p2959_p5 = scmp.ne.s32.totalorder %s4413_s9, %s2958_s5  ;;  %p2962_p6 = scmp.lt.u32.totalorder %s2958_s5, %s4413_s9 }
 0x498   :  { %p2964_p7 = pnand %p2962_p6, %p2959_p5 }
 0x49a   :  { %2967 = shalt.err (!%p2964_p7)
}
 0x49b   :  { %2764 = dma.vmem_to_hbm [thread:$0]  %s2762_s15, 32, %s4413_s9, [#allocation3]   ;;  %vm2753_vm10 = vcmask 0  }
 0x49c   :  { %s3039_s25 = smov [#allocation4]  }
 0x49d   :  { %s2771_s0 = sshll.u32 %s3039_s25, 4  ;;  %s2772_s0 = int_to_ptr.vmem [resolvable:$true] %s2771_s0 }
 0x49e   :  { %s2968_s27 = scalar_lea.vmem %s2772_s0, 16  ;;  %s2972_s28 = scalar_lea.vmem %s2772_s0, 32 }
 0x49f   :  { %p2969_p8 = scmp.ne.s32.totalorder %s2772_s0, %s2968_s27  ;;  %p2973_p9 = scmp.lt.s32.totalorder %s2772_s0, %s2772_s0 }
 0x4a0   :  { %p2974_p10 = scmp.lt.s32.totalorder %s2972_s28, %s2968_s27 }
 0x4a2   :  { %p2975_p11 = por %p2974_p10, %p2973_p9 }
 0x4a4   :  { %p2976_p12 = pnand %p2975_p11, %p2969_p8 }
 0x520   :  { %v2743_v45 = vpop.xlane.xlu0 %2742 }
 0x521   :  { %v2744_v46 = vrot.slane %v2743_v45, 4 }
 0x523   :  { %v2745_v36 = vadd.f32 %v2744_v46, %v2743_v45 }
 0x525   :  { %v2746_v47 = vrot.slane %v2745_v36, 2 }
 0x527   :  { %v2747_v52 = vadd.f32 %v2746_v47, %v2745_v36 }
 0x529   :  { %v2748_v50 = vrot.slane %v2747_v52, 1 }
 0x52b   :  { %v2749_v21 = vadd.f32 %v2748_v50, %v2747_v52 }
 0x52d   :  { %2792 = vpush %v2749_v21 }
 0x55e   :  { %s2793_s26 = spop %2792 }
 0x55f   :  { %v2751_v11 = vstv %s2793_s26 }
 0x560   :  { %v2752_v38 = vmul.f32 0.071428575, %v2751_v11 }
 0x562   :  { %2754 = vst.msk [vmem:[#allocation4] sm:$0x1] %vm2753_vm10, %v2752_v38 }
 0x563   :  { %2979 = shalt.err (!%p2976_p12)
}
 0x564   :  { %s2980_s24 = scalar_lea.hbm %s4414_s10, 16 }
 0x565   :  { %p2981_p13 = scmp.ne.s32.totalorder %s4414_s10, %s2980_s24  ;;  %p2984_p0 = scmp.lt.u32.totalorder %s2980_s24, %s4414_s10 }
 0x567   :  { %p2986_p1 = pnand %p2984_p0, %p2981_p13 }
 0x569   :  { %2989 = shalt.err (!%p2986_p1)
}
 0x56a   :  { %2774 = dma.vmem_to_hbm [thread:$0]  %s2772_s0, 16, %s4414_s10, [#allocation5]  }
 0x56b   :  { %2990 = dma.done.wait [#allocation3], 32  }
 0x56c   :  { %2991 = vsyncadd [#allocation3], 4294967264 }
 0x56d   :  { %2992 = dma.done.wait [#allocation5], 16  }
 0x56e   :  { %2993 = vsyncadd [#allocation5], 4294967280 }
 0x56f   :  { %2781 = vsyncpa [#allocation3], 1 }
 0x570   :  { %2782 = vsyncpa [#allocation5], 1 }

</bundles_post_ra>
